<compile_context>
chip_gen: v6e
topology: v6e:2x2x1
jax: 0.10.0
libtpu: 0.0.40
codegen_flags: <defaults>
</compile_context>

<pallas_src>
import functools

import jax
import jax.numpy as jnp
from jax.experimental import pallas as pl
from jax.experimental.pallas import tpu as pltpu


_LRELU_SLOPE = 0.2
_BN_EPS = 1e-5


def _round_up(x, m):
    return ((x + m - 1) // m) * m


def _budgets():
    """Generation-aware VMEM budgets. Conservative (v7x-safe) if query fails."""
    vmem = 64 * 1024 * 1024
    try:
        info = pltpu.get_tpu_info()
        vmem = int(getattr(info, "vmem_capacity_bytes", vmem))
    except Exception:
        pass
    if vmem >= 100 * 1024 * 1024:        # v5e / v6e: 128 MiB physical VMEM
        return {"vmem_limit": 96 << 20, "stream": 24 << 20, "fused": 40 << 20}
    # v7x: 64 MiB physical VMEM
    return {"vmem_limit": 40 << 20, "stream": 8 << 20, "fused": 16 << 20}


_BUDGETS = _budgets()


def _pick_tm(m, row_bytes, budget, fixed_bytes=0):
    """Largest power-of-two M tile whose double-buffered streams fit the
    budget; M is padded up to a multiple of the tile (no full-M fallback)."""
    cap = max(8, (budget - fixed_bytes) // max(1, 2 * row_bytes))
    m8 = _round_up(m, 8)
    tm = 8
    for c in (2048, 1024, 512, 256, 128, 64, 32, 16, 8):
        if c <= cap and c <= m8:
            tm = c
            break
    return tm, _round_up(m, tm)


def _pad_rows(x, m_pad):
    m = x.shape[0]
    if m_pad == m:
        return x
    return jnp.pad(x, ((0, m_pad - m), (0, 0)))


def _fits_fused(m, k, cp, budgets):
    resident = _round_up(m, 8) * cp * 2 + 2 * k * cp * 2 + 8 * cp * 4
    return resident <= budgets["fused"]


# ----------------------------- Pallas kernels ------------------------------ #

def _conv_lrelu_kernel(p_ref, w_ref, o_ref):
    # (tm, K) @ (K, Cp) bf16 -> f32 MXU accumulate, fused LeakyReLU(0.2).
    y = jnp.dot(p_ref[...], w_ref[...], preferred_element_type=jnp.float32)
    o_ref[...] = jnp.where(y > 0, y, _LRELU_SLOPE * y).astype(o_ref.dtype)


def _conv_bn_lrelu_fused_kernel(p_ref, w_ref, o_ref, ssum, ssq, *, inv_m, tm, nt):
    # Fused conv + BN(batch stats) + LeakyReLU. The whole (M, Cp) output block
    # is VMEM-resident across the M grid: phase A (per tile) = matmul + stats
    # accumulation + bf16 store into the resident block; phase B (last tile) =
    # normalize + LReLU in place. `y` never hits HBM.
    i = pl.program_id(0)

    @pl.when(i == 0)
    def _():
        ssum[...] = jnp.zeros_like(ssum)
        ssq[...] = jnp.zeros_like(ssq)

    y = jnp.dot(p_ref[...], w_ref[...], preferred_element_type=jnp.float32)
    ssum[...] += jnp.sum(y, axis=0, keepdims=True)
    ssq[...] += jnp.sum(y * y, axis=0, keepdims=True)
    row0 = pl.multiple_of(i * tm, tm)
    o_ref[pl.ds(row0, tm), :] = y.astype(o_ref.dtype)

    @pl.when(i == nt - 1)
    def _():
        mu = ssum[...] * inv_m
        var = jnp.maximum(ssq[...] * inv_m - mu * mu, 0.0)
        inv_std = jax.lax.rsqrt(var + _BN_EPS)
        z = (o_ref[...].astype(jnp.float32) - mu) * inv_std
        o_ref[...] = jnp.where(z > 0, z, _LRELU_SLOPE * z).astype(o_ref.dtype)


def _conv_bn_pool_head_fused_kernel(p_ref, w_ref, wcls_ref, feat_ref, pred_ref,
                                    ybuf, ssum, ssq, *, inv_m, inv_s, tm, nt, n, s):
    # Fused last layer: conv + BN + LReLU + AdaptiveAvgPool2d(1) + 1x1
    # classifier (no bias) + sigmoid. The feature map lives only in `ybuf`.
    i = pl.program_id(0)

    @pl.when(i == 0)
    def _():
        ssum[...] = jnp.zeros_like(ssum)
        ssq[...] = jnp.zeros_like(ssq)

    y = jnp.dot(p_ref[...], w_ref[...], preferred_element_type=jnp.float32)
    ssum[...] += jnp.sum(y, axis=0, keepdims=True)
    ssq[...] += jnp.sum(y * y, axis=0, keepdims=True)
    row0 = pl.multiple_of(i * tm, tm)
    ybuf[pl.ds(row0, tm), :] = y.astype(ybuf.dtype)

    @pl.when(i == nt - 1)
    def _():
        mu = ssum[...] * inv_m
        var = jnp.maximum(ssq[...] * inv_m - mu * mu, 0.0)
        inv_std = jax.lax.rsqrt(var + _BN_EPS)
        z = (ybuf[...].astype(jnp.float32) - mu) * inv_std
        a = jnp.where(z > 0, z, _LRELU_SLOPE * z)           # (m_pad, Cp) f32
        rows = []
        for b in range(n):                                   # static unroll, small N
            rows.append(jnp.sum(a[b * s:(b + 1) * s, :], axis=0, keepdims=True))
        feat = jnp.concatenate(rows, axis=0) * inv_s         # (N, Cp)
        feat_ref[...] = feat
        logit = jnp.sum(feat * wcls_ref[...], axis=-1, keepdims=True)  # (N, 1)
        pred_ref[...] = 1.0 / (1.0 + jnp.exp(-logit))


def _conv_stats_kernel(p_ref, w_ref, y_ref, psum_ref, psq_ref):
    # Two-pass fallback, pass 1: matmul tile (bf16 out) + PER-TILE partial
    # sums/sumsq (so the grid stays "parallel" -> both v7x TensorCores work).
    # The (1, Cp) partial is spread over 8 sublanes scaled by 1/8 so that the
    # (8, Cp) output block is layout-legal; summing all rows recovers it.
    y = jnp.dot(p_ref[...], w_ref[...], preferred_element_type=jnp.float32)
    y_ref[...] = y.astype(y_ref.dtype)
    s = jnp.sum(y, axis=0, keepdims=True) * 0.125
    q = jnp.sum(y * y, axis=0, keepdims=True) * 0.125
    psum_ref[...] = jnp.broadcast_to(s, psum_ref.shape)
    psq_ref[...] = jnp.broadcast_to(q, psq_ref.shape)


def _bn_lrelu_kernel(y_ref, psum_ref, psq_ref, o_ref, *, inv_m):
    # Two-pass fallback, pass 2: reduce partial stats + normalize + LReLU.
    mu = jnp.sum(psum_ref[...], axis=0, keepdims=True) * inv_m
    ex2 = jnp.sum(psq_ref[...], axis=0, keepdims=True) * inv_m
    var = jnp.maximum(ex2 - mu * mu, 0.0)
    inv_std = jax.lax.rsqrt(var + _BN_EPS)
    z = (y_ref[...].astype(jnp.float32) - mu) * inv_std
    o_ref[...] = jnp.where(z > 0, z, _LRELU_SLOPE * z).astype(o_ref.dtype)


def _bn_pool_head_kernel(y_ref, psum_ref, psq_ref, wcls_ref, feat_ref, pred_ref,
                         acc, *, inv_m, inv_s):
    # Two-pass fallback head, tiled over the spatial axis with a resident
    # (N, Cp) pooled accumulator; classifier + sigmoid on the last tile.
    j = pl.program_id(0)

    @pl.when(j == 0)
    def _():
        acc[...] = jnp.zeros_like(acc)

    mu = jnp.sum(psum_ref[...], axis=0, keepdims=True) * inv_m      # (1, Cp)
    ex2 = jnp.sum(psq_ref[...], axis=0, keepdims=True) * inv_m
    var = jnp.maximum(ex2 - mu * mu, 0.0)
    inv_std = jax.lax.rsqrt(var + _BN_EPS)
    z = (y_ref[...].astype(jnp.float32) - mu[None]) * inv_std[None]  # (N, ts, Cp)
    a = jnp.where(z > 0, z, _LRELU_SLOPE * z)
    acc[...] += jnp.sum(a, axis=1)

    @pl.when(j == pl.num_programs(0) - 1)
    def _():
        feat = acc[...] * inv_s
        feat_ref[...] = feat
        logit = jnp.sum(feat * wcls_ref[...], axis=-1, keepdims=True)
        pred_ref[...] = 1.0 / (1.0 + jnp.exp(-logit))


# ------------------------------ call wrappers ------------------------------ #

def conv_lrelu(patches, w, budgets):
    M, K = patches.shape
    Cp = w.shape[1]
    fixed = 2 * K * Cp * 2
    tm, m_pad = _pick_tm(M, K * 2 + Cp * 2, budgets["stream"], fixed)
    patches = _pad_rows(patches, m_pad)
    nt = m_pad // tm
    return pl.pallas_call(
        _conv_lrelu_kernel,
        out_shape=jax.ShapeDtypeStruct((m_pad, Cp), jnp.bfloat16),
        grid=(nt,),
        in_specs=[pl.BlockSpec((tm, K), lambda i: (i, 0)),
                  pl.BlockSpec((K, Cp), lambda i: (0, 0))],
        out_specs=pl.BlockSpec((tm, Cp), lambda i: (i, 0)),
        compiler_params=pltpu.CompilerParams(
            dimension_semantics=("parallel",),
            vmem_limit_bytes=budgets["vmem_limit"]),
        cost_estimate=pl.CostEstimate(
            flops=2 * m_pad * K * Cp, transcendentals=0,
            bytes_accessed=m_pad * K * 2 + K * Cp * 2 + m_pad * Cp * 2),
    )(patches, w)


def conv_bn_lrelu_fused(patches, w, m_true, budgets):
    M, K = patches.shape
    Cp = w.shape[1]
    fixed = 2 * K * Cp * 2 + _round_up(M, 8) * Cp * 2 + 8 * Cp * 4
    tm, m_pad = _pick_tm(M, K * 2, budgets["stream"], fixed)
    patches = _pad_rows(patches, m_pad)
    nt = m_pad // tm
    kern = functools.partial(_conv_bn_lrelu_fused_kernel,
                             inv_m=1.0 / float(m_true), tm=tm, nt=nt)
    return pl.pallas_call(
        kern,
        out_shape=jax.ShapeDtypeStruct((m_pad, Cp), jnp.bfloat16),
        grid=(nt,),
        in_specs=[pl.BlockSpec((tm, K), lambda i: (i, 0)),
                  pl.BlockSpec((K, Cp), lambda i: (0, 0))],
        out_specs=pl.BlockSpec((m_pad, Cp), lambda i: (0, 0)),   # VMEM-resident
        scratch_shapes=[pltpu.VMEM((1, Cp), jnp.float32),
                        pltpu.VMEM((1, Cp), jnp.float32)],
        compiler_params=pltpu.CompilerParams(
            dimension_semantics=("arbitrary",),
            vmem_limit_bytes=budgets["vmem_limit"]),
        cost_estimate=pl.CostEstimate(
            flops=2 * m_pad * K * Cp + 8 * m_pad * Cp, transcendentals=0,
            bytes_accessed=m_pad * K * 2 + K * Cp * 2 + m_pad * Cp * 2),
    )(patches, w)


def conv_bn_pool_head_fused(patches, w, wcls, n, s, budgets):
    M, K = patches.shape                                 # M == n * s
    Cp = w.shape[1]
    fixed = 2 * K * Cp * 2 + _round_up(M, 8) * Cp * 2 + 8 * Cp * 4
    tm, m_pad = _pick_tm(M, K * 2, budgets["stream"], fixed)
    patches = _pad_rows(patches, m_pad)
    nt = m_pad // tm
    kern = functools.partial(_conv_bn_pool_head_fused_kernel,
                             inv_m=1.0 / float(M), inv_s=1.0 / float(s),
                             tm=tm, nt=nt, n=n, s=s)
    return pl.pallas_call(
        kern,
        out_shape=(jax.ShapeDtypeStruct((n, Cp), jnp.float32),
                   jax.ShapeDtypeStruct((n, 1), jnp.float32)),
        grid=(nt,),
        in_specs=[pl.BlockSpec((tm, K), lambda i: (i, 0)),
                  pl.BlockSpec((K, Cp), lambda i: (0, 0)),
                  pl.BlockSpec((1, Cp), lambda i: (0, 0))],
        out_specs=(pl.BlockSpec((n, Cp), lambda i: (0, 0)),
                   pl.BlockSpec((n, 1), lambda i: (0, 0))),
        scratch_shapes=[pltpu.VMEM((m_pad, Cp), jnp.bfloat16),
                        pltpu.VMEM((1, Cp), jnp.float32),
                        pltpu.VMEM((1, Cp), jnp.float32)],
        compiler_params=pltpu.CompilerParams(
            dimension_semantics=("arbitrary",),
            vmem_limit_bytes=budgets["vmem_limit"]),
        cost_estimate=pl.CostEstimate(
            flops=2 * m_pad * K * Cp + 10 * m_pad * Cp, transcendentals=n,
            bytes_accessed=m_pad * K * 2 + K * Cp * 2 + n * Cp * 4 + n * 4),
    )(patches, w, wcls)


def _conv_stats_call(patches, w, tm, m_pad, budgets):
    K = patches.shape[1]
    Cp = w.shape[1]
    nt = m_pad // tm
    return pl.pallas_call(
        _conv_stats_kernel,
        out_shape=(jax.ShapeDtypeStruct((m_pad, Cp), jnp.bfloat16),
                   jax.ShapeDtypeStruct((8 * nt, Cp), jnp.float32),
                   jax.ShapeDtypeStruct((8 * nt, Cp), jnp.float32)),
        grid=(nt,),
        in_specs=[pl.BlockSpec((tm, K), lambda i: (i, 0)),
                  pl.BlockSpec((K, Cp), lambda i: (0, 0))],
        out_specs=(pl.BlockSpec((tm, Cp), lambda i: (i, 0)),
                   pl.BlockSpec((8, Cp), lambda i: (i, 0)),
                   pl.BlockSpec((8, Cp), lambda i: (i, 0))),
        compiler_params=pltpu.CompilerParams(
            dimension_semantics=("parallel",),
            vmem_limit_bytes=budgets["vmem_limit"]),
        cost_estimate=pl.CostEstimate(
            flops=2 * m_pad * K * Cp + 3 * m_pad * Cp, transcendentals=0,
            bytes_accessed=(m_pad * K * 2 + K * Cp * 2 + m_pad * Cp * 2
                            + 16 * nt * Cp * 4)),
    )(patches, w)


def conv_bn_lrelu_twopass(patches, w, m_true, budgets):
    M, K = patches.shape
    Cp = w.shape[1]
    fixed = 2 * K * Cp * 2 + 4 * 8 * Cp * 4
    tm, m_pad = _pick_tm(M, K * 2 + Cp * 2, budgets["stream"], fixed)
    patches = _pad_rows(patches, m_pad)
    nt = m_pad // tm
    y, psum, psq = _conv_stats_call(patches, w, tm, m_pad, budgets)
    kern = functools.partial(_bn_lrelu_kernel, inv_m=1.0 / float(m_true))
    return pl.pallas_call(
        kern,
        out_shape=jax.ShapeDtypeStruct((m_pad, Cp), jnp.bfloat16),
        grid=(nt,),
        in_specs=[pl.BlockSpec((tm, Cp), lambda i: (i, 0)),
                  pl.BlockSpec((8 * nt, Cp), lambda i: (0, 0)),
                  pl.BlockSpec((8 * nt, Cp), lambda i: (0, 0))],
        out_specs=pl.BlockSpec((tm, Cp), lambda i: (i, 0)),
        compiler_params=pltpu.CompilerParams(
            dimension_semantics=("parallel",),
            vmem_limit_bytes=budgets["vmem_limit"]),
        cost_estimate=pl.CostEstimate(
            flops=8 * m_pad * Cp, transcendentals=0,
            bytes_accessed=m_pad * Cp * 4 + 16 * nt * Cp * 4),
    )(y, psum, psq)


def conv_bn_pool_head_twopass(patches, w, wcls, n, s, budgets):
    M, K = patches.shape                                  # M == n * s
    Cp = w.shape[1]
    fixed = 2 * K * Cp * 2 + 4 * 8 * Cp * 4
    tm, m_pad = _pick_tm(M, K * 2 + Cp * 2, budgets["stream"], fixed)
    patches = _pad_rows(patches, m_pad)
    nt = m_pad // tm
    y, psum, psq = _conv_stats_call(patches, w, tm, m_pad, budgets)
    y_nsc = y[:n * s].reshape(n, s, Cp)
    ts = s
    if s % 8 == 0:
        cap_rows = max(8, budgets["stream"] // max(1, 2 * n * Cp * 2))
        for c in (1024, 512, 256, 128, 64, 32, 16, 8):
            if c <= cap_rows and s % c == 0:
                ts = c
                break
    kern = functools.partial(_bn_pool_head_kernel,
                             inv_m=1.0 / float(M), inv_s=1.0 / float(s))
    return pl.pallas_call(
        kern,
        out_shape=(jax.ShapeDtypeStruct((n, Cp), jnp.float32),
                   jax.ShapeDtypeStruct((n, 1), jnp.float32)),
        grid=(s // ts,),
        in_specs=[pl.BlockSpec((n, ts, Cp), lambda j: (0, j, 0)),
                  pl.BlockSpec((8 * nt, Cp), lambda j: (0, 0)),
                  pl.BlockSpec((8 * nt, Cp), lambda j: (0, 0)),
                  pl.BlockSpec((1, Cp), lambda j: (0, 0))],
        out_specs=(pl.BlockSpec((n, Cp), lambda j: (0, 0)),
                   pl.BlockSpec((n, 1), lambda j: (0, 0))),
        scratch_shapes=[pltpu.VMEM((n, Cp), jnp.float32)],
        compiler_params=pltpu.CompilerParams(
            dimension_semantics=("arbitrary",),
            vmem_limit_bytes=budgets["vmem_limit"]),
        cost_estimate=pl.CostEstimate(
            flops=10 * n * s * Cp, transcendentals=n,
            bytes_accessed=n * s * Cp * 2 + 16 * nt * Cp * 4 + n * Cp * 4 + n * 4),
    )(y_nsc, psum, psq, wcls)


# ------------------------------- JAX glue ---------------------------------- #

def im2col_nhwc(x):
    """(N, H, W, C) -> (N*Ho*Wo, 16*C) bf16 patches for conv 4x4, s2, p1."""
    # TODO(synk): build patches in-kernel (halo DMA from ANY-space NHWC ref).
    N, H, W, C = x.shape
    Ho, Wo = H // 2, W // 2
    xp = jnp.pad(x, ((0, 0), (1, 1), (1, 1), (0, 0)))
    taps = []
    for kh in range(4):
        for kw in range(4):
            taps.append(xp[:, kh:kh + 2 * Ho:2, kw:kw + 2 * Wo:2, :])
    p = jnp.stack(taps, axis=3)                      # (N, Ho, Wo, 16, C)
    return p.reshape(N * Ho * Wo, 16 * C).astype(jnp.bfloat16), (Ho, Wo)


def bilinear_downsample_nhwc(x, f):
    """Exact F.interpolate(scale_factor=1/f, mode='bilinear',
    align_corners=False) for even f when H, W divide evenly. Uses reshape +
    static center-tap slices (no integer-array gathers)."""
    N, H, W, C = x.shape
    assert H % f == 0 and W % f == 0, "spatial dims must divide the factor"
    c0 = f // 2 - 1
    xr = x.reshape(N, H // f, f, W // f, f, C)
    blk = xr[:, :, c0:c0 + 2, :, c0:c0 + 2, :]
    return blk.mean(axis=(2, 4))


def _scale_channels(scale_id, ndf, nc):
    if scale_id == 0:
        return [nc, ndf, ndf * 2, ndf * 4, ndf * 8]
    elif scale_id == 3:
        return [nc, ndf, ndf * 2]
    else:
        return [nc, ndf, ndf * 2, ndf * 4]


def init_params(key, nc, ndf_base, num_scales=4):
    """All convs bias-free (matches bias=False). Weights (16*Cin, Cout) with
    (kh, kw, cin) row order, Cout zero-padded to a multiple of 128, bf16.
    BN uses training-mode batch stats with default gamma=1 / beta=0."""
    params = []
    for s in range(num_scales):
        ndf = ndf_base * (2 ** s)                       # _adjust_conf_for_scale
        chans = _scale_channels(s, ndf, nc)
        convs = []
        for i in range(len(chans) - 1):
            key, k = jax.random.split(key)
            cin, cout = chans[i], chans[i + 1]
            cp = _round_up(cout, 128)
            w = 0.05 * jax.random.normal(k, (cin * 16, cout), jnp.float32)
            w_pad = jnp.zeros((cin * 16, cp), jnp.float32).at[:, :cout].set(w)
            convs.append({"w": w_pad.astype(jnp.bfloat16),
                          "cout": cout, "bn": i > 0})    # first conv: no BN
        key, k = jax.random.split(key)
        ccp = _round_up(chans[-1], 128)
        wc = 0.05 * jax.random.normal(k, (1, chans[-1]), jnp.float32)
        wc_pad = jnp.zeros((1, ccp), jnp.float32).at[:, :chans[-1]].set(wc)
        params.append({"convs": convs, "cls": wc_pad})
    return params


def single_scale_forward(x_nhwc, p, budgets):
    N = x_nhwc.shape[0]
    convs = p["convs"]
    h = x_nhwc
    feat = pred = None
    for li, c in enumerate(convs):
        patches, (Ho, Wo) = im2col_nhwc(h)
        M = patches.shape[0]
        w, cout = c["w"], c["cout"]
        K, Cp = w.shape
        last = li == len(convs) - 1
        if not c["bn"]:
            a = conv_lrelu(patches, w, budgets)
            h = a[:M, :cout].reshape(N, Ho, Wo, cout)
        elif last:
            S = Ho * Wo
            if _fits_fused(M, K, Cp, budgets):
                feat_p, pred_p = conv_bn_pool_head_fused(patches, w, p["cls"],
                                                         N, S, budgets)
            else:
                feat_p, pred_p = conv_bn_pool_head_twopass(patches, w, p["cls"],
                                                           N, S, budgets)
            feat = feat_p[:, :cout]
            pred = pred_p
        else:
            if _fits_fused(M, K, Cp, budgets):
                a = conv_bn_lrelu_fused(patches, w, M, budgets)
            else:
                a = conv_bn_lrelu_twopass(patches, w, M, budgets)
            h = a[:M, :cout].reshape(N, Ho, Wo, cout)
    # classifier.view(N,-1).mean(dim=1) on a (N,1,1,1) map == the sigmoid value
    return pred[:, 0], feat.reshape(N, -1, 1, 1)


def multi_scale_forward(x_nchw, params, budgets=_BUDGETS):
    x = jnp.transpose(x_nchw, (0, 2, 3, 1))             # NCHW -> NHWC once
    predictions, features = [], []
    for s, p in enumerate(params):
        xi = x if s == 0 else bilinear_downsample_nhwc(x, 2 ** s)
        pr, ft = single_scale_forward(xi, p, budgets)
        predictions.append(pr)
        features.append(ft)
    return predictions, features


# --------------------------------- main ------------------------------------ #

if __name__ == "__main__":
    key = jax.random.PRNGKey(0)
    kx, kp = jax.random.split(key)
    # 32x32 so that the 1/8-scale branch (4x4) survives two stride-2 convs.
    N, nc, H, W = 2, 4, 32, 32
    x = jax.random.normal(kx, (N, nc, H, W), jnp.float32)
    params = init_params(kp, nc=nc, ndf_base=8, num_scales=4)

    fwd = jax.jit(lambda xx: multi_scale_forward(xx, params))
    predictions, features = fwd(x)
    jax.block_until_ready(predictions)
    jax.block_until_ready(features)

    assert len(predictions) == 4 and len(features) == 4
    assert all(p.shape == (N,) for p in predictions)
    assert [f.shape[1] for f in features] == [64, 64, 128, 128]
    assert all(f.shape[2:] == (1, 1) for f in features)
    print("KERNEL_OK")
</pallas_src>

<mosaic_0001>
module attributes {stable_mosaic.version = 11 : i64} {
  func.func @_conv_lrelu_kernel(%arg0: i32, %arg1: memref<512x64xbf16, #tpu.memory_space<vmem>>, %arg2: memref<64x128xbf16, #tpu.memory_space<vmem>>, %arg3: memref<512x128xbf16, #tpu.memory_space<vmem>>) attributes {dimension_semantics = [#tpu.dimension_semantics<parallel>], iteration_bounds = array<i64: 1>, scalar_prefetch = 0 : i64, scratch_operands = 0 : i64, tpu.core_type = #tpu.core_type<tc>, window_params = [{transform_indices = @transform_0, window_bounds = array<i64: 512, 64>}, {pipeline_mode = #tpu.pipeline_mode<synchronous>, transform_indices = @transform_1, window_bounds = array<i64: 64, 128>}, {transform_indices = @transform_2, window_bounds = array<i64: 512, 128>}]} {
    %c0 = arith.constant 0 : index
    %c0_0 = arith.constant 0 : index
    %0 = vector.load %arg1[%c0, %c0_0] : memref<512x64xbf16, #tpu.memory_space<vmem>>, vector<512x64xbf16>
    %c0_1 = arith.constant 0 : index
    %c0_2 = arith.constant 0 : index
    %1 = vector.load %arg2[%c0_1, %c0_2] : memref<64x128xbf16, #tpu.memory_space<vmem>>, vector<64x128xbf16>
    %cst = arith.constant dense<0.000000e+00> : vector<512x128xf32>
    %2 = tpu.matmul %0, %1, %cst {dimension_numbers = #tpu.dot_dimension_numbers<[1], [0], [0], [1], [0, 0, 1, 1], [], []>} : vector<512x64xbf16>, vector<64x128xbf16>, vector<512x128xf32> -> vector<512x128xf32>
    %cst_3 = arith.constant 0.000000e+00 : f32
    %3 = vector.broadcast %cst_3 : f32 to vector<512x128xf32>
    %4 = arith.cmpf ogt, %2, %3 : vector<512x128xf32>
    %cst_4 = arith.constant 2.000000e-01 : f32
    %5 = vector.broadcast %cst_4 : f32 to vector<512x128xf32>
    %6 = arith.mulf %5, %2 : vector<512x128xf32>
    %7 = arith.select %4, %2, %6 : vector<512x128xi1>, vector<512x128xf32>
    %8 = arith.truncf %7 : vector<512x128xf32> to vector<512x128xbf16>
    %c0_5 = arith.constant 0 : index
    %c0_6 = arith.constant 0 : index
    %9 = vector.load %arg3[%c0_5, %c0_6] : memref<512x128xbf16, #tpu.memory_space<vmem>>, vector<512x128xbf16>
    tpu.vector_store %arg3[%c0_5, %c0_6], %8 {strides = array<i32>} : memref<512x128xbf16, #tpu.memory_space<vmem>>, vector<512x128xbf16>,
    return
  }
  func.func @transform_0(%arg0: i32) -> (i32, i32) {
    %c0_i32 = arith.constant 0 : i32
    %c0_i32_0 = arith.constant 0 : i32
    return %arg0, %c0_i32 : i32, i32
  }
  func.func @transform_1(%arg0: i32) -> (i32, i32) {
    %c0_i32 = arith.constant 0 : i32
    %c0_i32_0 = arith.constant 0 : i32
    %c0_i32_1 = arith.constant 0 : i32
    return %c0_i32, %c0_i32_0 : i32, i32
  }
  func.func @transform_2(%arg0: i32) -> (i32, i32) {
    %c0_i32 = arith.constant 0 : i32
    %c0_i32_0 = arith.constant 0 : i32
    return %arg0, %c0_i32 : i32, i32
  }
}

module attributes {stable_mosaic.version = 11 : i64} {
  func.func @_conv_bn_lrelu_fused_kernel(%arg0: i32, %arg1: memref<128x128xbf16, #tpu.memory_space<vmem>>, %arg2: memref<128x128xbf16, #tpu.memory_space<vmem>>, %arg3: memref<128x128xbf16, #tpu.memory_space<vmem>>, %arg4: memref<1x128xf32, #tpu.memory_space<vmem>>, %arg5: memref<1x128xf32, #tpu.memory_space<vmem>>) attributes {dimension_semantics = [#tpu.dimension_semantics<arbitrary>], iteration_bounds = array<i64: 1>, scalar_prefetch = 0 : i64, scratch_operands = 2 : i64, tpu.core_type = #tpu.core_type<tc>, window_params = [{transform_indices = @transform_0, window_bounds = array<i64: 128, 128>}, {pipeline_mode = #tpu.pipeline_mode<synchronous>, transform_indices = @transform_1, window_bounds = array<i64: 128, 128>}, {pipeline_mode = #tpu.pipeline_mode<synchronous>, transform_indices = @transform_2, window_bounds = array<i64: 128, 128>}]} {
    %c0_i32 = arith.constant 0 : i32
    %0 = arith.cmpi eq, %arg0, %c0_i32 : i32
    %1 = arith.extui %0 : i1 to i32
    %c0_i32_0 = arith.constant 0 : i32
    %2 = arith.cmpi ne, %1, %c0_i32_0 : i32
    scf.if %2 {
      %cst_17 = arith.constant 0.000000e+00 : f32
      %25 = vector.broadcast %cst_17 : f32 to vector<1x128xf32>
      %c0_18 = arith.constant 0 : index
      %c0_19 = arith.constant 0 : index
      %26 = vector.load %arg4[%c0_18, %c0_19] : memref<1x128xf32, #tpu.memory_space<vmem>>, vector<1x128xf32>
      tpu.vector_store %arg4[%c0_18, %c0_19], %25 {strides = array<i32>} : memref<1x128xf32, #tpu.memory_space<vmem>>, vector<1x128xf32>,
      %cst_20 = arith.constant 0.000000e+00 : f32
      %27 = vector.broadcast %cst_20 : f32 to vector<1x128xf32>
      %c0_21 = arith.constant 0 : index
      %c0_22 = arith.constant 0 : index
      %28 = vector.load %arg5[%c0_21, %c0_22] : memref<1x128xf32, #tpu.memory_space<vmem>>, vector<1x128xf32>
      tpu.vector_store %arg5[%c0_21, %c0_22], %27 {strides = array<i32>} : memref<1x128xf32, #tpu.memory_space<vmem>>, vector<1x128xf32>,
    } else {
    }
    %c0 = arith.constant 0 : index
    %c0_1 = arith.constant 0 : index
    %3 = vector.load %arg1[%c0, %c0_1] : memref<128x128xbf16, #tpu.memory_space<vmem>>, vector<128x128xbf16>
    %c0_2 = arith.constant 0 : index
    %c0_3 = arith.constant 0 : index
    %4 = vector.load %arg2[%c0_2, %c0_3] : memref<128x128xbf16, #tpu.memory_space<vmem>>, vector<128x128xbf16>
    %cst = arith.constant dense<0.000000e+00> : vector<128x128xf32>
    %5 = tpu.matmul %3, %4, %cst {dimension_numbers = #tpu.dot_dimension_numbers<[1], [0], [0], [1], [0, 0, 1, 1], [], []>} : vector<128x128xbf16>, vector<128x128xbf16>, vector<128x128xf32> -> vector<128x128xf32>
    %c0_4 = arith.constant 0 : index
    %c0_5 = arith.constant 0 : index
    %6 = vector.load %arg4[%c0_4, %c0_5] : memref<1x128xf32, #tpu.memory_space<vmem>>, vector<1x128xf32>
    %cst_6 = arith.constant dense<0.000000e+00> : vector<128xf32>
    %7 = vector.multi_reduction <add>, %5, %cst_6 [0] : vector<128x128xf32> to vector<128xf32>
    %8 = vector.shape_cast %7 : vector<128xf32> to vector<1x128xf32>
    %9 = arith.addf %6, %8 : vector<1x128xf32>
    %c0_7 = arith.constant 0 : index
    %c0_8 = arith.constant 0 : index
    %10 = vector.load %arg4[%c0_7, %c0_8] : memref<1x128xf32, #tpu.memory_space<vmem>>, vector<1x128xf32>
    tpu.vector_store %arg4[%c0_7, %c0_8], %9 {strides = array<i32>} : memref<1x128xf32, #tpu.memory_space<vmem>>, vector<1x128xf32>,
    %c0_9 = arith.constant 0 : index
    %c0_10 = arith.constant 0 : index
    %11 = vector.load %arg5[%c0_9, %c0_10] : memref<1x128xf32, #tpu.memory_space<vmem>>, vector<1x128xf32>
    %12 = arith.mulf %5, %5 : vector<128x128xf32>
    %cst_11 = arith.constant dense<0.000000e+00> : vector<128xf32>
    %13 = vector.multi_reduction <add>, %12, %cst_11 [0] : vector<128x128xf32> to vector<128xf32>
    %14 = vector.shape_cast %13 : vector<128xf32> to vector<1x128xf32>
    %15 = arith.addf %11, %14 : vector<1x128xf32>
    %c0_12 = arith.constant 0 : index
    %c0_13 = arith.constant 0 : index
    %16 = vector.load %arg5[%c0_12, %c0_13] : memref<1x128xf32, #tpu.memory_space<vmem>>, vector<1x128xf32>
    tpu.vector_store %arg5[%c0_12, %c0_13], %15 {strides = array<i32>} : memref<1x128xf32, #tpu.memory_space<vmem>>, vector<1x128xf32>,
    %c128_i32 = arith.constant 128 : i32
    %17 = arith.muli %arg0, %c128_i32 : i32
    %18 = tpu.assume_multiple %17, 128 : i32
    %19 = arith.truncf %5 : vector<128x128xf32> to vector<128x128xbf16>
    %20 = arith.index_cast %18 : i32 to index
    %c0_14 = arith.constant 0 : index
    %21 = vector.load %arg3[%20, %c0_14] : memref<128x128xbf16, #tpu.memory_space<vmem>>, vector<128x128xbf16>
    tpu.vector_store %arg3[%20, %c0_14], %19 {strides = array<i32>} : memref<128x128xbf16, #tpu.memory_space<vmem>>, vector<128x128xbf16>,
    %c0_i32_15 = arith.constant 0 : i32
    %22 = arith.cmpi eq, %arg0, %c0_i32_15 : i32
    %23 = arith.extui %22 : i1 to i32
    %c0_i32_16 = arith.constant 0 : i32
    %24 = arith.cmpi ne, %23, %c0_i32_16 : i32
    scf.if %24 {
      %c0_17 = arith.constant 0 : index
      %c0_18 = arith.constant 0 : index
      %25 = vector.load %arg4[%c0_17, %c0_18] : memref<1x128xf32, #tpu.memory_space<vmem>>, vector<1x128xf32>
      %cst_19 = arith.constant 7.812500e-03 : f32
      %26 = vector.broadcast %cst_19 : f32 to vector<1x128xf32>
      %27 = arith.mulf %25, %26 : vector<1x128xf32>
      %c0_20 = arith.constant 0 : index
      %c0_21 = arith.constant 0 : index
      %28 = vector.load %arg5[%c0_20, %c0_21] : memref<1x128xf32, #tpu.memory_space<vmem>>, vector<1x128xf32>
      %cst_22 = arith.constant 7.812500e-03 : f32
      %29 = vector.broadcast %cst_22 : f32 to vector<1x128xf32>
      %30 = arith.mulf %28, %29 : vector<1x128xf32>
      %31 = arith.mulf %27, %27 : vector<1x128xf32>
      %32 = arith.subf %30, %31 : vector<1x128xf32>
      %cst_23 = arith.constant 0.000000e+00 : f32
      %33 = vector.broadcast %cst_23 : f32 to vector<1x128xf32>
      %34 = arith.maximumf %32, %33 : vector<1x128xf32>
      %cst_24 = arith.constant 9.99999974E-6 : f32
      %35 = vector.broadcast %cst_24 : f32 to vector<1x128xf32>
      %36 = arith.addf %34, %35 : vector<1x128xf32>
      %37 = math.rsqrt %36 : vector<1x128xf32>
      %c0_25 = arith.constant 0 : index
      %c0_26 = arith.constant 0 : index
      %38 = vector.load %arg3[%c0_25, %c0_26] : memref<128x128xbf16, #tpu.memory_space<vmem>>, vector<128x128xbf16>
      %39 = arith.extf %38 : vector<128x128xbf16> to vector<128x128xf32>
      %40 = vector.broadcast %27 : vector<1x128xf32> to vector<128x128xf32>
      %41 = arith.subf %39, %40 : vector<128x128xf32>
      %42 = vector.broadcast %37 : vector<1x128xf32> to vector<128x128xf32>
      %43 = arith.mulf %41, %42 : vector<128x128xf32>
      %cst_27 = arith.constant 0.000000e+00 : f32
      %44 = vector.broadcast %cst_27 : f32 to vector<128x128xf32>
      %45 = arith.cmpf ogt, %43, %44 : vector<128x128xf32>
      %cst_28 = arith.constant 2.000000e-01 : f32
      %46 = vector.broadcast %cst_28 : f32 to vector<128x128xf32>
      %47 = arith.mulf %46, %43 : vector<128x128xf32>
      %48 = arith.select %45, %43, %47 : vector<128x128xi1>, vector<128x128xf32>
      %49 = arith.truncf %48 : vector<128x128xf32> to vector<128x128xbf16>
      %c0_29 = arith.constant 0 : index
      %c0_30 = arith.constant 0 : index
      %50 = vector.load %arg3[%c0_29, %c0_30] : memref<128x128xbf16, #tpu.memory_space<vmem>>, vector<128x128xbf16>
      tpu.vector_store %arg3[%c0_29, %c0_30], %49 {strides = array<i32>} : memref<128x128xbf16, #tpu.memory_space<vmem>>, vector<128x128xbf16>,
    } else {
    }
    return
  }
  func.func @transform_0(%arg0: i32) -> (i32, i32) {
    %c0_i32 = arith.constant 0 : i32
    %c0_i32_0 = arith.constant 0 : i32
    return %arg0, %c0_i32 : i32, i32
  }
  func.func @transform_1(%arg0: i32) -> (i32, i32) {
    %c0_i32 = arith.constant 0 : i32
    %c0_i32_0 = arith.constant 0 : i32
    %c0_i32_1 = arith.constant 0 : i32
    return %c0_i32, %c0_i32_0 : i32, i32
  }
  func.func @transform_2(%arg0: i32) -> (i32, i32) {
    %c0_i32 = arith.constant 0 : i32
    %c0_i32_0 = arith.constant 0 : i32
    %c0_i32_1 = arith.constant 0 : i32
    return %c0_i32, %c0_i32_0 : i32, i32
  }
}

module attributes {stable_mosaic.version = 11 : i64} {
  func.func @_conv_bn_lrelu_fused_kernel(%arg0: i32, %arg1: memref<32x256xbf16, #tpu.memory_space<vmem>>, %arg2: memref<256x128xbf16, #tpu.memory_space<vmem>>, %arg3: memref<32x128xbf16, #tpu.memory_space<vmem>>, %arg4: memref<1x128xf32, #tpu.memory_space<vmem>>, %arg5: memref<1x128xf32, #tpu.memory_space<vmem>>) attributes {dimension_semantics = [#tpu.dimension_semantics<arbitrary>], iteration_bounds = array<i64: 1>, scalar_prefetch = 0 : i64, scratch_operands = 2 : i64, tpu.core_type = #tpu.core_type<tc>, window_params = [{transform_indices = @transform_0, window_bounds = array<i64: 32, 256>}, {pipeline_mode = #tpu.pipeline_mode<synchronous>, transform_indices = @transform_1, window_bounds = array<i64: 256, 128>}, {pipeline_mode = #tpu.pipeline_mode<synchronous>, transform_indices = @transform_2, window_bounds = array<i64: 32, 128>}]} {
    %c0_i32 = arith.constant 0 : i32
    %0 = arith.cmpi eq, %arg0, %c0_i32 : i32
    %1 = arith.extui %0 : i1 to i32
    %c0_i32_0 = arith.constant 0 : i32
    %2 = arith.cmpi ne, %1, %c0_i32_0 : i32
    scf.if %2 {
      %cst_17 = arith.constant 0.000000e+00 : f32
      %25 = vector.broadcast %cst_17 : f32 to vector<1x128xf32>
      %c0_18 = arith.constant 0 : index
      %c0_19 = arith.constant 0 : index
      %26 = vector.load %arg4[%c0_18, %c0_19] : memref<1x128xf32, #tpu.memory_space<vmem>>, vector<1x128xf32>
      tpu.vector_store %arg4[%c0_18, %c0_19], %25 {strides = array<i32>} : memref<1x128xf32, #tpu.memory_space<vmem>>, vector<1x128xf32>,
      %cst_20 = arith.constant 0.000000e+00 : f32
      %27 = vector.broadcast %cst_20 : f32 to vector<1x128xf32>
      %c0_21 = arith.constant 0 : index
      %c0_22 = arith.constant 0 : index
      %28 = vector.load %arg5[%c0_21, %c0_22] : memref<1x128xf32, #tpu.memory_space<vmem>>, vector<1x128xf32>
      tpu.vector_store %arg5[%c0_21, %c0_22], %27 {strides = array<i32>} : memref<1x128xf32, #tpu.memory_space<vmem>>, vector<1x128xf32>,
    } else {
    }
    %c0 = arith.constant 0 : index
    %c0_1 = arith.constant 0 : index
    %3 = vector.load %arg1[%c0, %c0_1] : memref<32x256xbf16, #tpu.memory_space<vmem>>, vector<32x256xbf16>
    %c0_2 = arith.constant 0 : index
    %c0_3 = arith.constant 0 : index
    %4 = vector.load %arg2[%c0_2, %c0_3] : memref<256x128xbf16, #tpu.memory_space<vmem>>, vector<256x128xbf16>
    %cst = arith.constant dense<0.000000e+00> : vector<32x128xf32>
    %5 = tpu.matmul %3, %4, %cst {dimension_numbers = #tpu.dot_dimension_numbers<[1], [0], [0], [1], [0, 0, 1, 1], [], []>} : vector<32x256xbf16>, vector<256x128xbf16>, vector<32x128xf32> -> vector<32x128xf32>
    %c0_4 = arith.constant 0 : index
    %c0_5 = arith.constant 0 : index
    %6 = vector.load %arg4[%c0_4, %c0_5] : memref<1x128xf32, #tpu.memory_space<vmem>>, vector<1x128xf32>
    %cst_6 = arith.constant dense<0.000000e+00> : vector<128xf32>
    %7 = vector.multi_reduction <add>, %5, %cst_6 [0] : vector<32x128xf32> to vector<128xf32>
    %8 = vector.shape_cast %7 : vector<128xf32> to vector<1x128xf32>
    %9 = arith.addf %6, %8 : vector<1x128xf32>
    %c0_7 = arith.constant 0 : index
    %c0_8 = arith.constant 0 : index
    %10 = vector.load %arg4[%c0_7, %c0_8] : memref<1x128xf32, #tpu.memory_space<vmem>>, vector<1x128xf32>
    tpu.vector_store %arg4[%c0_7, %c0_8], %9 {strides = array<i32>} : memref<1x128xf32, #tpu.memory_space<vmem>>, vector<1x128xf32>,
    %c0_9 = arith.constant 0 : index
    %c0_10 = arith.constant 0 : index
    %11 = vector.load %arg5[%c0_9, %c0_10] : memref<1x128xf32, #tpu.memory_space<vmem>>, vector<1x128xf32>
    %12 = arith.mulf %5, %5 : vector<32x128xf32>
    %cst_11 = arith.constant dense<0.000000e+00> : vector<128xf32>
    %13 = vector.multi_reduction <add>, %12, %cst_11 [0] : vector<32x128xf32> to vector<128xf32>
    %14 = vector.shape_cast %13 : vector<128xf32> to vector<1x128xf32>
    %15 = arith.addf %11, %14 : vector<1x128xf32>
    %c0_12 = arith.constant 0 : index
    %c0_13 = arith.constant 0 : index
    %16 = vector.load %arg5[%c0_12, %c0_13] : memref<1x128xf32, #tpu.memory_space<vmem>>, vector<1x128xf32>
    tpu.vector_store %arg5[%c0_12, %c0_13], %15 {strides = array<i32>} : memref<1x128xf32, #tpu.memory_space<vmem>>, vector<1x128xf32>,
    %c32_i32 = arith.constant 32 : i32
    %17 = arith.muli %arg0, %c32_i32 : i32
    %18 = tpu.assume_multiple %17, 32 : i32
    %19 = arith.truncf %5 : vector<32x128xf32> to vector<32x128xbf16>
    %20 = arith.index_cast %18 : i32 to index
    %c0_14 = arith.constant 0 : index
    %21 = vector.load %arg3[%20, %c0_14] : memref<32x128xbf16, #tpu.memory_space<vmem>>, vector<32x128xbf16>
    tpu.vector_store %arg3[%20, %c0_14], %19 {strides = array<i32>} : memref<32x128xbf16, #tpu.memory_space<vmem>>, vector<32x128xbf16>,
    %c0_i32_15 = arith.constant 0 : i32
    %22 = arith.cmpi eq, %arg0, %c0_i32_15 : i32
    %23 = arith.extui %22 : i1 to i32
    %c0_i32_16 = arith.constant 0 : i32
    %24 = arith.cmpi ne, %23, %c0_i32_16 : i32
    scf.if %24 {
      %c0_17 = arith.constant 0 : index
      %c0_18 = arith.constant 0 : index
      %25 = vector.load %arg4[%c0_17, %c0_18] : memref<1x128xf32, #tpu.memory_space<vmem>>, vector<1x128xf32>
      %cst_19 = arith.constant 3.125000e-02 : f32
      %26 = vector.broadcast %cst_19 : f32 to vector<1x128xf32>
      %27 = arith.mulf %25, %26 : vector<1x128xf32>
      %c0_20 = arith.constant 0 : index
      %c0_21 = arith.constant 0 : index
      %28 = vector.load %arg5[%c0_20, %c0_21] : memref<1x128xf32, #tpu.memory_space<vmem>>, vector<1x128xf32>
      %cst_22 = arith.constant 3.125000e-02 : f32
      %29 = vector.broadcast %cst_22 : f32 to vector<1x128xf32>
      %30 = arith.mulf %28, %29 : vector<1x128xf32>
      %31 = arith.mulf %27, %27 : vector<1x128xf32>
      %32 = arith.subf %30, %31 : vector<1x128xf32>
      %cst_23 = arith.constant 0.000000e+00 : f32
      %33 = vector.broadcast %cst_23 : f32 to vector<1x128xf32>
      %34 = arith.maximumf %32, %33 : vector<1x128xf32>
      %cst_24 = arith.constant 9.99999974E-6 : f32
      %35 = vector.broadcast %cst_24 : f32 to vector<1x128xf32>
      %36 = arith.addf %34, %35 : vector<1x128xf32>
      %37 = math.rsqrt %36 : vector<1x128xf32>
      %c0_25 = arith.constant 0 : index
      %c0_26 = arith.constant 0 : index
      %38 = vector.load %arg3[%c0_25, %c0_26] : memref<32x128xbf16, #tpu.memory_space<vmem>>, vector<32x128xbf16>
      %39 = arith.extf %38 : vector<32x128xbf16> to vector<32x128xf32>
      %40 = vector.broadcast %27 : vector<1x128xf32> to vector<32x128xf32>
      %41 = arith.subf %39, %40 : vector<32x128xf32>
      %42 = vector.broadcast %37 : vector<1x128xf32> to vector<32x128xf32>
      %43 = arith.mulf %41, %42 : vector<32x128xf32>
      %cst_27 = arith.constant 0.000000e+00 : f32
      %44 = vector.broadcast %cst_27 : f32 to vector<32x128xf32>
      %45 = arith.cmpf ogt, %43, %44 : vector<32x128xf32>
      %cst_28 = arith.constant 2.000000e-01 : f32
      %46 = vector.broadcast %cst_28 : f32 to vector<32x128xf32>
      %47 = arith.mulf %46, %43 : vector<32x128xf32>
      %48 = arith.select %45, %43, %47 : vector<32x128xi1>, vector<32x128xf32>
      %49 = arith.truncf %48 : vector<32x128xf32> to vector<32x128xbf16>
      %c0_29 = arith.constant 0 : index
      %c0_30 = arith.constant 0 : index
      %50 = vector.load %arg3[%c0_29, %c0_30] : memref<32x128xbf16, #tpu.memory_space<vmem>>, vector<32x128xbf16>
      tpu.vector_store %arg3[%c0_29, %c0_30], %49 {strides = array<i32>} : memref<32x128xbf16, #tpu.memory_space<vmem>>, vector<32x128xbf16>,
    } else {
    }
    return
  }
  func.func @transform_0(%arg0: i32) -> (i32, i32) {
    %c0_i32 = arith.constant 0 : i32
    %c0_i32_0 = arith.constant 0 : i32
    return %arg0, %c0_i32 : i32, i32
  }
  func.func @transform_1(%arg0: i32) -> (i32, i32) {
    %c0_i32 = arith.constant 0 : i32
    %c0_i32_0 = arith.constant 0 : i32
    %c0_i32_1 = arith.constant 0 : i32
    return %c0_i32, %c0_i32_0 : i32, i32
  }
  func.func @transform_2(%arg0: i32) -> (i32, i32) {
    %c0_i32 = arith.constant 0 : i32
    %c0_i32_0 = arith.constant 0 : i32
    %c0_i32_1 = arith.constant 0 : i32
    return %c0_i32, %c0_i32_0 : i32, i32
  }
}

module attributes {stable_mosaic.version = 11 : i64} {
  func.func @_conv_bn_pool_head_fused_kernel(%arg0: i32, %arg1: memref<8x512xbf16, #tpu.memory_space<vmem>>, %arg2: memref<512x128xbf16, #tpu.memory_space<vmem>>, %arg3: memref<1x128xf32, #tpu.memory_space<vmem>>, %arg4: memref<2x128xf32, #tpu.memory_space<vmem>>, %arg5: memref<2x1xf32, #tpu.memory_space<vmem>>, %arg6: memref<8x128xbf16, #tpu.memory_space<vmem>>, %arg7: memref<1x128xf32, #tpu.memory_space<vmem>>, %arg8: memref<1x128xf32, #tpu.memory_space<vmem>>) attributes {dimension_semantics = [#tpu.dimension_semantics<arbitrary>], iteration_bounds = array<i64: 1>, scalar_prefetch = 0 : i64, scratch_operands = 3 : i64, tpu.core_type = #tpu.core_type<tc>, window_params = [{transform_indices = @transform_0, window_bounds = array<i64: 8, 512>}, {pipeline_mode = #tpu.pipeline_mode<synchronous>, transform_indices = @transform_1, window_bounds = array<i64: 512, 128>}, {pipeline_mode = #tpu.pipeline_mode<synchronous>, transform_indices = @transform_2, window_bounds = array<i64: 1, 128>}, {pipeline_mode = #tpu.pipeline_mode<synchronous>, transform_indices = @transform_3, window_bounds = array<i64: 2, 128>}, {pipeline_mode = #tpu.pipeline_mode<synchronous>, transform_indices = @transform_4, window_bounds = array<i64: 2, 1>}]} {
    %c0_i32 = arith.constant 0 : i32
    %0 = arith.cmpi eq, %arg0, %c0_i32 : i32
    %1 = arith.extui %0 : i1 to i32
    %c0_i32_0 = arith.constant 0 : i32
    %2 = arith.cmpi ne, %1, %c0_i32_0 : i32
    scf.if %2 {
      %cst_17 = arith.constant 0.000000e+00 : f32
      %25 = vector.broadcast %cst_17 : f32 to vector<1x128xf32>
      %c0_18 = arith.constant 0 : index
      %c0_19 = arith.constant 0 : index
      %26 = vector.load %arg7[%c0_18, %c0_19] : memref<1x128xf32, #tpu.memory_space<vmem>>, vector<1x128xf32>
      tpu.vector_store %arg7[%c0_18, %c0_19], %25 {strides = array<i32>} : memref<1x128xf32, #tpu.memory_space<vmem>>, vector<1x128xf32>,
      %cst_20 = arith.constant 0.000000e+00 : f32
      %27 = vector.broadcast %cst_20 : f32 to vector<1x128xf32>
      %c0_21 = arith.constant 0 : index
      %c0_22 = arith.constant 0 : index
      %28 = vector.load %arg8[%c0_21, %c0_22] : memref<1x128xf32, #tpu.memory_space<vmem>>, vector<1x128xf32>
      tpu.vector_store %arg8[%c0_21, %c0_22], %27 {strides = array<i32>} : memref<1x128xf32, #tpu.memory_space<vmem>>, vector<1x128xf32>,
    } else {
    }
    %c0 = arith.constant 0 : index
    %c0_1 = arith.constant 0 : index
    %3 = vector.load %arg1[%c0, %c0_1] : memref<8x512xbf16, #tpu.memory_space<vmem>>, vector<8x512xbf16>
    %c0_2 = arith.constant 0 : index
    %c0_3 = arith.constant 0 : index
    %4 = vector.load %arg2[%c0_2, %c0_3] : memref<512x128xbf16, #tpu.memory_space<vmem>>, vector<512x128xbf16>
    %cst = arith.constant dense<0.000000e+00> : vector<8x128xf32>
    %5 = tpu.matmul %3, %4, %cst {dimension_numbers = #tpu.dot_dimension_numbers<[1], [0], [0], [1], [0, 0, 1, 1], [], []>} : vector<8x512xbf16>, vector<512x128xbf16>, vector<8x128xf32> -> vector<8x128xf32>
    %c0_4 = arith.constant 0 : index
    %c0_5 = arith.constant 0 : index
    %6 = vector.load %arg7[%c0_4, %c0_5] : memref<1x128xf32, #tpu.memory_space<vmem>>, vector<1x128xf32>
    %cst_6 = arith.constant dense<0.000000e+00> : vector<128xf32>
    %7 = vector.multi_reduction <add>, %5, %cst_6 [0] : vector<8x128xf32> to vector<128xf32>
    %8 = vector.shape_cast %7 : vector<128xf32> to vector<1x128xf32>
    %9 = arith.addf %6, %8 : vector<1x128xf32>
    %c0_7 = arith.constant 0 : index
    %c0_8 = arith.constant 0 : index
    %10 = vector.load %arg7[%c0_7, %c0_8] : memref<1x128xf32, #tpu.memory_space<vmem>>, vector<1x128xf32>
    tpu.vector_store %arg7[%c0_7, %c0_8], %9 {strides = array<i32>} : memref<1x128xf32, #tpu.memory_space<vmem>>, vector<1x128xf32>,
    %c0_9 = arith.constant 0 : index
    %c0_10 = arith.constant 0 : index
    %11 = vector.load %arg8[%c0_9, %c0_10] : memref<1x128xf32, #tpu.memory_space<vmem>>, vector<1x128xf32>
    %12 = arith.mulf %5, %5 : vector<8x128xf32>
    %cst_11 = arith.constant dense<0.000000e+00> : vector<128xf32>
    %13 = vector.multi_reduction <add>, %12, %cst_11 [0] : vector<8x128xf32> to vector<128xf32>
    %14 = vector.shape_cast %13 : vector<128xf32> to vector<1x128xf32>
    %15 = arith.addf %11, %14 : vector<1x128xf32>
    %c0_12 = arith.constant 0 : index
    %c0_13 = arith.constant 0 : index
    %16 = vector.load %arg8[%c0_12, %c0_13] : memref<1x128xf32, #tpu.memory_space<vmem>>, vector<1x128xf32>
    tpu.vector_store %arg8[%c0_12, %c0_13], %15 {strides = array<i32>} : memref<1x128xf32, #tpu.memory_space<vmem>>, vector<1x128xf32>,
    %c8_i32 = arith.constant 8 : i32
    %17 = arith.muli %arg0, %c8_i32 : i32
    %18 = tpu.assume_multiple %17, 8 : i32
    %19 = arith.truncf %5 : vector<8x128xf32> to vector<8x128xbf16>
    %20 = arith.index_cast %18 : i32 to index
    %c0_14 = arith.constant 0 : index
    %21 = vector.load %arg6[%20, %c0_14] : memref<8x128xbf16, #tpu.memory_space<vmem>>, vector<8x128xbf16>
    tpu.vector_store %arg6[%20, %c0_14], %19 {strides = array<i32>} : memref<8x128xbf16, #tpu.memory_space<vmem>>, vector<8x128xbf16>,
    %c0_i32_15 = arith.constant 0 : i32
    %22 = arith.cmpi eq, %arg0, %c0_i32_15 : i32
    %23 = arith.extui %22 : i1 to i32
    %c0_i32_16 = arith.constant 0 : i32
    %24 = arith.cmpi ne, %23, %c0_i32_16 : i32
    scf.if %24 {
      %c0_17 = arith.constant 0 : index
      %c0_18 = arith.constant 0 : index
      %25 = vector.load %arg7[%c0_17, %c0_18] : memref<1x128xf32, #tpu.memory_space<vmem>>, vector<1x128xf32>
      %cst_19 = arith.constant 1.250000e-01 : f32
      %26 = vector.broadcast %cst_19 : f32 to vector<1x128xf32>
      %27 = arith.mulf %25, %26 : vector<1x128xf32>
      %c0_20 = arith.constant 0 : index
      %c0_21 = arith.constant 0 : index
      %28 = vector.load %arg8[%c0_20, %c0_21] : memref<1x128xf32, #tpu.memory_space<vmem>>, vector<1x128xf32>
      %cst_22 = arith.constant 1.250000e-01 : f32
      %29 = vector.broadcast %cst_22 : f32 to vector<1x128xf32>
      %30 = arith.mulf %28, %29 : vector<1x128xf32>
      %31 = arith.mulf %27, %27 : vector<1x128xf32>
      %32 = arith.subf %30, %31 : vector<1x128xf32>
      %cst_23 = arith.constant 0.000000e+00 : f32
      %33 = vector.broadcast %cst_23 : f32 to vector<1x128xf32>
      %34 = arith.maximumf %32, %33 : vector<1x128xf32>
      %cst_24 = arith.constant 9.99999974E-6 : f32
      %35 = vector.broadcast %cst_24 : f32 to vector<1x128xf32>
      %36 = arith.addf %34, %35 : vector<1x128xf32>
      %37 = math.rsqrt %36 : vector<1x128xf32>
      %c0_25 = arith.constant 0 : index
      %c0_26 = arith.constant 0 : index
      %38 = vector.load %arg6[%c0_25, %c0_26] : memref<8x128xbf16, #tpu.memory_space<vmem>>, vector<8x128xbf16>
      %39 = arith.extf %38 : vector<8x128xbf16> to vector<8x128xf32>
      %40 = vector.broadcast %27 : vector<1x128xf32> to vector<8x128xf32>
      %41 = arith.subf %39, %40 : vector<8x128xf32>
      %42 = vector.broadcast %37 : vector<1x128xf32> to vector<8x128xf32>
      %43 = arith.mulf %41, %42 : vector<8x128xf32>
      %cst_27 = arith.constant 0.000000e+00 : f32
      %44 = vector.broadcast %cst_27 : f32 to vector<8x128xf32>
      %45 = arith.cmpf ogt, %43, %44 : vector<8x128xf32>
      %cst_28 = arith.constant 2.000000e-01 : f32
      %46 = vector.broadcast %cst_28 : f32 to vector<8x128xf32>
      %47 = arith.mulf %46, %43 : vector<8x128xf32>
      %48 = arith.select %45, %43, %47 : vector<8x128xi1>, vector<8x128xf32>
      %49 = vector.extract_strided_slice %48 {offsets = [0, 0], sizes = [4, 128], strides = [1, 1]} : vector<8x128xf32> to vector<4x128xf32>
      %cst_29 = arith.constant dense<0.000000e+00> : vector<128xf32>
      %50 = vector.multi_reduction <add>, %49, %cst_29 [0] : vector<4x128xf32> to vector<128xf32>
      %51 = vector.shape_cast %50 : vector<128xf32> to vector<1x128xf32>
      %52 = vector.extract_strided_slice %48 {offsets = [4, 0], sizes = [4, 128], strides = [1, 1]} : vector<8x128xf32> to vector<4x128xf32>
      %cst_30 = arith.constant dense<0.000000e+00> : vector<128xf32>
      %53 = vector.multi_reduction <add>, %52, %cst_30 [0] : vector<4x128xf32> to vector<128xf32>
      %54 = vector.shape_cast %53 : vector<128xf32> to vector<1x128xf32>
      %55 = tpu.concatenate %51, %54 in 0 : vector<1x128xf32>, vector<1x128xf32> -> vector<2x128xf32>
      %cst_31 = arith.constant 2.500000e-01 : f32
      %56 = vector.broadcast %cst_31 : f32 to vector<2x128xf32>
      %57 = arith.mulf %55, %56 : vector<2x128xf32>
      %c0_32 = arith.constant 0 : index
      %c0_33 = arith.constant 0 : index
      %58 = vector.load %arg4[%c0_32, %c0_33] : memref<2x128xf32, #tpu.memory_space<vmem>>, vector<2x128xf32>
      tpu.vector_store %arg4[%c0_32, %c0_33], %57 {strides = array<i32>} : memref<2x128xf32, #tpu.memory_space<vmem>>, vector<2x128xf32>,
      %c0_34 = arith.constant 0 : index
      %c0_35 = arith.constant 0 : index
      %59 = vector.load %arg3[%c0_34, %c0_35] : memref<1x128xf32, #tpu.memory_space<vmem>>, vector<1x128xf32>
      %60 = vector.broadcast %59 : vector<1x128xf32> to vector<2x128xf32>
      %61 = arith.mulf %57, %60 : vector<2x128xf32>
      %cst_36 = arith.constant dense<0.000000e+00> : vector<2xf32>
      %62 = vector.multi_reduction <add>, %61, %cst_36 [1] : vector<2x128xf32> to vector<2xf32>
      %63 = vector.shape_cast %62 : vector<2xf32> to vector<2x1xf32>
      %cst_37 = arith.constant 0.000000e+00 : f32
      %64 = vector.broadcast %cst_37 : f32 to vector<2x1xf32>
      %65 = arith.subf %64, %63 : vector<2x1xf32>
      %66 = math.exp %65 : vector<2x1xf32>
      %cst_38 = arith.constant 1.000000e+00 : f32
      %67 = vector.broadcast %cst_38 : f32 to vector<2x1xf32>
      %68 = arith.addf %67, %66 : vector<2x1xf32>
      %cst_39 = arith.constant 1.000000e+00 : f32
      %69 = vector.broadcast %cst_39 : f32 to vector<2x1xf32>
      %70 = arith.divf %69, %68 : vector<2x1xf32>
      %c0_40 = arith.constant 0 : index
      %c0_41 = arith.constant 0 : index
      %71 = vector.load %arg5[%c0_40, %c0_41] : memref<2x1xf32, #tpu.memory_space<vmem>>, vector<2x1xf32>
      tpu.vector_store %arg5[%c0_40, %c0_41], %70 {strides = array<i32>} : memref<2x1xf32, #tpu.memory_space<vmem>>, vector<2x1xf32>,
    } else {
    }
    return
  }
  func.func @transform_0(%arg0: i32) -> (i32, i32) {
    %c0_i32 = arith.constant 0 : i32
    %c0_i32_0 = arith.constant 0 : i32
    return %arg0, %c0_i32 : i32, i32
  }
  func.func @transform_1(%arg0: i32) -> (i32, i32) {
    %c0_i32 = arith.constant 0 : i32
    %c0_i32_0 = arith.constant 0 : i32
    %c0_i32_1 = arith.constant 0 : i32
    return %c0_i32, %c0_i32_0 : i32, i32
  }
  func.func @transform_2(%arg0: i32) -> (i32, i32) {
    %c0_i32 = arith.constant 0 : i32
    %c0_i32_0 = arith.constant 0 : i32
    %c0_i32_1 = arith.constant 0 : i32
    return %c0_i32, %c0_i32_0 : i32, i32
  }
  func.func @transform_3(%arg0: i32) -> (i32, i32) {
    %c0_i32 = arith.constant 0 : i32
    %c0_i32_0 = arith.constant 0 : i32
    %c0_i32_1 = arith.constant 0 : i32
    return %c0_i32, %c0_i32_0 : i32, i32
  }
  func.func @transform_4(%arg0: i32) -> (i32, i32) {
    %c0_i32 = arith.constant 0 : i32
    %c0_i32_0 = arith.constant 0 : i32
    %c0_i32_1 = arith.constant 0 : i32
    return %c0_i32, %c0_i32_0 : i32, i32
  }
}

module attributes {stable_mosaic.version = 11 : i64} {
  func.func @_conv_lrelu_kernel(%arg0: i32, %arg1: memref<128x64xbf16, #tpu.memory_space<vmem>>, %arg2: memref<64x128xbf16, #tpu.memory_space<vmem>>, %arg3: memref<128x128xbf16, #tpu.memory_space<vmem>>) attributes {dimension_semantics = [#tpu.dimension_semantics<parallel>], iteration_bounds = array<i64: 1>, scalar_prefetch = 0 : i64, scratch_operands = 0 : i64, tpu.core_type = #tpu.core_type<tc>, window_params = [{transform_indices = @transform_0, window_bounds = array<i64: 128, 64>}, {pipeline_mode = #tpu.pipeline_mode<synchronous>, transform_indices = @transform_1, window_bounds = array<i64: 64, 128>}, {transform_indices = @transform_2, window_bounds = array<i64: 128, 128>}]} {
    %c0 = arith.constant 0 : index
    %c0_0 = arith.constant 0 : index
    %0 = vector.load %arg1[%c0, %c0_0] : memref<128x64xbf16, #tpu.memory_space<vmem>>, vector<128x64xbf16>
    %c0_1 = arith.constant 0 : index
    %c0_2 = arith.constant 0 : index
    %1 = vector.load %arg2[%c0_1, %c0_2] : memref<64x128xbf16, #tpu.memory_space<vmem>>, vector<64x128xbf16>
    %cst = arith.constant dense<0.000000e+00> : vector<128x128xf32>
    %2 = tpu.matmul %0, %1, %cst {dimension_numbers = #tpu.dot_dimension_numbers<[1], [0], [0], [1], [0, 0, 1, 1], [], []>} : vector<128x64xbf16>, vector<64x128xbf16>, vector<128x128xf32> -> vector<128x128xf32>
    %cst_3 = arith.constant 0.000000e+00 : f32
    %3 = vector.broadcast %cst_3 : f32 to vector<128x128xf32>
    %4 = arith.cmpf ogt, %2, %3 : vector<128x128xf32>
    %cst_4 = arith.constant 2.000000e-01 : f32
    %5 = vector.broadcast %cst_4 : f32 to vector<128x128xf32>
    %6 = arith.mulf %5, %2 : vector<128x128xf32>
    %7 = arith.select %4, %2, %6 : vector<128x128xi1>, vector<128x128xf32>
    %8 = arith.truncf %7 : vector<128x128xf32> to vector<128x128xbf16>
    %c0_5 = arith.constant 0 : index
    %c0_6 = arith.constant 0 : index
    %9 = vector.load %arg3[%c0_5, %c0_6] : memref<128x128xbf16, #tpu.memory_space<vmem>>, vector<128x128xbf16>
    tpu.vector_store %arg3[%c0_5, %c0_6], %8 {strides = array<i32>} : memref<128x128xbf16, #tpu.memory_space<vmem>>, vector<128x128xbf16>,
    return
  }
  func.func @transform_0(%arg0: i32) -> (i32, i32) {
    %c0_i32 = arith.constant 0 : i32
    %c0_i32_0 = arith.constant 0 : i32
    return %arg0, %c0_i32 : i32, i32
  }
  func.func @transform_1(%arg0: i32) -> (i32, i32) {
    %c0_i32 = arith.constant 0 : i32
    %c0_i32_0 = arith.constant 0 : i32
    %c0_i32_1 = arith.constant 0 : i32
    return %c0_i32, %c0_i32_0 : i32, i32
  }
  func.func @transform_2(%arg0: i32) -> (i32, i32) {
    %c0_i32 = arith.constant 0 : i32
    %c0_i32_0 = arith.constant 0 : i32
    return %arg0, %c0_i32 : i32, i32
  }
}

module attributes {stable_mosaic.version = 11 : i64} {
  func.func @_conv_lrelu_kernel(%arg0: i32, %arg1: memref<32x64xbf16, #tpu.memory_space<vmem>>, %arg2: memref<64x128xbf16, #tpu.memory_space<vmem>>, %arg3: memref<32x128xbf16, #tpu.memory_space<vmem>>) attributes {dimension_semantics = [#tpu.dimension_semantics<parallel>], iteration_bounds = array<i64: 1>, scalar_prefetch = 0 : i64, scratch_operands = 0 : i64, tpu.core_type = #tpu.core_type<tc>, window_params = [{transform_indices = @transform_0, window_bounds = array<i64: 32, 64>}, {pipeline_mode = #tpu.pipeline_mode<synchronous>, transform_indices = @transform_1, window_bounds = array<i64: 64, 128>}, {transform_indices = @transform_2, window_bounds = array<i64: 32, 128>}]} {
    %c0 = arith.constant 0 : index
    %c0_0 = arith.constant 0 : index
    %0 = vector.load %arg1[%c0, %c0_0] : memref<32x64xbf16, #tpu.memory_space<vmem>>, vector<32x64xbf16>
    %c0_1 = arith.constant 0 : index
    %c0_2 = arith.constant 0 : index
    %1 = vector.load %arg2[%c0_1, %c0_2] : memref<64x128xbf16, #tpu.memory_space<vmem>>, vector<64x128xbf16>
    %cst = arith.constant dense<0.000000e+00> : vector<32x128xf32>
    %2 = tpu.matmul %0, %1, %cst {dimension_numbers = #tpu.dot_dimension_numbers<[1], [0], [0], [1], [0, 0, 1, 1], [], []>} : vector<32x64xbf16>, vector<64x128xbf16>, vector<32x128xf32> -> vector<32x128xf32>
    %cst_3 = arith.constant 0.000000e+00 : f32
    %3 = vector.broadcast %cst_3 : f32 to vector<32x128xf32>
    %4 = arith.cmpf ogt, %2, %3 : vector<32x128xf32>
    %cst_4 = arith.constant 2.000000e-01 : f32
    %5 = vector.broadcast %cst_4 : f32 to vector<32x128xf32>
    %6 = arith.mulf %5, %2 : vector<32x128xf32>
    %7 = arith.select %4, %2, %6 : vector<32x128xi1>, vector<32x128xf32>
    %8 = arith.truncf %7 : vector<32x128xf32> to vector<32x128xbf16>
    %c0_5 = arith.constant 0 : index
    %c0_6 = arith.constant 0 : index
    %9 = vector.load %arg3[%c0_5, %c0_6] : memref<32x128xbf16, #tpu.memory_space<vmem>>, vector<32x128xbf16>
    tpu.vector_store %arg3[%c0_5, %c0_6], %8 {strides = array<i32>} : memref<32x128xbf16, #tpu.memory_space<vmem>>, vector<32x128xbf16>,
    return
  }
  func.func @transform_0(%arg0: i32) -> (i32, i32) {
    %c0_i32 = arith.constant 0 : i32
    %c0_i32_0 = arith.constant 0 : i32
    return %arg0, %c0_i32 : i32, i32
  }
  func.func @transform_1(%arg0: i32) -> (i32, i32) {
    %c0_i32 = arith.constant 0 : i32
    %c0_i32_0 = arith.constant 0 : i32
    %c0_i32_1 = arith.constant 0 : i32
    return %c0_i32, %c0_i32_0 : i32, i32
  }
  func.func @transform_2(%arg0: i32) -> (i32, i32) {
    %c0_i32 = arith.constant 0 : i32
    %c0_i32_0 = arith.constant 0 : i32
    return %arg0, %c0_i32 : i32, i32
  }
}

module attributes {stable_mosaic.version = 11 : i64} {
  func.func @_conv_bn_lrelu_fused_kernel(%arg0: i32, %arg1: memref<8x512xbf16, #tpu.memory_space<vmem>>, %arg2: memref<512x128xbf16, #tpu.memory_space<vmem>>, %arg3: memref<8x128xbf16, #tpu.memory_space<vmem>>, %arg4: memref<1x128xf32, #tpu.memory_space<vmem>>, %arg5: memref<1x128xf32, #tpu.memory_space<vmem>>) attributes {dimension_semantics = [#tpu.dimension_semantics<arbitrary>], iteration_bounds = array<i64: 1>, scalar_prefetch = 0 : i64, scratch_operands = 2 : i64, tpu.core_type = #tpu.core_type<tc>, window_params = [{transform_indices = @transform_0, window_bounds = array<i64: 8, 512>}, {pipeline_mode = #tpu.pipeline_mode<synchronous>, transform_indices = @transform_1, window_bounds = array<i64: 512, 128>}, {pipeline_mode = #tpu.pipeline_mode<synchronous>, transform_indices = @transform_2, window_bounds = array<i64: 8, 128>}]} {
    %c0_i32 = arith.constant 0 : i32
    %0 = arith.cmpi eq, %arg0, %c0_i32 : i32
    %1 = arith.extui %0 : i1 to i32
    %c0_i32_0 = arith.constant 0 : i32
    %2 = arith.cmpi ne, %1, %c0_i32_0 : i32
    scf.if %2 {
      %cst_17 = arith.constant 0.000000e+00 : f32
      %25 = vector.broadcast %cst_17 : f32 to vector<1x128xf32>
      %c0_18 = arith.constant 0 : index
      %c0_19 = arith.constant 0 : index
      %26 = vector.load %arg4[%c0_18, %c0_19] : memref<1x128xf32, #tpu.memory_space<vmem>>, vector<1x128xf32>
      tpu.vector_store %arg4[%c0_18, %c0_19], %25 {strides = array<i32>} : memref<1x128xf32, #tpu.memory_space<vmem>>, vector<1x128xf32>,
      %cst_20 = arith.constant 0.000000e+00 : f32
      %27 = vector.broadcast %cst_20 : f32 to vector<1x128xf32>
      %c0_21 = arith.constant 0 : index
      %c0_22 = arith.constant 0 : index
      %28 = vector.load %arg5[%c0_21, %c0_22] : memref<1x128xf32, #tpu.memory_space<vmem>>, vector<1x128xf32>
      tpu.vector_store %arg5[%c0_21, %c0_22], %27 {strides = array<i32>} : memref<1x128xf32, #tpu.memory_space<vmem>>, vector<1x128xf32>,
    } else {
    }
    %c0 = arith.constant 0 : index
    %c0_1 = arith.constant 0 : index
    %3 = vector.load %arg1[%c0, %c0_1] : memref<8x512xbf16, #tpu.memory_space<vmem>>, vector<8x512xbf16>
    %c0_2 = arith.constant 0 : index
    %c0_3 = arith.constant 0 : index
    %4 = vector.load %arg2[%c0_2, %c0_3] : memref<512x128xbf16, #tpu.memory_space<vmem>>, vector<512x128xbf16>
    %cst = arith.constant dense<0.000000e+00> : vector<8x128xf32>
    %5 = tpu.matmul %3, %4, %cst {dimension_numbers = #tpu.dot_dimension_numbers<[1], [0], [0], [1], [0, 0, 1, 1], [], []>} : vector<8x512xbf16>, vector<512x128xbf16>, vector<8x128xf32> -> vector<8x128xf32>
    %c0_4 = arith.constant 0 : index
    %c0_5 = arith.constant 0 : index
    %6 = vector.load %arg4[%c0_4, %c0_5] : memref<1x128xf32, #tpu.memory_space<vmem>>, vector<1x128xf32>
    %cst_6 = arith.constant dense<0.000000e+00> : vector<128xf32>
    %7 = vector.multi_reduction <add>, %5, %cst_6 [0] : vector<8x128xf32> to vector<128xf32>
    %8 = vector.shape_cast %7 : vector<128xf32> to vector<1x128xf32>
    %9 = arith.addf %6, %8 : vector<1x128xf32>
    %c0_7 = arith.constant 0 : index
    %c0_8 = arith.constant 0 : index
    %10 = vector.load %arg4[%c0_7, %c0_8] : memref<1x128xf32, #tpu.memory_space<vmem>>, vector<1x128xf32>
    tpu.vector_store %arg4[%c0_7, %c0_8], %9 {strides = array<i32>} : memref<1x128xf32, #tpu.memory_space<vmem>>, vector<1x128xf32>,
    %c0_9 = arith.constant 0 : index
    %c0_10 = arith.constant 0 : index
    %11 = vector.load %arg5[%c0_9, %c0_10] : memref<1x128xf32, #tpu.memory_space<vmem>>, vector<1x128xf32>
    %12 = arith.mulf %5, %5 : vector<8x128xf32>
    %cst_11 = arith.constant dense<0.000000e+00> : vector<128xf32>
    %13 = vector.multi_reduction <add>, %12, %cst_11 [0] : vector<8x128xf32> to vector<128xf32>
    %14 = vector.shape_cast %13 : vector<128xf32> to vector<1x128xf32>
    %15 = arith.addf %11, %14 : vector<1x128xf32>
    %c0_12 = arith.constant 0 : index
    %c0_13 = arith.constant 0 : index
    %16 = vector.load %arg5[%c0_12, %c0_13] : memref<1x128xf32, #tpu.memory_space<vmem>>, vector<1x128xf32>
    tpu.vector_store %arg5[%c0_12, %c0_13], %15 {strides = array<i32>} : memref<1x128xf32, #tpu.memory_space<vmem>>, vector<1x128xf32>,
    %c8_i32 = arith.constant 8 : i32
    %17 = arith.muli %arg0, %c8_i32 : i32
    %18 = tpu.assume_multiple %17, 8 : i32
    %19 = arith.truncf %5 : vector<8x128xf32> to vector<8x128xbf16>
    %20 = arith.index_cast %18 : i32 to index
    %c0_14 = arith.constant 0 : index
    %21 = vector.load %arg3[%20, %c0_14] : memref<8x128xbf16, #tpu.memory_space<vmem>>, vector<8x128xbf16>
    tpu.vector_store %arg3[%20, %c0_14], %19 {strides = array<i32>} : memref<8x128xbf16, #tpu.memory_space<vmem>>, vector<8x128xbf16>,
    %c0_i32_15 = arith.constant 0 : i32
    %22 = arith.cmpi eq, %arg0, %c0_i32_15 : i32
    %23 = arith.extui %22 : i1 to i32
    %c0_i32_16 = arith.constant 0 : i32
    %24 = arith.cmpi ne, %23, %c0_i32_16 : i32
    scf.if %24 {
      %c0_17 = arith.constant 0 : index
      %c0_18 = arith.constant 0 : index
      %25 = vector.load %arg4[%c0_17, %c0_18] : memref<1x128xf32, #tpu.memory_space<vmem>>, vector<1x128xf32>
      %cst_19 = arith.constant 1.250000e-01 : f32
      %26 = vector.broadcast %cst_19 : f32 to vector<1x128xf32>
      %27 = arith.mulf %25, %26 : vector<1x128xf32>
      %c0_20 = arith.constant 0 : index
      %c0_21 = arith.constant 0 : index
      %28 = vector.load %arg5[%c0_20, %c0_21] : memref<1x128xf32, #tpu.memory_space<vmem>>, vector<1x128xf32>
      %cst_22 = arith.constant 1.250000e-01 : f32
      %29 = vector.broadcast %cst_22 : f32 to vector<1x128xf32>
      %30 = arith.mulf %28, %29 : vector<1x128xf32>
      %31 = arith.mulf %27, %27 : vector<1x128xf32>
      %32 = arith.subf %30, %31 : vector<1x128xf32>
      %cst_23 = arith.constant 0.000000e+00 : f32
      %33 = vector.broadcast %cst_23 : f32 to vector<1x128xf32>
      %34 = arith.maximumf %32, %33 : vector<1x128xf32>
      %cst_24 = arith.constant 9.99999974E-6 : f32
      %35 = vector.broadcast %cst_24 : f32 to vector<1x128xf32>
      %36 = arith.addf %34, %35 : vector<1x128xf32>
      %37 = math.rsqrt %36 : vector<1x128xf32>
      %c0_25 = arith.constant 0 : index
      %c0_26 = arith.constant 0 : index
      %38 = vector.load %arg3[%c0_25, %c0_26] : memref<8x128xbf16, #tpu.memory_space<vmem>>, vector<8x128xbf16>
      %39 = arith.extf %38 : vector<8x128xbf16> to vector<8x128xf32>
      %40 = vector.broadcast %27 : vector<1x128xf32> to vector<8x128xf32>
      %41 = arith.subf %39, %40 : vector<8x128xf32>
      %42 = vector.broadcast %37 : vector<1x128xf32> to vector<8x128xf32>
      %43 = arith.mulf %41, %42 : vector<8x128xf32>
      %cst_27 = arith.constant 0.000000e+00 : f32
      %44 = vector.broadcast %cst_27 : f32 to vector<8x128xf32>
      %45 = arith.cmpf ogt, %43, %44 : vector<8x128xf32>
      %cst_28 = arith.constant 2.000000e-01 : f32
      %46 = vector.broadcast %cst_28 : f32 to vector<8x128xf32>
      %47 = arith.mulf %46, %43 : vector<8x128xf32>
      %48 = arith.select %45, %43, %47 : vector<8x128xi1>, vector<8x128xf32>
      %49 = arith.truncf %48 : vector<8x128xf32> to vector<8x128xbf16>
      %c0_29 = arith.constant 0 : index
      %c0_30 = arith.constant 0 : index
      %50 = vector.load %arg3[%c0_29, %c0_30] : memref<8x128xbf16, #tpu.memory_space<vmem>>, vector<8x128xbf16>
      tpu.vector_store %arg3[%c0_29, %c0_30], %49 {strides = array<i32>} : memref<8x128xbf16, #tpu.memory_space<vmem>>, vector<8x128xbf16>,
    } else {
    }
    return
  }
  func.func @transform_0(%arg0: i32) -> (i32, i32) {
    %c0_i32 = arith.constant 0 : i32
    %c0_i32_0 = arith.constant 0 : i32
    return %arg0, %c0_i32 : i32, i32
  }
  func.func @transform_1(%arg0: i32) -> (i32, i32) {
    %c0_i32 = arith.constant 0 : i32
    %c0_i32_0 = arith.constant 0 : i32
    %c0_i32_1 = arith.constant 0 : i32
    return %c0_i32, %c0_i32_0 : i32, i32
  }
  func.func @transform_2(%arg0: i32) -> (i32, i32) {
    %c0_i32 = arith.constant 0 : i32
    %c0_i32_0 = arith.constant 0 : i32
    %c0_i32_1 = arith.constant 0 : i32
    return %c0_i32, %c0_i32_0 : i32, i32
  }
}

module attributes {stable_mosaic.version = 11 : i64} {
  func.func @_conv_bn_pool_head_fused_kernel(%arg0: i32, %arg1: memref<8x1024xbf16, #tpu.memory_space<vmem>>, %arg2: memref<1024x128xbf16, #tpu.memory_space<vmem>>, %arg3: memref<1x128xf32, #tpu.memory_space<vmem>>, %arg4: memref<2x128xf32, #tpu.memory_space<vmem>>, %arg5: memref<2x1xf32, #tpu.memory_space<vmem>>, %arg6: memref<8x128xbf16, #tpu.memory_space<vmem>>, %arg7: memref<1x128xf32, #tpu.memory_space<vmem>>, %arg8: memref<1x128xf32, #tpu.memory_space<vmem>>) attributes {dimension_semantics = [#tpu.dimension_semantics<arbitrary>], iteration_bounds = array<i64: 1>, scalar_prefetch = 0 : i64, scratch_operands = 3 : i64, tpu.core_type = #tpu.core_type<tc>, window_params = [{transform_indices = @transform_0, window_bounds = array<i64: 8, 1024>}, {pipeline_mode = #tpu.pipeline_mode<synchronous>, transform_indices = @transform_1, window_bounds = array<i64: 1024, 128>}, {pipeline_mode = #tpu.pipeline_mode<synchronous>, transform_indices = @transform_2, window_bounds = array<i64: 1, 128>}, {pipeline_mode = #tpu.pipeline_mode<synchronous>, transform_indices = @transform_3, window_bounds = array<i64: 2, 128>}, {pipeline_mode = #tpu.pipeline_mode<synchronous>, transform_indices = @transform_4, window_bounds = array<i64: 2, 1>}]} {
    %c0_i32 = arith.constant 0 : i32
    %0 = arith.cmpi eq, %arg0, %c0_i32 : i32
    %1 = arith.extui %0 : i1 to i32
    %c0_i32_0 = arith.constant 0 : i32
    %2 = arith.cmpi ne, %1, %c0_i32_0 : i32
    scf.if %2 {
      %cst_17 = arith.constant 0.000000e+00 : f32
      %25 = vector.broadcast %cst_17 : f32 to vector<1x128xf32>
      %c0_18 = arith.constant 0 : index
      %c0_19 = arith.constant 0 : index
      %26 = vector.load %arg7[%c0_18, %c0_19] : memref<1x128xf32, #tpu.memory_space<vmem>>, vector<1x128xf32>
      tpu.vector_store %arg7[%c0_18, %c0_19], %25 {strides = array<i32>} : memref<1x128xf32, #tpu.memory_space<vmem>>, vector<1x128xf32>,
      %cst_20 = arith.constant 0.000000e+00 : f32
      %27 = vector.broadcast %cst_20 : f32 to vector<1x128xf32>
      %c0_21 = arith.constant 0 : index
      %c0_22 = arith.constant 0 : index
      %28 = vector.load %arg8[%c0_21, %c0_22] : memref<1x128xf32, #tpu.memory_space<vmem>>, vector<1x128xf32>
      tpu.vector_store %arg8[%c0_21, %c0_22], %27 {strides = array<i32>} : memref<1x128xf32, #tpu.memory_space<vmem>>, vector<1x128xf32>,
    } else {
    }
    %c0 = arith.constant 0 : index
    %c0_1 = arith.constant 0 : index
    %3 = vector.load %arg1[%c0, %c0_1] : memref<8x1024xbf16, #tpu.memory_space<vmem>>, vector<8x1024xbf16>
    %c0_2 = arith.constant 0 : index
    %c0_3 = arith.constant 0 : index
    %4 = vector.load %arg2[%c0_2, %c0_3] : memref<1024x128xbf16, #tpu.memory_space<vmem>>, vector<1024x128xbf16>
    %cst = arith.constant dense<0.000000e+00> : vector<8x128xf32>
    %5 = tpu.matmul %3, %4, %cst {dimension_numbers = #tpu.dot_dimension_numbers<[1], [0], [0], [1], [0, 0, 1, 1], [], []>} : vector<8x1024xbf16>, vector<1024x128xbf16>, vector<8x128xf32> -> vector<8x128xf32>
    %c0_4 = arith.constant 0 : index
    %c0_5 = arith.constant 0 : index
    %6 = vector.load %arg7[%c0_4, %c0_5] : memref<1x128xf32, #tpu.memory_space<vmem>>, vector<1x128xf32>
    %cst_6 = arith.constant dense<0.000000e+00> : vector<128xf32>
    %7 = vector.multi_reduction <add>, %5, %cst_6 [0] : vector<8x128xf32> to vector<128xf32>
    %8 = vector.shape_cast %7 : vector<128xf32> to vector<1x128xf32>
    %9 = arith.addf %6, %8 : vector<1x128xf32>
    %c0_7 = arith.constant 0 : index
    %c0_8 = arith.constant 0 : index
    %10 = vector.load %arg7[%c0_7, %c0_8] : memref<1x128xf32, #tpu.memory_space<vmem>>, vector<1x128xf32>
    tpu.vector_store %arg7[%c0_7, %c0_8], %9 {strides = array<i32>} : memref<1x128xf32, #tpu.memory_space<vmem>>, vector<1x128xf32>,
    %c0_9 = arith.constant 0 : index
    %c0_10 = arith.constant 0 : index
    %11 = vector.load %arg8[%c0_9, %c0_10] : memref<1x128xf32, #tpu.memory_space<vmem>>, vector<1x128xf32>
    %12 = arith.mulf %5, %5 : vector<8x128xf32>
    %cst_11 = arith.constant dense<0.000000e+00> : vector<128xf32>
    %13 = vector.multi_reduction <add>, %12, %cst_11 [0] : vector<8x128xf32> to vector<128xf32>
    %14 = vector.shape_cast %13 : vector<128xf32> to vector<1x128xf32>
    %15 = arith.addf %11, %14 : vector<1x128xf32>
    %c0_12 = arith.constant 0 : index
    %c0_13 = arith.constant 0 : index
    %16 = vector.load %arg8[%c0_12, %c0_13] : memref<1x128xf32, #tpu.memory_space<vmem>>, vector<1x128xf32>
    tpu.vector_store %arg8[%c0_12, %c0_13], %15 {strides = array<i32>} : memref<1x128xf32, #tpu.memory_space<vmem>>, vector<1x128xf32>,
    %c8_i32 = arith.constant 8 : i32
    %17 = arith.muli %arg0, %c8_i32 : i32
    %18 = tpu.assume_multiple %17, 8 : i32
    %19 = arith.truncf %5 : vector<8x128xf32> to vector<8x128xbf16>
    %20 = arith.index_cast %18 : i32 to index
    %c0_14 = arith.constant 0 : index
    %21 = vector.load %arg6[%20, %c0_14] : memref<8x128xbf16, #tpu.memory_space<vmem>>, vector<8x128xbf16>
    tpu.vector_store %arg6[%20, %c0_14], %19 {strides = array<i32>} : memref<8x128xbf16, #tpu.memory_space<vmem>>, vector<8x128xbf16>,
    %c0_i32_15 = arith.constant 0 : i32
    %22 = arith.cmpi eq, %arg0, %c0_i32_15 : i32
    %23 = arith.extui %22 : i1 to i32
    %c0_i32_16 = arith.constant 0 : i32
    %24 = arith.cmpi ne, %23, %c0_i32_16 : i32
    scf.if %24 {
      %c0_17 = arith.constant 0 : index
      %c0_18 = arith.constant 0 : index
      %25 = vector.load %arg7[%c0_17, %c0_18] : memref<1x128xf32, #tpu.memory_space<vmem>>, vector<1x128xf32>
      %cst_19 = arith.constant 5.000000e-01 : f32
      %26 = vector.broadcast %cst_19 : f32 to vector<1x128xf32>
      %27 = arith.mulf %25, %26 : vector<1x128xf32>
      %c0_20 = arith.constant 0 : index
      %c0_21 = arith.constant 0 : index
      %28 = vector.load %arg8[%c0_20, %c0_21] : memref<1x128xf32, #tpu.memory_space<vmem>>, vector<1x128xf32>
      %cst_22 = arith.constant 5.000000e-01 : f32
      %29 = vector.broadcast %cst_22 : f32 to vector<1x128xf32>
      %30 = arith.mulf %28, %29 : vector<1x128xf32>
      %31 = arith.mulf %27, %27 : vector<1x128xf32>
      %32 = arith.subf %30, %31 : vector<1x128xf32>
      %cst_23 = arith.constant 0.000000e+00 : f32
      %33 = vector.broadcast %cst_23 : f32 to vector<1x128xf32>
      %34 = arith.maximumf %32, %33 : vector<1x128xf32>
      %cst_24 = arith.constant 9.99999974E-6 : f32
      %35 = vector.broadcast %cst_24 : f32 to vector<1x128xf32>
      %36 = arith.addf %34, %35 : vector<1x128xf32>
      %37 = math.rsqrt %36 : vector<1x128xf32>
      %c0_25 = arith.constant 0 : index
      %c0_26 = arith.constant 0 : index
      %38 = vector.load %arg6[%c0_25, %c0_26] : memref<8x128xbf16, #tpu.memory_space<vmem>>, vector<8x128xbf16>
      %39 = arith.extf %38 : vector<8x128xbf16> to vector<8x128xf32>
      %40 = vector.broadcast %27 : vector<1x128xf32> to vector<8x128xf32>
      %41 = arith.subf %39, %40 : vector<8x128xf32>
      %42 = vector.broadcast %37 : vector<1x128xf32> to vector<8x128xf32>
      %43 = arith.mulf %41, %42 : vector<8x128xf32>
      %cst_27 = arith.constant 0.000000e+00 : f32
      %44 = vector.broadcast %cst_27 : f32 to vector<8x128xf32>
      %45 = arith.cmpf ogt, %43, %44 : vector<8x128xf32>
      %cst_28 = arith.constant 2.000000e-01 : f32
      %46 = vector.broadcast %cst_28 : f32 to vector<8x128xf32>
      %47 = arith.mulf %46, %43 : vector<8x128xf32>
      %48 = arith.select %45, %43, %47 : vector<8x128xi1>, vector<8x128xf32>
      %49 = vector.extract_strided_slice %48 {offsets = [0, 0], sizes = [1, 128], strides = [1, 1]} : vector<8x128xf32> to vector<1x128xf32>
      %cst_29 = arith.constant dense<0.000000e+00> : vector<128xf32>
      %50 = vector.multi_reduction <add>, %49, %cst_29 [0] : vector<1x128xf32> to vector<128xf32>
      %51 = vector.shape_cast %50 : vector<128xf32> to vector<1x128xf32>
      %52 = vector.extract_strided_slice %48 {offsets = [1, 0], sizes = [1, 128], strides = [1, 1]} : vector<8x128xf32> to vector<1x128xf32>
      %cst_30 = arith.constant dense<0.000000e+00> : vector<128xf32>
      %53 = vector.multi_reduction <add>, %52, %cst_30 [0] : vector<1x128xf32> to vector<128xf32>
      %54 = vector.shape_cast %53 : vector<128xf32> to vector<1x128xf32>
      %55 = tpu.concatenate %51, %54 in 0 : vector<1x128xf32>, vector<1x128xf32> -> vector<2x128xf32>
      %cst_31 = arith.constant 1.000000e+00 : f32
      %56 = vector.broadcast %cst_31 : f32 to vector<2x128xf32>
      %57 = arith.mulf %55, %56 : vector<2x128xf32>
      %c0_32 = arith.constant 0 : index
      %c0_33 = arith.constant 0 : index
      %58 = vector.load %arg4[%c0_32, %c0_33] : memref<2x128xf32, #tpu.memory_space<vmem>>, vector<2x128xf32>
      tpu.vector_store %arg4[%c0_32, %c0_33], %57 {strides = array<i32>} : memref<2x128xf32, #tpu.memory_space<vmem>>, vector<2x128xf32>,
      %c0_34 = arith.constant 0 : index
      %c0_35 = arith.constant 0 : index
      %59 = vector.load %arg3[%c0_34, %c0_35] : memref<1x128xf32, #tpu.memory_space<vmem>>, vector<1x128xf32>
      %60 = vector.broadcast %59 : vector<1x128xf32> to vector<2x128xf32>
      %61 = arith.mulf %57, %60 : vector<2x128xf32>
      %cst_36 = arith.constant dense<0.000000e+00> : vector<2xf32>
      %62 = vector.multi_reduction <add>, %61, %cst_36 [1] : vector<2x128xf32> to vector<2xf32>
      %63 = vector.shape_cast %62 : vector<2xf32> to vector<2x1xf32>
      %cst_37 = arith.constant 0.000000e+00 : f32
      %64 = vector.broadcast %cst_37 : f32 to vector<2x1xf32>
      %65 = arith.subf %64, %63 : vector<2x1xf32>
      %66 = math.exp %65 : vector<2x1xf32>
      %cst_38 = arith.constant 1.000000e+00 : f32
      %67 = vector.broadcast %cst_38 : f32 to vector<2x1xf32>
      %68 = arith.addf %67, %66 : vector<2x1xf32>
      %cst_39 = arith.constant 1.000000e+00 : f32
      %69 = vector.broadcast %cst_39 : f32 to vector<2x1xf32>
      %70 = arith.divf %69, %68 : vector<2x1xf32>
      %c0_40 = arith.constant 0 : index
      %c0_41 = arith.constant 0 : index
      %71 = vector.load %arg5[%c0_40, %c0_41] : memref<2x1xf32, #tpu.memory_space<vmem>>, vector<2x1xf32>
      tpu.vector_store %arg5[%c0_40, %c0_41], %70 {strides = array<i32>} : memref<2x1xf32, #tpu.memory_space<vmem>>, vector<2x1xf32>,
    } else {
    }
    return
  }
  func.func @transform_0(%arg0: i32) -> (i32, i32) {
    %c0_i32 = arith.constant 0 : i32
    %c0_i32_0 = arith.constant 0 : i32
    return %arg0, %c0_i32 : i32, i32
  }
  func.func @transform_1(%arg0: i32) -> (i32, i32) {
    %c0_i32 = arith.constant 0 : i32
    %c0_i32_0 = arith.constant 0 : i32
    %c0_i32_1 = arith.constant 0 : i32
    return %c0_i32, %c0_i32_0 : i32, i32
  }
  func.func @transform_2(%arg0: i32) -> (i32, i32) {
    %c0_i32 = arith.constant 0 : i32
    %c0_i32_0 = arith.constant 0 : i32
    %c0_i32_1 = arith.constant 0 : i32
    return %c0_i32, %c0_i32_0 : i32, i32
  }
  func.func @transform_3(%arg0: i32) -> (i32, i32) {
    %c0_i32 = arith.constant 0 : i32
    %c0_i32_0 = arith.constant 0 : i32
    %c0_i32_1 = arith.constant 0 : i32
    return %c0_i32, %c0_i32_0 : i32, i32
  }
  func.func @transform_4(%arg0: i32) -> (i32, i32) {
    %c0_i32 = arith.constant 0 : i32
    %c0_i32_0 = arith.constant 0 : i32
    %c0_i32_1 = arith.constant 0 : i32
    return %c0_i32, %c0_i32_0 : i32, i32
  }
}

module attributes {stable_mosaic.version = 11 : i64} {
  func.func @_conv_lrelu_kernel(%arg0: i32, %arg1: memref<8x64xbf16, #tpu.memory_space<vmem>>, %arg2: memref<64x128xbf16, #tpu.memory_space<vmem>>, %arg3: memref<8x128xbf16, #tpu.memory_space<vmem>>) attributes {dimension_semantics = [#tpu.dimension_semantics<parallel>], iteration_bounds = array<i64: 1>, scalar_prefetch = 0 : i64, scratch_operands = 0 : i64, tpu.core_type = #tpu.core_type<tc>, window_params = [{transform_indices = @transform_0, window_bounds = array<i64: 8, 64>}, {pipeline_mode = #tpu.pipeline_mode<synchronous>, transform_indices = @transform_1, window_bounds = array<i64: 64, 128>}, {transform_indices = @transform_2, window_bounds = array<i64: 8, 128>}]} {
    %c0 = arith.constant 0 : index
    %c0_0 = arith.constant 0 : index
    %0 = vector.load %arg1[%c0, %c0_0] : memref<8x64xbf16, #tpu.memory_space<vmem>>, vector<8x64xbf16>
    %c0_1 = arith.constant 0 : index
    %c0_2 = arith.constant 0 : index
    %1 = vector.load %arg2[%c0_1, %c0_2] : memref<64x128xbf16, #tpu.memory_space<vmem>>, vector<64x128xbf16>
    %cst = arith.constant dense<0.000000e+00> : vector<8x128xf32>
    %2 = tpu.matmul %0, %1, %cst {dimension_numbers = #tpu.dot_dimension_numbers<[1], [0], [0], [1], [0, 0, 1, 1], [], []>} : vector<8x64xbf16>, vector<64x128xbf16>, vector<8x128xf32> -> vector<8x128xf32>
    %cst_3 = arith.constant 0.000000e+00 : f32
    %3 = vector.broadcast %cst_3 : f32 to vector<8x128xf32>
    %4 = arith.cmpf ogt, %2, %3 : vector<8x128xf32>
    %cst_4 = arith.constant 2.000000e-01 : f32
    %5 = vector.broadcast %cst_4 : f32 to vector<8x128xf32>
    %6 = arith.mulf %5, %2 : vector<8x128xf32>
    %7 = arith.select %4, %2, %6 : vector<8x128xi1>, vector<8x128xf32>
    %8 = arith.truncf %7 : vector<8x128xf32> to vector<8x128xbf16>
    %c0_5 = arith.constant 0 : index
    %c0_6 = arith.constant 0 : index
    %9 = vector.load %arg3[%c0_5, %c0_6] : memref<8x128xbf16, #tpu.memory_space<vmem>>, vector<8x128xbf16>
    tpu.vector_store %arg3[%c0_5, %c0_6], %8 {strides = array<i32>} : memref<8x128xbf16, #tpu.memory_space<vmem>>, vector<8x128xbf16>,
    return
  }
  func.func @transform_0(%arg0: i32) -> (i32, i32) {
    %c0_i32 = arith.constant 0 : i32
    %c0_i32_0 = arith.constant 0 : i32
    return %arg0, %c0_i32 : i32, i32
  }
  func.func @transform_1(%arg0: i32) -> (i32, i32) {
    %c0_i32 = arith.constant 0 : i32
    %c0_i32_0 = arith.constant 0 : i32
    %c0_i32_1 = arith.constant 0 : i32
    return %c0_i32, %c0_i32_0 : i32, i32
  }
  func.func @transform_2(%arg0: i32) -> (i32, i32) {
    %c0_i32 = arith.constant 0 : i32
    %c0_i32_0 = arith.constant 0 : i32
    return %arg0, %c0_i32 : i32, i32
  }
}

</mosaic_0001>

<bundles_post_ra>
// kernel: _lambda_.12
= control target key start
LH: loop header
LB: loop body
LE: loop exit
PB: predicated region body
PF: predicated region fallthrough
CT: control target
= control target key end

     0   :  { %vm268_vm0 = vcmask 523264   ;;  %s1969_s1 = inlined_call_operand.vmem [shape: bf16[64,128], index: 1, kind: input, shape index: {}]   ;;  %s1970_s0 = inlined_call_operand.vmem [shape: bf16[512,64], index: 0, kind: input, shape index: {}]   ;;  %s1971_s2 = inlined_call_operand.vmem [shape: bf16[512,128], index: 2, kind: output, shape index: {}]  }
   0x1   :  { %v1673_v0 = vld [vmem:[%s1969_s1 + $0x18] sm:$0xff]   ;;  %v1674_v1 = vld [vmem:[%s1969_s1 + $0x10] sm:$0xff]   ;;  %v1675_v2 = vld [vmem:[%s1969_s1 + $0x8] sm:$0xff]  }
   0x2   :  { %1593 = vmatprep.subr.bf16.mxu0 %v1673_v0  ;;  %1665 = vmatprep.subr.bf16.mxu1 %v1673_v0  ;;  %v1677_v3 = vld [vmem:[%s1970_s0] sm:$0xff]   ;;  %v1679_v6 = vld [vmem:[%s1970_s0 + $0x8] sm:$0xff]   ;;  %v1681_v8 = vld [vmem:[%s1970_s0 + $0x10] sm:$0xff]  }
   0x3   :  { %1594 = vmatpush3.bf16.msra.mxu0 %v1673_v0  ;;  %1669 = vmatpush3.bf16.msra.mxu1 %v1673_v0  ;;  %v1678_v4 = vld [vmem:[%s1970_s0 + $0x80] sm:$0xff]   ;;  %v1680_v7 = vld [vmem:[%s1970_s0 + $0x88] sm:$0xff]   ;;  %v1682_v9 = vld [vmem:[%s1970_s0 + $0x90] sm:$0xff]  }
   0x4   :  { %1595 = vmatprep.subr.bf16.mxu0 %v1674_v1  ;;  %1666 = vmatprep.subr.bf16.mxu1 %v1674_v1  ;;  %v1676_v5 = vld [vmem:[%s1969_s1] sm:$0xff]   ;;  %v1683_v10 = vld [vmem:[%s1970_s0 + $0x18] sm:$0xff]   ;;  %v1687_v14 = vld [vmem:[%s1970_s0 + $0x28] sm:$0xff]  }
   0x5   :  { %1601 = vmatprep.mubr.msk.bf16.mxu0 %vm268_vm0, %v1677_v3  ;;  %1633 = vmatprep.mubr.msk.bf16.mxu1 %vm268_vm0, %v1678_v4  ;;  %v1684_v11 = vld [vmem:[%s1970_s0 + $0x98] sm:$0xff]   ;;  %v1685_v12 = vld [vmem:[%s1970_s0 + $0x20] sm:$0xff]   ;;  %v1688_v15 = vld [vmem:[%s1970_s0 + $0xa8] sm:$0xff]  }
   0x6   :  { %v1686_v13 = vld [vmem:[%s1970_s0 + $0xa0] sm:$0xff]   ;;  %v1689_v16 = vld [vmem:[%s1970_s0 + $0x30] sm:$0xff]   ;;  %v1691_v18 = vld [vmem:[%s1970_s0 + $0x38] sm:$0xff]  }
   0x7   :  { %1596 = vmatpush3.bf16.msra.mxu0 %v1674_v1  ;;  %1670 = vmatpush3.bf16.msra.mxu1 %v1674_v1  ;;  %v1690_v17 = vld [vmem:[%s1970_s0 + $0xb0] sm:$0xff]   ;;  %v1692_v19 = vld [vmem:[%s1970_s0 + $0xb8] sm:$0xff]   ;;  %v1693_v20 = vld [vmem:[%s1970_s0 + $0x40] sm:$0xff]  }
   0x8   :  { %1597 = vmatprep.subr.bf16.mxu0 %v1675_v2  ;;  %1667 = vmatprep.subr.bf16.mxu1 %v1675_v2  ;;  %v1694_v21 = vld [vmem:[%s1970_s0 + $0xc0] sm:$0xff]   ;;  %v1695_v22 = vld [vmem:[%s1970_s0 + $0x48] sm:$0xff]   ;;  %v1697_v24 = vld [vmem:[%s1970_s0 + $0x50] sm:$0xff]  }
   0x9   :  { %v1696_v23 = vld [vmem:[%s1970_s0 + $0xc8] sm:$0xff]   ;;  %v1698_v25 = vld [vmem:[%s1970_s0 + $0xd0] sm:$0xff]   ;;  %v1699_v26 = vld [vmem:[%s1970_s0 + $0x58] sm:$0xff]  }
   0xa   :  { %v1700_v27 = vld [vmem:[%s1970_s0 + $0xd8] sm:$0xff]   ;;  %v1701_v28 = vld [vmem:[%s1970_s0 + $0x60] sm:$0xff]   ;;  %v1703_v30 = vld [vmem:[%s1970_s0 + $0x68] sm:$0xff]  }
   0xb   :  { %1598 = vmatpush3.bf16.msra.mxu0 %v1675_v2  ;;  %1671 = vmatpush3.bf16.msra.mxu1 %v1675_v2  ;;  %v1702_v29 = vld [vmem:[%s1970_s0 + $0xe0] sm:$0xff]   ;;  %v1704_v31 = vld [vmem:[%s1970_s0 + $0xe8] sm:$0xff]   ;;  %v1705_v32 = vld [vmem:[%s1970_s0 + $0x70] sm:$0xff]  }
   0xc   :  { %1599 = vmatprep.subr.bf16.mxu0 %v1676_v5  ;;  %1668 = vmatprep.subr.bf16.mxu1 %v1676_v5  ;;  %v1706_v33 = vld [vmem:[%s1970_s0 + $0xf0] sm:$0xff]   ;;  %v1707_v34 = vld [vmem:[%s1970_s0 + $0x78] sm:$0xff]  }
   0xd   :  { %v1708_v35 = vld [vmem:[%s1970_s0 + $0xf8] sm:$0xff]  }
   0xf   :  { %1600 = vmatpush3.bf16.msra.mxu0 %v1676_v5  ;;  %1672 = vmatpush3.bf16.msra.mxu1 %v1676_v5 }
  0x12   :  { %1602 = vmatmul.mubr.msk.bf16.vlgmr.msra.gmra.mxu0 %vm268_vm0, %v1679_v6  ;;  %1634 = vmatmul.mubr.msk.bf16.vlgmr.msra.gmra.mxu1 %vm268_vm0, %v1680_v7 }
  0x13   :  { %1605 = vmatprep.mubr.msk.bf16.mxu0 %vm268_vm0, %v1681_v8  ;;  %1637 = vmatprep.mubr.msk.bf16.mxu1 %vm268_vm0, %v1682_v9 }
  0x1a   :  { %1606 = vmatmul.mubr.msk.bf16.gmra.mxu0 %vm268_vm0, %v1683_v10  ;;  %1638 = vmatmul.mubr.msk.bf16.gmra.mxu1 %vm268_vm0, %v1684_v11 }
  0x1b   :  { %1609 = vmatprep.mubr.msk.bf16.mxu0 %vm268_vm0, %v1685_v12  ;;  %1641 = vmatprep.mubr.msk.bf16.mxu1 %vm268_vm0, %v1686_v13 }
  0x22   :  { %1610 = vmatmul.mubr.msk.bf16.gmra.mxu0 %vm268_vm0, %v1687_v14  ;;  %1642 = vmatmul.mubr.msk.bf16.gmra.mxu1 %vm268_vm0, %v1688_v15 }
  0x23   :  { %1613 = vmatprep.mubr.msk.bf16.mxu0 %vm268_vm0, %v1689_v16  ;;  %1645 = vmatprep.mubr.msk.bf16.mxu1 %vm268_vm0, %v1690_v17 }
  0x2a   :  { %1614 = vmatmul.mubr.msk.bf16.gmra.mxu0 %vm268_vm0, %v1691_v18  ;;  %1646 = vmatmul.mubr.msk.bf16.gmra.mxu1 %vm268_vm0, %v1692_v19 }
  0x2b   :  { %1617 = vmatprep.mubr.msk.bf16.mxu0 %vm268_vm0, %v1693_v20  ;;  %1649 = vmatprep.mubr.msk.bf16.mxu1 %vm268_vm0, %v1694_v21 }
  0x32   :  { %1618 = vmatmul.mubr.msk.bf16.gmra.mxu0 %vm268_vm0, %v1695_v22  ;;  %1650 = vmatmul.mubr.msk.bf16.gmra.mxu1 %vm268_vm0, %v1696_v23 }
  0x33   :  { %1621 = vmatprep.mubr.msk.bf16.mxu0 %vm268_vm0, %v1697_v24  ;;  %1653 = vmatprep.mubr.msk.bf16.mxu1 %vm268_vm0, %v1698_v25 }
  0x3a   :  { %1622 = vmatmul.mubr.msk.bf16.gmra.mxu0 %vm268_vm0, %v1699_v26  ;;  %1654 = vmatmul.mubr.msk.bf16.gmra.mxu1 %vm268_vm0, %v1700_v27 }
  0x3b   :  { %1625 = vmatprep.mubr.msk.bf16.mxu0 %vm268_vm0, %v1701_v28  ;;  %1657 = vmatprep.mubr.msk.bf16.mxu1 %vm268_vm0, %v1702_v29 }
  0x42   :  { %1626 = vmatmul.mubr.msk.bf16.gmra.mxu0 %vm268_vm0, %v1703_v30  ;;  %1658 = vmatmul.mubr.msk.bf16.gmra.mxu1 %vm268_vm0, %v1704_v31 }
  0x43   :  { %1629 = vmatprep.mubr.msk.bf16.mxu0 %vm268_vm0, %v1705_v32  ;;  %1661 = vmatprep.mubr.msk.bf16.mxu1 %vm268_vm0, %v1706_v33 }
  0x4a   :  { %1630 = vmatmul.mubr.msk.bf16.gmra.mxu0 %vm268_vm0, %v1707_v34  ;;  %1662 = vmatmul.mubr.msk.bf16.gmra.mxu1 %vm268_vm0, %v1708_v35 }
  0xd2   :  { %v1603_v36 = vpop.f32.mrf.mxu0  ;;  %v1635_v37 = vpop.f32.mrf.mxu1 }
  0xd3   :  { %vm656_vm1 = vcmp.gt.f32.partialorder %v1603_v36, 0.0  ;;  %v720_v38 = vmul.f32 0.2, %v1603_v36  ;;  %v752_v39 = vmul.f32 0.2, %v1635_v37  ;;  %vm688_vm2 = vcmp.gt.f32.partialorder %v1635_v37, 0.0 }
  0xd4   :  { %v399_v40 = vpop.f32.mrf.mxu0  ;;  %v527_v41 = vpop.f32.mrf.mxu1 }
  0xd5   :  { %v784_v42 = vsel %vm656_vm1, %v1603_v36, %v720_v38  ;;  %v718_v43 = vmul.f32 0.2, %v399_v40  ;;  %vm654_vm3 = vcmp.gt.f32.partialorder %v399_v40, 0.0  ;;  %v816_v47 = vsel %vm688_vm2, %v1635_v37, %v752_v39 }
  0xd6   :  { %v1604_v44 = vpop.f32.mrf.mxu0  ;;  %v1636_v45 = vpop.f32.mrf.mxu1  ;;  %vm686_vm6 = vcmp.gt.f32.partialorder %v527_v41, 0.0  ;;  %v750_v48 = vmul.f32 0.2, %v527_v41 }
  0xd7   :  { %vm657_vm4 = vcmp.gt.f32.partialorder %v1604_v44, 0.0  ;;  %v721_v46 = vmul.f32 0.2, %v1604_v44  ;;  %vm689_vm5 = vcmp.gt.f32.partialorder %v1636_v45, 0.0  ;;  %v753_v49 = vmul.f32 0.2, %v1636_v45 }
  0xd8   :  { %v402_v50 = vpop.f32.mrf.mxu0  ;;  %v530_v51 = vpop.f32.mrf.mxu1  ;;  %v782_v54 = vsel %vm654_vm3, %v399_v40, %v718_v43  ;;  %v814_v63 = vsel %vm686_vm6, %v527_v41, %v750_v48 }
  0xd9   :  { %v785_v52 = vsel %vm657_vm4, %v1604_v44, %v721_v46  ;;  %vm655_vm7 = vcmp.gt.f32.partialorder %v402_v50, 0.0  ;;  %v719_v53 = vmul.f32 0.2, %v402_v50  ;;  %vm687_vm8 = vcmp.gt.f32.partialorder %v530_v51, 0.0 }
  0xda   :  { %v1374_v55 = vpack.c.bf16 %v785_v52, %v784_v42  ;;  %v817_v56 = vsel %vm689_vm5, %v1636_v45, %v753_v49  ;;  %v751_v57 = vmul.f32 0.2, %v530_v51  ;;  %v1607_v58 = vpop.f32.mrf.mxu0  ;;  %v1639_v59 = vpop.f32.mrf.mxu1 }
  0xdb   :  { %v1454_v60 = vpack.c.bf16 %v817_v56, %v816_v47  ;;  %v783_v61 = vsel %vm655_vm7, %v402_v50, %v719_v53  ;;  %vm660_vm9 = vcmp.gt.f32.partialorder %v1607_v58, 0.0  ;;  %v724_v62 = vmul.f32 0.2, %v1607_v58 }
  0xdc   :  { %1526 = vst [vmem:[%s1971_s2 + $0x8] sm:$0xff] %v1374_v55   ;;  %v1369_v0 = vpack.c.bf16 %v783_v61, %v782_v54  ;;  %v815_v1 = vsel %vm687_vm8, %v530_v51, %v751_v57  ;;  %v756_v2 = vmul.f32 0.2, %v1639_v59  ;;  %v415_v3 = vpop.f32.mrf.mxu0  ;;  %v543_v4 = vpop.f32.mrf.mxu1  ;;  %vm692_vm10 = vcmp.gt.f32.partialorder %v1639_v59, 0.0 }
  0xdd   :  { %1542 = vst [vmem:[%s1971_s2 + $0x88] sm:$0xff] %v1454_v60   ;;  %v1449_v5 = vpack.c.bf16 %v815_v1, %v814_v63  ;;  %v788_v6 = vsel %vm660_vm9, %v1607_v58, %v724_v62  ;;  %v722_v7 = vmul.f32 0.2, %v415_v3  ;;  %vm658_vm11 = vcmp.gt.f32.partialorder %v415_v3, 0.0 }
  0xde   :  { %1370 = vst [vmem:[%s1971_s2] sm:$0xff] %v1369_v0   ;;  %v1608_v8 = vpop.f32.mrf.mxu0  ;;  %v1640_v9 = vpop.f32.mrf.mxu1  ;;  %v820_v11 = vsel %vm692_vm10, %v1639_v59, %v756_v2  ;;  %vm690_vm14 = vcmp.gt.f32.partialorder %v543_v4, 0.0  ;;  %v754_v12 = vmul.f32 0.2, %v543_v4 }
  0xdf   :  { %1541 = vst [vmem:[%s1971_s2 + $0x80] sm:$0xff] %v1449_v5   ;;  %vm661_vm12 = vcmp.gt.f32.partialorder %v1608_v8, 0.0  ;;  %v725_v10 = vmul.f32 0.2, %v1608_v8  ;;  %vm693_vm13 = vcmp.gt.f32.partialorder %v1640_v9, 0.0  ;;  %v786_v18 = vsel %vm658_vm11, %v415_v3, %v722_v7 }
  0xe0   :  { %v757_v13 = vmul.f32 0.2, %v1640_v9  ;;  %v418_v14 = vpop.f32.mrf.mxu0  ;;  %v546_v15 = vpop.f32.mrf.mxu1  ;;  %v818_v27 = vsel %vm690_vm14, %v543_v4, %v754_v12 }
  0xe1   :  { %v789_v16 = vsel %vm661_vm12, %v1608_v8, %v725_v10  ;;  %vm659_vm15 = vcmp.gt.f32.partialorder %v418_v14, 0.0  ;;  %v723_v17 = vmul.f32 0.2, %v418_v14  ;;  %vm691_vm0 = vcmp.gt.f32.partialorder %v546_v15, 0.0 }
  0xe2   :  { %v1384_v19 = vpack.c.bf16 %v789_v16, %v788_v6  ;;  %v821_v20 = vsel %vm693_vm13, %v1640_v9, %v757_v13  ;;  %v755_v21 = vmul.f32 0.2, %v546_v15  ;;  %v1611_v22 = vpop.f32.mrf.mxu0  ;;  %v1643_v23 = vpop.f32.mrf.mxu1 }
  0xe3   :  { %v1464_v24 = vpack.c.bf16 %v821_v20, %v820_v11  ;;  %v787_v25 = vsel %vm659_vm15, %v418_v14, %v723_v17  ;;  %vm664_vm1 = vcmp.gt.f32.partialorder %v1611_v22, 0.0  ;;  %v728_v26 = vmul.f32 0.2, %v1611_v22 }
  0xe4   :  { %1528 = vst [vmem:[%s1971_s2 + $0x18] sm:$0xff] %v1384_v19   ;;  %v1379_v28 = vpack.c.bf16 %v787_v25, %v786_v18  ;;  %v819_v29 = vsel %vm691_vm0, %v546_v15, %v755_v21  ;;  %v760_v30 = vmul.f32 0.2, %v1643_v23  ;;  %v431_v31 = vpop.f32.mrf.mxu0  ;;  %v559_v32 = vpop.f32.mrf.mxu1  ;;  %vm696_vm2 = vcmp.gt.f32.partialorder %v1643_v23, 0.0 }
  0xe5   :  { %1544 = vst [vmem:[%s1971_s2 + $0x98] sm:$0xff] %v1464_v24   ;;  %v1459_v33 = vpack.c.bf16 %v819_v29, %v818_v27  ;;  %v792_v34 = vsel %vm664_vm1, %v1611_v22, %v728_v26  ;;  %v726_v35 = vmul.f32 0.2, %v431_v31  ;;  %vm662_vm3 = vcmp.gt.f32.partialorder %v431_v31, 0.0 }
  0xe6   :  { %1527 = vst [vmem:[%s1971_s2 + $0x10] sm:$0xff] %v1379_v28   ;;  %v1612_v36 = vpop.f32.mrf.mxu0  ;;  %v1644_v37 = vpop.f32.mrf.mxu1  ;;  %v824_v39 = vsel %vm696_vm2, %v1643_v23, %v760_v30  ;;  %vm694_vm6 = vcmp.gt.f32.partialorder %v559_v32, 0.0  ;;  %v758_v40 = vmul.f32 0.2, %v559_v32 }
  0xe7   :  { %1543 = vst [vmem:[%s1971_s2 + $0x90] sm:$0xff] %v1459_v33   ;;  %vm665_vm4 = vcmp.gt.f32.partialorder %v1612_v36, 0.0  ;;  %v729_v38 = vmul.f32 0.2, %v1612_v36  ;;  %vm697_vm5 = vcmp.gt.f32.partialorder %v1644_v37, 0.0  ;;  %v790_v46 = vsel %vm662_vm3, %v431_v31, %v726_v35 }
  0xe8   :  { %v761_v41 = vmul.f32 0.2, %v1644_v37  ;;  %v434_v42 = vpop.f32.mrf.mxu0  ;;  %v562_v43 = vpop.f32.mrf.mxu1  ;;  %v822_v55 = vsel %vm694_vm6, %v559_v32, %v758_v40 }
  0xe9   :  { %v793_v44 = vsel %vm665_vm4, %v1612_v36, %v729_v38  ;;  %vm663_vm7 = vcmp.gt.f32.partialorder %v434_v42, 0.0  ;;  %v727_v45 = vmul.f32 0.2, %v434_v42  ;;  %vm695_vm8 = vcmp.gt.f32.partialorder %v562_v43, 0.0 }
  0xea   :  { %v1394_v47 = vpack.c.bf16 %v793_v44, %v792_v34  ;;  %v825_v48 = vsel %vm697_vm5, %v1644_v37, %v761_v41  ;;  %v759_v49 = vmul.f32 0.2, %v562_v43  ;;  %v1615_v50 = vpop.f32.mrf.mxu0  ;;  %v1647_v51 = vpop.f32.mrf.mxu1 }
  0xeb   :  { %v1474_v52 = vpack.c.bf16 %v825_v48, %v824_v39  ;;  %v791_v53 = vsel %vm663_vm7, %v434_v42, %v727_v45  ;;  %vm668_vm9 = vcmp.gt.f32.partialorder %v1615_v50, 0.0  ;;  %v732_v54 = vmul.f32 0.2, %v1615_v50 }
  0xec   :  { %1530 = vst [vmem:[%s1971_s2 + $0x28] sm:$0xff] %v1394_v47   ;;  %v1389_v56 = vpack.c.bf16 %v791_v53, %v790_v46  ;;  %v823_v57 = vsel %vm695_vm8, %v562_v43, %v759_v49  ;;  %v764_v58 = vmul.f32 0.2, %v1647_v51  ;;  %v447_v59 = vpop.f32.mrf.mxu0  ;;  %v575_v60 = vpop.f32.mrf.mxu1  ;;  %vm700_vm10 = vcmp.gt.f32.partialorder %v1647_v51, 0.0 }
  0xed   :  { %1546 = vst [vmem:[%s1971_s2 + $0xa8] sm:$0xff] %v1474_v52   ;;  %v1469_v61 = vpack.c.bf16 %v823_v57, %v822_v55  ;;  %v796_v62 = vsel %vm668_vm9, %v1615_v50, %v732_v54  ;;  %v730_v63 = vmul.f32 0.2, %v447_v59  ;;  %vm666_vm11 = vcmp.gt.f32.partialorder %v447_v59, 0.0 }
  0xee   :  { %1529 = vst [vmem:[%s1971_s2 + $0x20] sm:$0xff] %v1389_v56   ;;  %v1616_v0 = vpop.f32.mrf.mxu0  ;;  %v1648_v1 = vpop.f32.mrf.mxu1  ;;  %v828_v3 = vsel %vm700_vm10, %v1647_v51, %v764_v58  ;;  %vm698_vm14 = vcmp.gt.f32.partialorder %v575_v60, 0.0  ;;  %v762_v4 = vmul.f32 0.2, %v575_v60 }
  0xef   :  { %1545 = vst [vmem:[%s1971_s2 + $0xa0] sm:$0xff] %v1469_v61   ;;  %vm669_vm12 = vcmp.gt.f32.partialorder %v1616_v0, 0.0  ;;  %v733_v2 = vmul.f32 0.2, %v1616_v0  ;;  %vm701_vm13 = vcmp.gt.f32.partialorder %v1648_v1, 0.0  ;;  %v794_v10 = vsel %vm666_vm11, %v447_v59, %v730_v63 }
  0xf0   :  { %v765_v5 = vmul.f32 0.2, %v1648_v1  ;;  %v450_v6 = vpop.f32.mrf.mxu0  ;;  %v578_v7 = vpop.f32.mrf.mxu1  ;;  %v826_v19 = vsel %vm698_vm14, %v575_v60, %v762_v4 }
  0xf1   :  { %v797_v8 = vsel %vm669_vm12, %v1616_v0, %v733_v2  ;;  %vm667_vm15 = vcmp.gt.f32.partialorder %v450_v6, 0.0  ;;  %v731_v9 = vmul.f32 0.2, %v450_v6  ;;  %vm699_vm0 = vcmp.gt.f32.partialorder %v578_v7, 0.0 }
  0xf2   :  { %v1404_v11 = vpack.c.bf16 %v797_v8, %v796_v62  ;;  %v829_v12 = vsel %vm701_vm13, %v1648_v1, %v765_v5  ;;  %v763_v13 = vmul.f32 0.2, %v578_v7  ;;  %v1619_v14 = vpop.f32.mrf.mxu0  ;;  %v1651_v15 = vpop.f32.mrf.mxu1 }
  0xf3   :  { %v1484_v16 = vpack.c.bf16 %v829_v12, %v828_v3  ;;  %v795_v17 = vsel %vm667_vm15, %v450_v6, %v731_v9  ;;  %vm672_vm1 = vcmp.gt.f32.partialorder %v1619_v14, 0.0  ;;  %v736_v18 = vmul.f32 0.2, %v1619_v14 }
  0xf4   :  { %1532 = vst [vmem:[%s1971_s2 + $0x38] sm:$0xff] %v1404_v11   ;;  %v1399_v20 = vpack.c.bf16 %v795_v17, %v794_v10  ;;  %v827_v21 = vsel %vm699_vm0, %v578_v7, %v763_v13  ;;  %v768_v22 = vmul.f32 0.2, %v1651_v15  ;;  %v463_v23 = vpop.f32.mrf.mxu0  ;;  %v591_v24 = vpop.f32.mrf.mxu1  ;;  %vm704_vm2 = vcmp.gt.f32.partialorder %v1651_v15, 0.0 }
  0xf5   :  { %1548 = vst [vmem:[%s1971_s2 + $0xb8] sm:$0xff] %v1484_v16   ;;  %v1479_v25 = vpack.c.bf16 %v827_v21, %v826_v19  ;;  %v800_v26 = vsel %vm672_vm1, %v1619_v14, %v736_v18  ;;  %v734_v27 = vmul.f32 0.2, %v463_v23  ;;  %vm670_vm3 = vcmp.gt.f32.partialorder %v463_v23, 0.0 }
  0xf6   :  { %1531 = vst [vmem:[%s1971_s2 + $0x30] sm:$0xff] %v1399_v20   ;;  %v1620_v28 = vpop.f32.mrf.mxu0  ;;  %v1652_v29 = vpop.f32.mrf.mxu1  ;;  %v832_v31 = vsel %vm704_vm2, %v1651_v15, %v768_v22  ;;  %vm702_vm6 = vcmp.gt.f32.partialorder %v591_v24, 0.0  ;;  %v766_v32 = vmul.f32 0.2, %v591_v24 }
  0xf7   :  { %1547 = vst [vmem:[%s1971_s2 + $0xb0] sm:$0xff] %v1479_v25   ;;  %vm673_vm4 = vcmp.gt.f32.partialorder %v1620_v28, 0.0  ;;  %v737_v30 = vmul.f32 0.2, %v1620_v28  ;;  %vm705_vm5 = vcmp.gt.f32.partialorder %v1652_v29, 0.0  ;;  %v798_v38 = vsel %vm670_vm3, %v463_v23, %v734_v27 }
  0xf8   :  { %v769_v33 = vmul.f32 0.2, %v1652_v29  ;;  %v466_v34 = vpop.f32.mrf.mxu0  ;;  %v594_v35 = vpop.f32.mrf.mxu1  ;;  %v830_v47 = vsel %vm702_vm6, %v591_v24, %v766_v32 }
  0xf9   :  { %v801_v36 = vsel %vm673_vm4, %v1620_v28, %v737_v30  ;;  %vm671_vm7 = vcmp.gt.f32.partialorder %v466_v34, 0.0  ;;  %v735_v37 = vmul.f32 0.2, %v466_v34  ;;  %vm703_vm8 = vcmp.gt.f32.partialorder %v594_v35, 0.0 }
  0xfa   :  { %v1414_v39 = vpack.c.bf16 %v801_v36, %v800_v26  ;;  %v833_v40 = vsel %vm705_vm5, %v1652_v29, %v769_v33  ;;  %v767_v41 = vmul.f32 0.2, %v594_v35  ;;  %v1623_v42 = vpop.f32.mrf.mxu0  ;;  %v1655_v43 = vpop.f32.mrf.mxu1 }
  0xfb   :  { %v1494_v44 = vpack.c.bf16 %v833_v40, %v832_v31  ;;  %v799_v45 = vsel %vm671_vm7, %v466_v34, %v735_v37  ;;  %vm676_vm9 = vcmp.gt.f32.partialorder %v1623_v42, 0.0  ;;  %v740_v46 = vmul.f32 0.2, %v1623_v42 }
  0xfc   :  { %1534 = vst [vmem:[%s1971_s2 + $0x48] sm:$0xff] %v1414_v39   ;;  %v1409_v48 = vpack.c.bf16 %v799_v45, %v798_v38  ;;  %v831_v49 = vsel %vm703_vm8, %v594_v35, %v767_v41  ;;  %v772_v50 = vmul.f32 0.2, %v1655_v43  ;;  %v479_v51 = vpop.f32.mrf.mxu0  ;;  %v607_v52 = vpop.f32.mrf.mxu1  ;;  %vm708_vm10 = vcmp.gt.f32.partialorder %v1655_v43, 0.0 }
  0xfd   :  { %1550 = vst [vmem:[%s1971_s2 + $0xc8] sm:$0xff] %v1494_v44   ;;  %v1489_v53 = vpack.c.bf16 %v831_v49, %v830_v47  ;;  %v804_v54 = vsel %vm676_vm9, %v1623_v42, %v740_v46  ;;  %v738_v55 = vmul.f32 0.2, %v479_v51  ;;  %vm674_vm11 = vcmp.gt.f32.partialorder %v479_v51, 0.0 }
  0xfe   :  { %1533 = vst [vmem:[%s1971_s2 + $0x40] sm:$0xff] %v1409_v48   ;;  %v1624_v56 = vpop.f32.mrf.mxu0  ;;  %v1656_v57 = vpop.f32.mrf.mxu1  ;;  %v836_v59 = vsel %vm708_vm10, %v1655_v43, %v772_v50  ;;  %vm706_vm14 = vcmp.gt.f32.partialorder %v607_v52, 0.0  ;;  %v770_v60 = vmul.f32 0.2, %v607_v52 }
  0xff   :  { %1549 = vst [vmem:[%s1971_s2 + $0xc0] sm:$0xff] %v1489_v53   ;;  %vm677_vm12 = vcmp.gt.f32.partialorder %v1624_v56, 0.0  ;;  %v741_v58 = vmul.f32 0.2, %v1624_v56  ;;  %vm709_vm13 = vcmp.gt.f32.partialorder %v1656_v57, 0.0  ;;  %v802_v2 = vsel %vm674_vm11, %v479_v51, %v738_v55 }
 0x100   :  { %v773_v61 = vmul.f32 0.2, %v1656_v57  ;;  %v482_v62 = vpop.f32.mrf.mxu0  ;;  %v610_v63 = vpop.f32.mrf.mxu1  ;;  %v834_v11 = vsel %vm706_vm14, %v607_v52, %v770_v60 }
 0x101   :  { %v805_v0 = vsel %vm677_vm12, %v1624_v56, %v741_v58  ;;  %vm675_vm15 = vcmp.gt.f32.partialorder %v482_v62, 0.0  ;;  %v739_v1 = vmul.f32 0.2, %v482_v62  ;;  %vm707_vm0 = vcmp.gt.f32.partialorder %v610_v63, 0.0 }
 0x102   :  { %v1424_v3 = vpack.c.bf16 %v805_v0, %v804_v54  ;;  %v837_v4 = vsel %vm709_vm13, %v1656_v57, %v773_v61  ;;  %v771_v5 = vmul.f32 0.2, %v610_v63  ;;  %v1627_v6 = vpop.f32.mrf.mxu0  ;;  %v1659_v7 = vpop.f32.mrf.mxu1 }
 0x103   :  { %v1504_v8 = vpack.c.bf16 %v837_v4, %v836_v59  ;;  %v803_v9 = vsel %vm675_vm15, %v482_v62, %v739_v1  ;;  %vm680_vm1 = vcmp.gt.f32.partialorder %v1627_v6, 0.0  ;;  %v744_v10 = vmul.f32 0.2, %v1627_v6 }
 0x104   :  { %1536 = vst [vmem:[%s1971_s2 + $0x58] sm:$0xff] %v1424_v3   ;;  %v1419_v12 = vpack.c.bf16 %v803_v9, %v802_v2  ;;  %v835_v13 = vsel %vm707_vm0, %v610_v63, %v771_v5  ;;  %v776_v14 = vmul.f32 0.2, %v1659_v7  ;;  %v495_v15 = vpop.f32.mrf.mxu0  ;;  %v623_v16 = vpop.f32.mrf.mxu1  ;;  %vm712_vm2 = vcmp.gt.f32.partialorder %v1659_v7, 0.0 }
 0x105   :  { %1552 = vst [vmem:[%s1971_s2 + $0xd8] sm:$0xff] %v1504_v8   ;;  %v1499_v17 = vpack.c.bf16 %v835_v13, %v834_v11  ;;  %v808_v18 = vsel %vm680_vm1, %v1627_v6, %v744_v10  ;;  %v742_v19 = vmul.f32 0.2, %v495_v15  ;;  %vm678_vm3 = vcmp.gt.f32.partialorder %v495_v15, 0.0 }
 0x106   :  { %1535 = vst [vmem:[%s1971_s2 + $0x50] sm:$0xff] %v1419_v12   ;;  %v1628_v20 = vpop.f32.mrf.mxu0  ;;  %v1660_v21 = vpop.f32.mrf.mxu1  ;;  %v840_v23 = vsel %vm712_vm2, %v1659_v7, %v776_v14  ;;  %vm710_vm6 = vcmp.gt.f32.partialorder %v623_v16, 0.0  ;;  %v774_v24 = vmul.f32 0.2, %v623_v16 }
 0x107   :  { %1551 = vst [vmem:[%s1971_s2 + $0xd0] sm:$0xff] %v1499_v17   ;;  %vm681_vm4 = vcmp.gt.f32.partialorder %v1628_v20, 0.0  ;;  %v745_v22 = vmul.f32 0.2, %v1628_v20  ;;  %vm713_vm5 = vcmp.gt.f32.partialorder %v1660_v21, 0.0  ;;  %v806_v30 = vsel %vm678_vm3, %v495_v15, %v742_v19 }
 0x108   :  { %v777_v25 = vmul.f32 0.2, %v1660_v21  ;;  %v498_v26 = vpop.f32.mrf.mxu0  ;;  %v626_v27 = vpop.f32.mrf.mxu1  ;;  %v838_v39 = vsel %vm710_vm6, %v623_v16, %v774_v24 }
 0x109   :  { %v809_v28 = vsel %vm681_vm4, %v1628_v20, %v745_v22  ;;  %vm679_vm7 = vcmp.gt.f32.partialorder %v498_v26, 0.0  ;;  %v743_v29 = vmul.f32 0.2, %v498_v26  ;;  %vm711_vm8 = vcmp.gt.f32.partialorder %v626_v27, 0.0 }
 0x10a   :  { %v1434_v31 = vpack.c.bf16 %v809_v28, %v808_v18  ;;  %v841_v32 = vsel %vm713_vm5, %v1660_v21, %v777_v25  ;;  %v775_v33 = vmul.f32 0.2, %v626_v27  ;;  %v1631_v34 = vpop.f32.mrf.mxu0  ;;  %v1663_v35 = vpop.f32.mrf.mxu1 }
 0x10b   :  { %v1514_v36 = vpack.c.bf16 %v841_v32, %v840_v23  ;;  %v807_v37 = vsel %vm679_vm7, %v498_v26, %v743_v29  ;;  %vm684_vm9 = vcmp.gt.f32.partialorder %v1631_v34, 0.0  ;;  %v748_v38 = vmul.f32 0.2, %v1631_v34 }
 0x10c   :  { %1538 = vst [vmem:[%s1971_s2 + $0x68] sm:$0xff] %v1434_v31   ;;  %v1429_v40 = vpack.c.bf16 %v807_v37, %v806_v30  ;;  %v839_v41 = vsel %vm711_vm8, %v626_v27, %v775_v33  ;;  %v511_v42 = vpop.f32.mrf.mxu0  ;;  %v639_v43 = vpop.f32.mrf.mxu1  ;;  %vm716_vm10 = vcmp.gt.f32.partialorder %v1663_v35, 0.0  ;;  %v780_v46 = vmul.f32 0.2, %v1663_v35 }
 0x10d   :  { %1554 = vst [vmem:[%s1971_s2 + $0xe8] sm:$0xff] %v1514_v36   ;;  %v1509_v44 = vpack.c.bf16 %v839_v41, %v838_v39  ;;  %v812_v45 = vsel %vm684_vm9, %v1631_v34, %v748_v38  ;;  %v746_v49 = vmul.f32 0.2, %v511_v42  ;;  %vm682_vm13 = vcmp.gt.f32.partialorder %v511_v42, 0.0 }
 0x10e   :  { %1537 = vst [vmem:[%s1971_s2 + $0x60] sm:$0xff] %v1429_v40   ;;  %v1632_v47 = vpop.f32.mrf.mxu0  ;;  %v1664_v48 = vpop.f32.mrf.mxu1  ;;  %vm714_vm14 = vcmp.gt.f32.partialorder %v639_v43, 0.0  ;;  %v778_v51 = vmul.f32 0.2, %v639_v43  ;;  %v844_v57 = vsel %vm716_vm10, %v1663_v35, %v780_v46 }
 0x10f   :  { %1553 = vst [vmem:[%s1971_s2 + $0xe0] sm:$0xff] %v1509_v44   ;;  %vm685_vm11 = vcmp.gt.f32.partialorder %v1632_v47, 0.0  ;;  %v749_v50 = vmul.f32 0.2, %v1632_v47  ;;  %vm717_vm12 = vcmp.gt.f32.partialorder %v1664_v48, 0.0  ;;  %v810_v61 = vsel %vm682_vm13, %v511_v42, %v746_v49 }
 0x110   :  { %v781_v52 = vmul.f32 0.2, %v1664_v48  ;;  %v514_v53 = vpop.f32.mrf.mxu0  ;;  %v642_v54 = vpop.f32.mrf.mxu1  ;;  %v842_v0 = vsel %vm714_vm14, %v639_v43, %v778_v51 }
 0x111   :  { %v813_v55 = vsel %vm685_vm11, %v1632_v47, %v749_v50  ;;  %vm683_vm15 = vcmp.gt.f32.partialorder %v514_v53, 0.0  ;;  %v747_v56 = vmul.f32 0.2, %v514_v53  ;;  %vm715_vm0 = vcmp.gt.f32.partialorder %v642_v54, 0.0 }
 0x112   :  { %v1444_v58 = vpack.c.bf16 %v813_v55, %v812_v45  ;;  %v845_v59 = vsel %vm717_vm12, %v1664_v48, %v781_v52  ;;  %v779_v60 = vmul.f32 0.2, %v642_v54 }
 0x113   :  { %v1524_v62 = vpack.c.bf16 %v845_v59, %v844_v57  ;;  %v811_v63 = vsel %vm683_vm15, %v514_v53, %v747_v56 }
 0x114   :  { %1540 = vst [vmem:[%s1971_s2 + $0x78] sm:$0xff] %v1444_v58   ;;  %v1439_v1 = vpack.c.bf16 %v811_v63, %v810_v61  ;;  %v843_v2 = vsel %vm715_vm0, %v642_v54, %v779_v60 }
 0x115   :  { %1556 = vst [vmem:[%s1971_s2 + $0xf8] sm:$0xff] %v1524_v62   ;;  %v1519_v3 = vpack.c.bf16 %v843_v2, %v842_v0 }
 0x116   :  { %1539 = vst [vmem:[%s1971_s2 + $0x70] sm:$0xff] %v1439_v1  }
 0x117   :  { %1555 = vst [vmem:[%s1971_s2 + $0xf0] sm:$0xff] %v1519_v3  }

// kernel: _lambda_.13
= control target key start
LH: loop header
LB: loop body
LE: loop exit
PB: predicated region body
PF: predicated region fallthrough
CT: control target
= control target key end

     0   :  { %v910_v16 = vmov 0.0   ;;  %s1048_s1 = inlined_call_operand.vmem [shape: bf16[128,128], index: 1, kind: input, shape index: {}]   ;;  %s1049_s0 = inlined_call_operand.vmem [shape: bf16[128,128], index: 0, kind: input, shape index: {}]   ;;  %s1050_s2 = inlined_call_operand.vmem [shape: bf16[128,128], index: 2, kind: output, shape index: {}]  }
   0x1   :  { %v892_v0 = vld [vmem:[%s1048_s1 + $0x38] sm:$0xff]   ;;  %v893_v1 = vld [vmem:[%s1048_s1 + $0x30] sm:$0xff]   ;;  %v894_v2 = vld [vmem:[%s1048_s1 + $0x28] sm:$0xff]   ;;  %16 = vst [vmem:[#allocation2] sm:$0x1] %v910_v16 }
   0x2   :  { %843 = vmatprep.subr.bf16.mxu0 %v892_v0  ;;  %875 = vmatprep.subr.bf16.mxu1 %v892_v0  ;;  %v895_v3 = vld [vmem:[%s1048_s1 + $0x20] sm:$0xff]   ;;  %v896_v5 = vld [vmem:[%s1048_s1 + $0x18] sm:$0xff]   ;;  %v897_v7 = vld [vmem:[%s1048_s1 + $0x10] sm:$0xff]   ;;  %17 = vst [vmem:[#allocation3] sm:$0x1] %v910_v16 }
   0x3   :  { %844 = vmatpush3.bf16.msra.mxu0 %v892_v0  ;;  %883 = vmatpush3.bf16.msra.mxu1 %v892_v0  ;;  %v900_v4 = vld [vmem:[%s1049_s0] sm:$0xff]   ;;  %v898_v8 = vld [vmem:[%s1048_s1 + $0x8] sm:$0xff]   ;;  %v902_v12 = vld [vmem:[%s1049_s0 + $0x10] sm:$0xff]  }
   0x4   :  { %845 = vmatprep.subr.bf16.mxu0 %v893_v1  ;;  %876 = vmatprep.subr.bf16.mxu1 %v893_v1  ;;  %v904_v6 = vld [vmem:[%s1049_s0 + $0x20] sm:$0xff]   ;;  %v901_v10 = vld [vmem:[%s1049_s0 + $0x8] sm:$0xff]   ;;  %v906_v13 = vld [vmem:[%s1049_s0 + $0x30] sm:$0xff]  }
   0x5   :  { %859 = vmatprep.mubr.bf16.mxu0 %v900_v4  ;;  %867 = vmatprep.mubr.bf16.mxu1 %v904_v6  ;;  %v899_v9 = vld [vmem:[%s1048_s1] sm:$0xff]   ;;  %v905_v11 = vld [vmem:[%s1049_s0 + $0x28] sm:$0xff]   ;;  %v903_v14 = vld [vmem:[%s1049_s0 + $0x18] sm:$0xff]  }
   0x6   :  { %v907_v15 = vld [vmem:[%s1049_s0 + $0x38] sm:$0xff]  }
   0x7   :  { %846 = vmatpush3.bf16.msra.mxu0 %v893_v1  ;;  %884 = vmatpush3.bf16.msra.mxu1 %v893_v1 }
   0x8   :  { %847 = vmatprep.subr.bf16.mxu0 %v894_v2  ;;  %877 = vmatprep.subr.bf16.mxu1 %v894_v2 }
   0xb   :  { %848 = vmatpush3.bf16.msra.mxu0 %v894_v2  ;;  %885 = vmatpush3.bf16.msra.mxu1 %v894_v2 }
   0xc   :  { %849 = vmatprep.subr.bf16.mxu0 %v895_v3  ;;  %878 = vmatprep.subr.bf16.mxu1 %v895_v3 }
   0xf   :  { %850 = vmatpush3.bf16.msra.mxu0 %v895_v3  ;;  %886 = vmatpush3.bf16.msra.mxu1 %v895_v3 }
  0x10   :  { %851 = vmatprep.subr.bf16.mxu0 %v896_v5  ;;  %879 = vmatprep.subr.bf16.mxu1 %v896_v5 }
  0x13   :  { %852 = vmatpush3.bf16.msra.mxu0 %v896_v5  ;;  %887 = vmatpush3.bf16.msra.mxu1 %v896_v5 }
  0x14   :  { %853 = vmatprep.subr.bf16.mxu0 %v897_v7  ;;  %880 = vmatprep.subr.bf16.mxu1 %v897_v7 }
  0x17   :  { %854 = vmatpush3.bf16.msra.mxu0 %v897_v7  ;;  %888 = vmatpush3.bf16.msra.mxu1 %v897_v7 }
  0x18   :  { %855 = vmatprep.subr.bf16.mxu0 %v898_v8  ;;  %881 = vmatprep.subr.bf16.mxu1 %v898_v8 }
  0x1b   :  { %856 = vmatpush3.bf16.msra.mxu0 %v898_v8  ;;  %889 = vmatpush3.bf16.msra.mxu1 %v898_v8 }
  0x1c   :  { %857 = vmatprep.subr.bf16.mxu0 %v899_v9  ;;  %882 = vmatprep.subr.bf16.mxu1 %v899_v9 }
  0x1f   :  { %858 = vmatpush3.bf16.msra.mxu0 %v899_v9  ;;  %890 = vmatpush3.bf16.msra.mxu1 %v899_v9 }
  0x22   :  { %860 = vmatmul.mubr.bf16.vlgmr.msra.gmra.mxu0 %v901_v10  ;;  %868 = vmatmul.mubr.bf16.vlgmr.msra.gmra.mxu1 %v905_v11 }
  0x23   :  { %863 = vmatprep.mubr.bf16.mxu0 %v902_v12  ;;  %871 = vmatprep.mubr.bf16.mxu1 %v906_v13 }
  0x2a   :  { %864 = vmatmul.mubr.bf16.gmra.mxu0 %v903_v14  ;;  %872 = vmatmul.mubr.bf16.gmra.mxu1 %v907_v15 }
  0xe2   :  { %v861_v17 = vpop.f32.mrf.mxu0  ;;  %v869_v18 = vpop.f32.mrf.mxu1 }
  0xe3   :  { %v270_v33 = vmul.f32 %v861_v17, %v861_v17  ;;  %v278_v3 = vmul.f32 %v869_v18, %v869_v18 }
  0xe4   :  { %v180_v19 = vpop.f32.mrf.mxu0  ;;  %v212_v20 = vpop.f32.mrf.mxu1 }
  0xe5   :  { %v268_v27 = vmul.f32 %v180_v19, %v180_v19  ;;  %v276_v61 = vmul.f32 %v212_v20, %v212_v20 }
  0xe6   :  { %v862_v21 = vpop.f32.mrf.mxu0  ;;  %v870_v22 = vpop.f32.mrf.mxu1 }
  0xe7   :  { %v974_v23 = vpack.c.bf16 %v862_v21, %v861_v17  ;;  %v976_v24 = vpack.c.bf16 %v870_v22, %v869_v18  ;;  %v271_v39 = vmul.f32 %v862_v21, %v862_v21  ;;  %v279_v6 = vmul.f32 %v870_v22, %v870_v22 }
  0xe8   :  { %v183_v25 = vpop.f32.mrf.mxu0  ;;  %v215_v26 = vpop.f32.mrf.mxu1 }
  0xe9   :  { %v244_v28 = vadd.f32 %v183_v25, %v180_v19  ;;  %v269_v29 = vmul.f32 %v183_v25, %v183_v25  ;;  %v978_v30 = vpack.c.bf16 %v183_v25, %v180_v19  ;;  %v980_v36 = vpack.c.bf16 %v215_v26, %v212_v20 }
  0xea   :  { %v865_v31 = vpop.f32.mrf.mxu0  ;;  %v873_v32 = vpop.f32.mrf.mxu1  ;;  %v277_v0 = vmul.f32 %v215_v26, %v215_v26 }
  0xeb   :  { %v245_v34 = vadd.f32 %v861_v17, %v244_v28  ;;  %v284_v35 = vadd.f32 %v269_v29, %v268_v27  ;;  %v274_v55 = vmul.f32 %v865_v31, %v865_v31  ;;  %v282_v16 = vmul.f32 %v873_v32, %v873_v32 }
  0xec   :  { %v196_v37 = vpop.f32.mrf.mxu0  ;;  %v982_v38 = vpop.f32.mrf.mxu1 }
  0xed   :  { %v285_v40 = vadd.f32 %v284_v35, %v270_v33  ;;  %v246_v41 = vadd.f32 %v862_v21, %v245_v34  ;;  %v272_v44 = vmul.f32 %v196_v37, %v196_v37  ;;  %v280_v10 = vmul.f32 %v982_v38, %v982_v38  ;;  %v243_v34 = vld [vmem:[#allocation2] sm:$0x1] }
  0xee   :  { %v866_v42 = vpop.f32.mrf.mxu0  ;;  %v874_v47 = vpop.f32.mrf.mxu1 }
  0xef   :  { %v247_v43 = vadd.f32 %v246_v41, %v196_v37  ;;  %v286_v45 = vadd.f32 %v285_v40, %v271_v39  ;;  %v984_v46 = vpack.c.bf16 %v866_v42, %v865_v31  ;;  %v986_v49 = vpack.c.bf16 %v874_v47, %v873_v32  ;;  %v267_v41 = vld [vmem:[#allocation3] sm:$0x1] }
  0xf0   :  { %v199_v48 = vpop.f32.mrf.mxu0  ;;  %v275_v58 = vmul.f32 %v866_v42, %v866_v42  ;;  %v231_v9 = vpop.f32.mrf.mxu1 }
  0xf1   :  { %v287_v50 = vadd.f32 %v286_v45, %v272_v44  ;;  %v248_v51 = vadd.f32 %v247_v43, %v199_v48  ;;  %v273_v52 = vmul.f32 %v199_v48, %v199_v48  ;;  %v988_v53 = vpack.c.bf16 %v199_v48, %v196_v37 }
  0xf2   :  { %v281_v14 = vmul.f32 %v231_v9, %v231_v9 }
  0xf3   :  { %v249_v54 = vadd.f32 %v865_v31, %v248_v51  ;;  %v288_v56 = vadd.f32 %v287_v50, %v273_v52  ;;  %v437_v51 = vlaneseq }
  0xf5   :  { %v250_v57 = vadd.f32 %v866_v42, %v249_v54  ;;  %v289_v59 = vadd.f32 %v288_v56, %v274_v55  ;;  %v438_v55 = vshrl.u32 %v437_v51, 7 }
  0xf7   :  { %v251_v60 = vadd.f32 %v250_v57, %v212_v20  ;;  %v290_v62 = vadd.f32 %v289_v59, %v275_v58  ;;  %v283_v20 = vmul.f32 %v874_v47, %v874_v47  ;;  %v439_v56 = vsub.s32 0, %v438_v55 }
  0xf8   :  { %v740_v57 = vunpack.c.l.bf16 %v974_v23  ;;  %v727_v58 = vpack.c.bf16 %v231_v9, %v982_v38 }
  0xf9   :  { %v252_v63 = vadd.f32 %v251_v60, %v215_v26  ;;  %v291_v1 = vadd.f32 %v290_v62, %v276_v61  ;;  %v741_v60 = vunpack.c.h.bf16 %v974_v23  ;;  %v736_v61 = vunpack.c.l.bf16 %v978_v30 }
  0xfa   :  { %v756_v62 = vunpack.c.l.bf16 %v976_v24  ;;  %v764_v23 = vunpack.c.l.bf16 %v986_v49 }
  0xfb   :  { %v253_v2 = vadd.f32 %v869_v18, %v252_v63  ;;  %v292_v4 = vadd.f32 %v291_v1, %v277_v0  ;;  %v757_v63 = vunpack.c.h.bf16 %v976_v24  ;;  %v737_v0 = vunpack.c.h.bf16 %v978_v30 }
  0xfc   :  { %v748_v1 = vunpack.c.l.bf16 %v984_v46  ;;  %v761_v24 = vunpack.c.h.bf16 %v727_v58 }
  0xfd   :  { %v254_v5 = vadd.f32 %v870_v22, %v253_v2  ;;  %v293_v7 = vadd.f32 %v292_v4, %v278_v3  ;;  %v752_v2 = vunpack.c.l.bf16 %v980_v36  ;;  %v753_v3 = vunpack.c.h.bf16 %v980_v36 }
  0xfe   :  { %v749_v4 = vunpack.c.h.bf16 %v984_v46 }
  0xff   :  { %v255_v8 = vadd.f32 %v254_v5, %v982_v38  ;;  %v294_v11 = vadd.f32 %v293_v7, %v279_v6  ;;  %v744_v38 = vunpack.c.l.bf16 %v988_v53  ;;  %v765_v5 = vunpack.c.h.bf16 %v986_v49 }
 0x100   :  { %v745_v6 = vunpack.c.h.bf16 %v988_v53  ;;  %v760_v7 = vunpack.c.l.bf16 %v727_v58 }
 0x101   :  { %v256_v12 = vadd.f32 %v255_v8, %v231_v9  ;;  %v295_v13 = vadd.f32 %v294_v11, %v280_v10 }
 0x103   :  { %v257_v15 = vadd.f32 %v873_v32, %v256_v12  ;;  %v296_v17 = vadd.f32 %v295_v13, %v281_v14 }
 0x105   :  { %v258_v19 = vadd.f32 %v874_v47, %v257_v15  ;;  %v297_v18 = vadd.f32 %v296_v17, %v282_v16 }
 0x107   :  { %v259_v21 = vrot.slane %v258_v19, 4  ;;  %v298_v25 = vadd.f32 %v297_v18, %v283_v20 }
 0x109   :  { %v260_v22 = vadd.f32 %v259_v21, %v258_v19  ;;  %v299_v26 = vrot.slane %v298_v25, 4 }
 0x10b   :  { %v261_v27 = vrot.slane %v260_v22, 2  ;;  %v300_v28 = vadd.f32 %v299_v26, %v298_v25 }
 0x10d   :  { %v262_v29 = vadd.f32 %v261_v27, %v260_v22  ;;  %v301_v31 = vrot.slane %v300_v28, 2 }
 0x10f   :  { %v263_v33 = vrot.slane %v262_v29, 1  ;;  %v302_v35 = vadd.f32 %v301_v31, %v300_v28 }
 0x111   :  { %v264_v37 = vadd.f32 %v263_v33, %v262_v29  ;;  %v303_v39 = vrot.slane %v302_v35, 1 }
 0x113   :  { %v265_v40 = vadd.f32 %v264_v37, %v243_v34  ;;  %v304_v32 = vadd.f32 %v303_v39, %v302_v35 }
 0x115   :  { %266 = vst [vmem:[#allocation2] sm:$0x1] %v265_v40  ;;  %v305_v42 = vadd.f32 %v304_v32, %v267_v41 }
 0x117   :  { %306 = vst [vmem:[#allocation3] sm:$0x1] %v305_v42 }
 0x11c   :  { %v395_v43 = vld [vmem:[#allocation2] sm:$0x1] }
 0x11d   :  { %v396_v44 = vmul.f32 0.0078125, %v395_v43 }
 0x11e   :  { %v397_v45 = vld [vmem:[#allocation3] sm:$0x1] }
 0x11f   :  { %v399_v47 = vmul.f32 %v396_v44, %v396_v44  ;;  %v398_v48 = vmul.f32 0.0078125, %v397_v45  ;;  %v440_v59 = vrot.slane %v396_v44, %v439_v56 }
 0x121   :  { %v400_v50 = vsub.f32 %v398_v48, %v399_v47  ;;  %v442_v8 = vsub.f32 %v736_v61, %v440_v59  ;;  %v443_v30 = vsub.f32 %v737_v0, %v440_v59  ;;  %v444_v9 = vsub.f32 %v740_v57, %v440_v59 }
 0x122   :  { %v445_v10 = vsub.f32 %v741_v60, %v440_v59  ;;  %v446_v11 = vsub.f32 %v744_v38, %v440_v59  ;;  %v447_v13 = vsub.f32 %v745_v6, %v440_v59  ;;  %v448_v36 = vsub.f32 %v748_v1, %v440_v59 }
 0x123   :  { %v401_v52 = vmax.f32 %v400_v50, 0.0  ;;  %v449_v14 = vsub.f32 %v749_v4, %v440_v59  ;;  %v450_v46 = vsub.f32 %v752_v2, %v440_v59  ;;  %v451_v15 = vsub.f32 %v753_v3, %v440_v59 }
 0x124   :  { %v452_v16 = vsub.f32 %v756_v62, %v440_v59  ;;  %v453_v17 = vsub.f32 %v757_v63, %v440_v59  ;;  %v454_v20 = vsub.f32 %v760_v7, %v440_v59  ;;  %v455_v49 = vsub.f32 %v761_v24, %v440_v59 }
 0x125   :  { %v402_v54 = vadd.f32 1e-05, %v401_v52  ;;  %v456_v18 = vsub.f32 %v764_v23, %v440_v59  ;;  %v457_v53 = vsub.f32 %v765_v5, %v440_v59 }
 0x127   :  { %908 = vrsqrt.f32 %v402_v54 }
 0x134   :  { %v909_v12 = vpop.eup %908 }
 0x135   :  { %v462_v19 = vrot.slane %v909_v12, %v439_v56 }
 0x137   :  { %v464_v21 = vmul.f32 %v462_v19, %v442_v8  ;;  %v465_v25 = vmul.f32 %v462_v19, %v443_v30  ;;  %v466_v22 = vmul.f32 %v462_v19, %v444_v9  ;;  %v467_v26 = vmul.f32 %v462_v19, %v445_v10 }
 0x138   :  { %v468_v27 = vmul.f32 %v462_v19, %v446_v11  ;;  %v469_v28 = vmul.f32 %v462_v19, %v447_v13  ;;  %v470_v29 = vmul.f32 %v462_v19, %v448_v36  ;;  %v471_v31 = vmul.f32 %v462_v19, %v449_v14 }
 0x139   :  { %v472_v33 = vmul.f32 %v462_v19, %v450_v46  ;;  %v473_v34 = vmul.f32 %v462_v19, %v451_v15  ;;  %v474_v35 = vmul.f32 %v462_v19, %v452_v16  ;;  %v475_v37 = vmul.f32 %v462_v19, %v453_v17 }
 0x13a   :  { %v476_v39 = vmul.f32 %v462_v19, %v454_v20  ;;  %v477_v40 = vmul.f32 %v462_v19, %v455_v49  ;;  %v478_v41 = vmul.f32 %v462_v19, %v456_v18  ;;  %v479_v32 = vmul.f32 %v462_v19, %v457_v53 }
 0x13b   :  { %vm480_vm0 = vcmp.gt.f32.partialorder %v464_v21, 0.0  ;;  %vm481_vm1 = vcmp.gt.f32.partialorder %v465_v25, 0.0  ;;  %vm482_vm2 = vcmp.gt.f32.partialorder %v466_v22, 0.0  ;;  %vm483_vm3 = vcmp.gt.f32.partialorder %v467_v26, 0.0 }
 0x13c   :  { %vm484_vm4 = vcmp.gt.f32.partialorder %v468_v27, 0.0  ;;  %vm485_vm5 = vcmp.gt.f32.partialorder %v469_v28, 0.0  ;;  %vm486_vm6 = vcmp.gt.f32.partialorder %v470_v29, 0.0  ;;  %vm487_vm7 = vcmp.gt.f32.partialorder %v471_v31, 0.0 }
 0x13d   :  { %vm488_vm8 = vcmp.gt.f32.partialorder %v472_v33, 0.0  ;;  %vm489_vm9 = vcmp.gt.f32.partialorder %v473_v34, 0.0  ;;  %vm490_vm10 = vcmp.gt.f32.partialorder %v474_v35, 0.0  ;;  %vm491_vm11 = vcmp.gt.f32.partialorder %v475_v37, 0.0 }
 0x13e   :  { %vm492_vm12 = vcmp.gt.f32.partialorder %v476_v39, 0.0  ;;  %vm493_vm13 = vcmp.gt.f32.partialorder %v477_v40, 0.0  ;;  %vm494_vm14 = vcmp.gt.f32.partialorder %v478_v41, 0.0  ;;  %vm495_vm15 = vcmp.gt.f32.partialorder %v479_v32, 0.0 }
 0x13f   :  { %v496_v42 = vmul.f32 0.2, %v464_v21  ;;  %v497_v43 = vmul.f32 0.2, %v465_v25  ;;  %v498_v44 = vmul.f32 0.2, %v466_v22 }
 0x140   :  { %v499_v45 = vmul.f32 0.2, %v467_v26  ;;  %v500_v47 = vmul.f32 0.2, %v468_v27  ;;  %v501_v48 = vmul.f32 0.2, %v469_v28 }
 0x141   :  { %v502_v50 = vmul.f32 0.2, %v470_v29  ;;  %v503_v51 = vmul.f32 0.2, %v471_v31  ;;  %v504_v52 = vmul.f32 0.2, %v472_v33  ;;  %v512_v54 = vsel %vm480_vm0, %v464_v21, %v496_v42 }
 0x142   :  { %v505_v55 = vmul.f32 0.2, %v473_v34  ;;  %v506_v56 = vmul.f32 0.2, %v474_v35  ;;  %v507_v57 = vmul.f32 0.2, %v475_v37  ;;  %v513_v58 = vsel %vm481_vm1, %v465_v25, %v497_v43 }
 0x143   :  { %v508_v59 = vmul.f32 0.2, %v476_v39  ;;  %v509_v60 = vmul.f32 0.2, %v477_v40  ;;  %v510_v61 = vmul.f32 0.2, %v478_v41  ;;  %v514_v62 = vsel %vm482_vm2, %v466_v22, %v498_v44 }
 0x144   :  { %v511_v63 = vmul.f32 0.2, %v479_v32  ;;  %v515_v0 = vsel %vm483_vm3, %v467_v26, %v499_v45  ;;  %v516_v1 = vsel %vm484_vm4, %v468_v27, %v500_v47  ;;  %v517_v2 = vsel %vm485_vm5, %v469_v28, %v501_v48 }
 0x145   :  { %v518_v3 = vsel %vm486_vm6, %v470_v29, %v502_v50  ;;  %v519_v4 = vsel %vm487_vm7, %v471_v31, %v503_v51  ;;  %v520_v38 = vsel %vm488_vm8, %v472_v33, %v504_v52  ;;  %v521_v23 = vsel %vm489_vm9, %v473_v34, %v505_v55 }
 0x146   :  { %v522_v5 = vsel %vm490_vm10, %v474_v35, %v506_v56  ;;  %v523_v6 = vsel %vm491_vm11, %v475_v37, %v507_v57  ;;  %v524_v7 = vsel %vm492_vm12, %v476_v39, %v508_v59  ;;  %v525_v24 = vsel %vm493_vm13, %v477_v40, %v509_v60 }
 0x147   :  { %v526_v8 = vsel %vm494_vm14, %v478_v41, %v510_v61  ;;  %v527_v30 = vsel %vm495_vm15, %v479_v32, %v511_v63  ;;  %v769_v9 = vpack.c.bf16 %v513_v58, %v512_v54  ;;  %v774_v10 = vpack.c.bf16 %v515_v0, %v514_v62 }
 0x148   :  { %v779_v11 = vpack.c.bf16 %v517_v2, %v516_v1  ;;  %v784_v12 = vpack.c.bf16 %v519_v4, %v518_v3  ;;  %v789_v13 = vpack.c.bf16 %v521_v23, %v520_v38  ;;  %v794_v36 = vpack.c.bf16 %v523_v6, %v522_v5 }
 0x149   :  { %770 = vst [vmem:[%s1050_s2] sm:$0xff] %v769_v9   ;;  %820 = vst [vmem:[%s1050_s2 + $0x8] sm:$0xff] %v774_v10   ;;  %v799_v14 = vpack.c.bf16 %v525_v24, %v524_v7  ;;  %v804_v46 = vpack.c.bf16 %v527_v30, %v526_v8 }
 0x14a   :  { %821 = vst [vmem:[%s1050_s2 + $0x10] sm:$0xff] %v779_v11   ;;  %822 = vst [vmem:[%s1050_s2 + $0x18] sm:$0xff] %v784_v12  }
 0x14b   :  { %823 = vst [vmem:[%s1050_s2 + $0x20] sm:$0xff] %v789_v13   ;;  %824 = vst [vmem:[%s1050_s2 + $0x28] sm:$0xff] %v794_v36  }
 0x14c   :  { %825 = vst [vmem:[%s1050_s2 + $0x30] sm:$0xff] %v799_v14   ;;  %826 = vst [vmem:[%s1050_s2 + $0x38] sm:$0xff] %v804_v46  }

// kernel: _lambda_.14
= control target key start
LH: loop header
LB: loop body
LE: loop exit
PB: predicated region body
PF: predicated region fallthrough
CT: control target
= control target key end

     0   :  { %v486_v20 = vmov 0.0   ;;  %s568_s1 = inlined_call_operand.vmem [shape: bf16[256,128], index: 1, kind: input, shape index: {}]   ;;  %s569_s0 = inlined_call_operand.vmem [shape: bf16[32,256], index: 0, kind: input, shape index: {}]   ;;  %s570_s2 = inlined_call_operand.vmem [shape: bf16[32,128], index: 2, kind: output, shape index: {}]  }
   0x1   :  { %v462_v0 = vld [vmem:[%s568_s1 + $0x78] sm:$0xff]   ;;  %v464_v2 = vld [vmem:[%s568_s1 + $0x70] sm:$0xff]   ;;  %v466_v4 = vld [vmem:[%s568_s1 + $0x68] sm:$0xff]   ;;  %16 = vst [vmem:[#allocation2] sm:$0x1] %v486_v20 }
   0x2   :  { %v463_v1 = vld [vmem:[%s568_s1 + $0x38] sm:$0xff]   ;;  %417 = vmatprep.subr.bf16.mxu0 %v462_v0  ;;  %445 = vmatprep.subr.bf16.mxu1 %v462_v0  ;;  %v465_v3 = vld [vmem:[%s568_s1 + $0x30] sm:$0xff]   ;;  %v467_v5 = vld [vmem:[%s568_s1 + $0x28] sm:$0xff]   ;;  %17 = vst [vmem:[#allocation3] sm:$0x1] %v486_v20 }
   0x3   :  { %418 = vmatpush3.bf16.msra.mxu0 %v463_v1  ;;  %453 = vmatpush3.bf16.msra.mxu1 %v463_v1  ;;  %v468_v6 = vld [vmem:[%s568_s1 + $0x60] sm:$0xff]   ;;  %v470_v8 = vld [vmem:[%s568_s1 + $0x58] sm:$0xff]   ;;  %v472_v10 = vld [vmem:[%s568_s1 + $0x50] sm:$0xff]  }
   0x4   :  { %419 = vmatprep.subr.bf16.mxu0 %v464_v2  ;;  %446 = vmatprep.subr.bf16.mxu1 %v464_v2  ;;  %v469_v7 = vld [vmem:[%s568_s1 + $0x20] sm:$0xff]   ;;  %v471_v9 = vld [vmem:[%s568_s1 + $0x18] sm:$0xff]   ;;  %v473_v13 = vld [vmem:[%s568_s1 + $0x10] sm:$0xff]   ;;  %v293_v2 = vlaneseq }
   0x5   :  { %v480_v11 = vld [vmem:[%s569_s0 + $0x4] ss:$8 sps:$4 sm:$0xff]   ;;  %v483_v12 = vld [vmem:[%s569_s0 + $0x14] ss:$8 sps:$4 sm:$0xff]   ;;  %v478_v18 = vld [vmem:[%s569_s0] ss:$8 sps:$4 sm:$0xff]  }
   0x6   :  { %v474_v14 = vld [vmem:[%s568_s1 + $0x48] sm:$0xff]   ;;  %202 = vmatprep.mubr.bf16.mxu0 %v480_v11  ;;  %210 = vmatprep.mubr.bf16.mxu1 %v483_v12  ;;  %v476_v16 = vld [vmem:[%s568_s1 + $0x40] sm:$0xff]   ;;  %v481_v19 = vld [vmem:[%s569_s0 + $0x10] ss:$8 sps:$4 sm:$0xff]  }
   0x7   :  { %420 = vmatpush3.bf16.msra.mxu0 %v465_v3  ;;  %454 = vmatpush3.bf16.msra.mxu1 %v465_v3  ;;  %v475_v15 = vld [vmem:[%s568_s1 + $0x8] sm:$0xff]   ;;  %v477_v17 = vld [vmem:[%s568_s1] sm:$0xff]  }
   0x8   :  { %421 = vmatprep.subr.bf16.mxu0 %v466_v4  ;;  %447 = vmatprep.subr.bf16.mxu1 %v466_v4  ;;  %v219_v52 = vld [vmem:[#allocation2] sm:$0x1]  ;;  %v294_v4 = vshrl.u32 %v293_v2, 7 }
   0x9   :  { %v231_v55 = vld [vmem:[#allocation3] sm:$0x1] }
   0xb   :  { %422 = vmatpush3.bf16.msra.mxu0 %v467_v5  ;;  %455 = vmatpush3.bf16.msra.mxu1 %v467_v5  ;;  %v295_v5 = vsub.s32 0, %v294_v4 }
   0xc   :  { %423 = vmatprep.subr.bf16.mxu0 %v468_v6  ;;  %448 = vmatprep.subr.bf16.mxu1 %v468_v6 }
   0xf   :  { %424 = vmatpush3.bf16.msra.mxu0 %v469_v7  ;;  %456 = vmatpush3.bf16.msra.mxu1 %v469_v7 }
  0x10   :  { %425 = vmatprep.subr.bf16.mxu0 %v470_v8  ;;  %449 = vmatprep.subr.bf16.mxu1 %v470_v8 }
  0x13   :  { %426 = vmatpush3.bf16.msra.mxu0 %v471_v9  ;;  %457 = vmatpush3.bf16.msra.mxu1 %v471_v9 }
  0x14   :  { %427 = vmatprep.subr.bf16.mxu0 %v472_v10  ;;  %450 = vmatprep.subr.bf16.mxu1 %v472_v10 }
  0x17   :  { %428 = vmatpush3.bf16.msra.mxu0 %v473_v13  ;;  %458 = vmatpush3.bf16.msra.mxu1 %v473_v13 }
  0x18   :  { %429 = vmatprep.subr.bf16.mxu0 %v474_v14  ;;  %451 = vmatprep.subr.bf16.mxu1 %v474_v14 }
  0x1b   :  { %430 = vmatpush3.bf16.msra.mxu0 %v475_v15  ;;  %459 = vmatpush3.bf16.msra.mxu1 %v475_v15 }
  0x1c   :  { %431 = vmatprep.subr.bf16.mxu0 %v476_v16  ;;  %452 = vmatprep.subr.bf16.mxu1 %v476_v16 }
  0x1f   :  { %432 = vmatpush3.bf16.msra.mxu0 %v477_v17  ;;  %460 = vmatpush3.bf16.msra.mxu1 %v477_v17 }
  0x22   :  { %203 = vmatmul.mubr.bf16.vlgmr.msra.gmra.mxu0 %v478_v18  ;;  %211 = vmatmul.mubr.bf16.vlgmr.msra.gmra.mxu1 %v481_v19 }
  0xe2   :  { %v433_v21 = vpop.f32.mrf.mxu0  ;;  %v439_v22 = vpop.f32.mrf.mxu1 }
  0xe4   :  { %v434_v23 = vpop.f32.mrf.mxu0  ;;  %v440_v24 = vpop.f32.mrf.mxu1 }
  0xe5   :  { %v435_v27 = vadd.f32 %v434_v23, %v433_v21  ;;  %v441_v30 = vadd.f32 %v440_v24, %v439_v22 }
  0xe6   :  { %v436_v25 = vpop.f32.mrf.mxu0  ;;  %v442_v26 = vpop.f32.mrf.mxu1 }
  0xe7   :  { %v232_v32 = vmul.f32 %v435_v27, %v435_v27  ;;  %v234_v36 = vmul.f32 %v441_v30, %v441_v30 }
  0xe8   :  { %v437_v28 = vpop.f32.mrf.mxu0  ;;  %v443_v29 = vpop.f32.mrf.mxu1 }
  0xe9   :  { %v438_v31 = vadd.f32 %v437_v28, %v436_v25  ;;  %v444_v35 = vadd.f32 %v443_v29, %v442_v26 }
  0xeb   :  { %v220_v33 = vadd.f32 %v438_v31, %v435_v27  ;;  %v233_v34 = vmul.f32 %v438_v31, %v438_v31  ;;  %v235_v40 = vmul.f32 %v444_v35, %v444_v35  ;;  %v389_v6 = vpack.c.bf16 %v438_v31, %v435_v27 }
  0xec   :  { %v394_v7 = vpack.c.bf16 %v444_v35, %v441_v30 }
  0xed   :  { %v236_v37 = vadd.f32 %v233_v34, %v232_v32  ;;  %v221_v38 = vadd.f32 %v441_v30, %v220_v33  ;;  %v398_v9 = vunpack.c.l.bf16 %v389_v6  ;;  %v399_v10 = vunpack.c.h.bf16 %v389_v6 }
  0xee   :  { %v402_v11 = vunpack.c.l.bf16 %v394_v7  ;;  %v403_v12 = vunpack.c.h.bf16 %v394_v7 }
  0xef   :  { %v222_v39 = vadd.f32 %v444_v35, %v221_v38  ;;  %v237_v41 = vadd.f32 %v236_v37, %v234_v36 }
  0xf1   :  { %v223_v42 = vrot.slane %v222_v39, 4  ;;  %v238_v43 = vadd.f32 %v237_v41, %v235_v40 }
  0xf3   :  { %v224_v44 = vadd.f32 %v223_v42, %v222_v39  ;;  %v239_v45 = vrot.slane %v238_v43, 4 }
  0xf5   :  { %v225_v46 = vrot.slane %v224_v44, 2  ;;  %v240_v47 = vadd.f32 %v239_v45, %v238_v43 }
  0xf7   :  { %v226_v48 = vadd.f32 %v225_v46, %v224_v44  ;;  %v241_v49 = vrot.slane %v240_v47, 2 }
  0xf9   :  { %v227_v50 = vrot.slane %v226_v48, 1  ;;  %v242_v51 = vadd.f32 %v241_v49, %v240_v47 }
  0xfb   :  { %v228_v53 = vadd.f32 %v227_v50, %v226_v48  ;;  %v243_v54 = vrot.slane %v242_v51, 1 }
  0xfd   :  { %v229_v56 = vadd.f32 %v228_v53, %v219_v52  ;;  %v244_v57 = vadd.f32 %v243_v54, %v242_v51 }
  0xff   :  { %230 = vst [vmem:[#allocation2] sm:$0x1] %v229_v56  ;;  %v245_v58 = vadd.f32 %v244_v57, %v231_v55 }
 0x101   :  { %246 = vst [vmem:[#allocation3] sm:$0x1] %v245_v58 }
 0x106   :  { %v275_v59 = vld [vmem:[#allocation2] sm:$0x1] }
 0x107   :  { %v276_v60 = vmul.f32 0.03125, %v275_v59 }
 0x108   :  { %v277_v61 = vld [vmem:[#allocation3] sm:$0x1] }
 0x109   :  { %v278_v62 = vmul.f32 0.03125, %v277_v61  ;;  %v279_v63 = vmul.f32 %v276_v60, %v276_v60  ;;  %v296_v8 = vrot.slane %v276_v60, %v295_v5 }
 0x10b   :  { %v280_v0 = vsub.f32 %v278_v62, %v279_v63  ;;  %v298_v14 = vsub.f32 %v398_v9, %v296_v8  ;;  %v299_v15 = vsub.f32 %v399_v10, %v296_v8  ;;  %v300_v16 = vsub.f32 %v402_v11, %v296_v8 }
 0x10c   :  { %v301_v17 = vsub.f32 %v403_v12, %v296_v8 }
 0x10d   :  { %v281_v1 = vmax.f32 %v280_v0, 0.0 }
 0x10f   :  { %v282_v3 = vadd.f32 1e-05, %v281_v1 }
 0x111   :  { %484 = vrsqrt.f32 %v282_v3 }
 0x11e   :  { %v485_v13 = vpop.eup %484 }
 0x11f   :  { %v306_v18 = vrot.slane %v485_v13, %v295_v5 }
 0x121   :  { %v308_v19 = vmul.f32 %v306_v18, %v298_v14  ;;  %v309_v20 = vmul.f32 %v306_v18, %v299_v15  ;;  %v310_v21 = vmul.f32 %v306_v18, %v300_v16  ;;  %v311_v22 = vmul.f32 %v306_v18, %v301_v17 }
 0x123   :  { %vm312_vm0 = vcmp.gt.f32.partialorder %v308_v19, 0.0  ;;  %vm313_vm1 = vcmp.gt.f32.partialorder %v309_v20, 0.0  ;;  %vm314_vm2 = vcmp.gt.f32.partialorder %v310_v21, 0.0  ;;  %vm315_vm3 = vcmp.gt.f32.partialorder %v311_v22, 0.0 }
 0x124   :  { %v316_v23 = vmul.f32 0.2, %v308_v19  ;;  %v317_v24 = vmul.f32 0.2, %v309_v20  ;;  %v318_v25 = vmul.f32 0.2, %v310_v21 }
 0x125   :  { %v319_v26 = vmul.f32 0.2, %v311_v22 }
 0x126   :  { %v320_v27 = vsel %vm312_vm0, %v308_v19, %v316_v23  ;;  %v321_v28 = vsel %vm313_vm1, %v309_v20, %v317_v24  ;;  %v322_v29 = vsel %vm314_vm2, %v310_v21, %v318_v25 }
 0x127   :  { %v323_v30 = vsel %vm315_vm3, %v311_v22, %v319_v26  ;;  %v407_v31 = vpack.c.bf16 %v321_v28, %v320_v27 }
 0x128   :  { %v412_v32 = vpack.c.bf16 %v323_v30, %v322_v29 }
 0x129   :  { %408 = vst [vmem:[%s570_s2] sm:$0xff] %v407_v31  }
 0x12a   :  { %416 = vst [vmem:[%s570_s2 + $0x8] sm:$0xff] %v412_v32  }

// kernel: _lambda_.15
= control target key start
LH: loop header
LB: loop body
LE: loop exit
PB: predicated region body
PF: predicated region fallthrough
CT: control target
= control target key end

     0   :  { %s780_s0 = inlined_call_operand.vmem [shape: bf16[8,512], index: 0, kind: input, shape index: {}]   ;;  %s781_s1 = inlined_call_operand.vmem [shape: bf16[512,128], index: 1, kind: input, shape index: {}]   ;;  %s782_s2 = inlined_call_operand.vmem [shape: f32[1,128], index: 2, kind: input, shape index: {}]   ;;  %s783_s3 = inlined_call_operand.hbm [shape: f32[2,128], index: 3, kind: output, shape index: {0}]   ;;  %s784_s4 = inlined_call_operand.vmem [shape: f32[2,1], index: 4, kind: output, shape index: {1}]  }
   0x1   :  { %v578_v0 = vld [vmem:[%s781_s1 + $0x78] sm:$0xff]   ;;  %v582_v4 = vld [vmem:[%s781_s1 + $0x70] sm:$0xff]   ;;  %v586_v8 = vld [vmem:[%s781_s1 + $0x68] sm:$0xff]  }
   0x2   :  { %v579_v1 = vld [vmem:[%s781_s1 + $0xf8] sm:$0xff]   ;;  %532 = vmatprep.subr.bf16.mxu0 %v578_v0  ;;  %v583_v5 = vld [vmem:[%s781_s1 + $0xf0] sm:$0xff]   ;;  %v587_v9 = vld [vmem:[%s781_s1 + $0xe8] sm:$0xff]  }
   0x3   :  { %v580_v2 = vld [vmem:[%s781_s1 + $0x38] sm:$0xff]   ;;  %554 = vmatprep.subr.bf16.mxu1 %v579_v1  ;;  %v584_v6 = vld [vmem:[%s781_s1 + $0x30] sm:$0xff]   ;;  %v588_v10 = vld [vmem:[%s781_s1 + $0x28] sm:$0xff]  }
   0x4   :  { %v581_v3 = vld [vmem:[%s781_s1 + $0xb8] sm:$0xff]   ;;  %533 = vmatpush3.bf16.msra.mxu0 %v580_v2  ;;  %v585_v7 = vld [vmem:[%s781_s1 + $0xb0] sm:$0xff]   ;;  %v589_v11 = vld [vmem:[%s781_s1 + $0xa8] sm:$0xff]  }
   0x5   :  { %555 = vmatpush3.bf16.msra.mxu1 %v581_v3  ;;  %534 = vmatprep.subr.bf16.mxu0 %v582_v4  ;;  %v590_v12 = vld [vmem:[%s781_s1 + $0x60] sm:$0xff]   ;;  %v594_v16 = vld [vmem:[%s781_s1 + $0x58] sm:$0xff]   ;;  %v598_v20 = vld [vmem:[%s781_s1 + $0x50] sm:$0xff]  }
   0x6   :  { %556 = vmatprep.subr.bf16.mxu1 %v583_v5  ;;  %v591_v13 = vld [vmem:[%s781_s1 + $0xe0] sm:$0xff]   ;;  %v595_v17 = vld [vmem:[%s781_s1 + $0xd8] sm:$0xff]   ;;  %v599_v21 = vld [vmem:[%s781_s1 + $0xd0] sm:$0xff]  }
   0x7   :  { %v592_v14 = vld [vmem:[%s781_s1 + $0x20] sm:$0xff]   ;;  %v596_v18 = vld [vmem:[%s781_s1 + $0x18] sm:$0xff]   ;;  %v600_v22 = vld [vmem:[%s781_s1 + $0x10] sm:$0xff]  }
   0x8   :  { %535 = vmatpush3.bf16.msra.mxu0 %v584_v6  ;;  %v593_v15 = vld [vmem:[%s781_s1 + $0xa0] sm:$0xff]   ;;  %v597_v19 = vld [vmem:[%s781_s1 + $0x98] sm:$0xff]   ;;  %v601_v23 = vld [vmem:[%s781_s1 + $0x90] sm:$0xff]  }
   0x9   :  { %557 = vmatpush3.bf16.msra.mxu1 %v585_v7  ;;  %536 = vmatprep.subr.bf16.mxu0 %v586_v8  ;;  %v602_v24 = vld [vmem:[%s781_s1 + $0x48] sm:$0xff]   ;;  %v606_v28 = vld [vmem:[%s781_s1 + $0x40] sm:$0xff]  }
   0xa   :  { %558 = vmatprep.subr.bf16.mxu1 %v587_v9  ;;  %v603_v25 = vld [vmem:[%s781_s1 + $0xc8] sm:$0xff]   ;;  %v607_v29 = vld [vmem:[%s781_s1 + $0xc0] sm:$0xff]  }
   0xb   :  { %v604_v26 = vld [vmem:[%s781_s1 + $0x8] sm:$0xff]   ;;  %v608_v30 = vld [vmem:[%s781_s1] sm:$0xff]  }
   0xc   :  { %537 = vmatpush3.bf16.msra.mxu0 %v588_v10  ;;  %v605_v27 = vld [vmem:[%s781_s1 + $0x88] sm:$0xff]   ;;  %v609_v31 = vld [vmem:[%s781_s1 + $0x80] sm:$0xff]  }
   0xd   :  { %559 = vmatpush3.bf16.msra.mxu1 %v589_v11  ;;  %538 = vmatprep.subr.bf16.mxu0 %v590_v12  ;;  %v24_v32 = vld [vmem:[%s780_s0] sm:$0xff]  ;;  %v25_v33 = vld [vmem:[%s780_s0 + $0x8] sm:$0xff] }
   0xe   :  { %560 = vmatprep.subr.bf16.mxu1 %v591_v13 }
  0x10   :  { %539 = vmatpush3.bf16.msra.mxu0 %v592_v14 }
  0x11   :  { %561 = vmatpush3.bf16.msra.mxu1 %v593_v15  ;;  %540 = vmatprep.subr.bf16.mxu0 %v594_v16 }
  0x12   :  { %562 = vmatprep.subr.bf16.mxu1 %v595_v17 }
  0x14   :  { %541 = vmatpush3.bf16.msra.mxu0 %v596_v18 }
  0x15   :  { %563 = vmatpush3.bf16.msra.mxu1 %v597_v19  ;;  %542 = vmatprep.subr.bf16.mxu0 %v598_v20 }
  0x16   :  { %564 = vmatprep.subr.bf16.mxu1 %v599_v21 }
  0x18   :  { %543 = vmatpush3.bf16.msra.mxu0 %v600_v22 }
  0x19   :  { %565 = vmatpush3.bf16.msra.mxu1 %v601_v23  ;;  %544 = vmatprep.subr.bf16.mxu0 %v602_v24 }
  0x1a   :  { %566 = vmatprep.subr.bf16.mxu1 %v603_v25 }
  0x1c   :  { %545 = vmatpush3.bf16.msra.mxu0 %v604_v26 }
  0x1d   :  { %567 = vmatpush3.bf16.msra.mxu1 %v605_v27  ;;  %546 = vmatprep.subr.bf16.mxu0 %v606_v28 }
  0x1e   :  { %568 = vmatprep.subr.bf16.mxu1 %v607_v29 }
  0x20   :  { %547 = vmatpush3.bf16.msra.mxu0 %v608_v30 }
  0x21   :  { %10 = vsyncpa [#allocation6], 0  ;;  %569 = vmatpush3.bf16.msra.mxu1 %v609_v31  ;;  %v495_v34 = vcombine.low %v24_v32, %v24_v32  ;;  %v496_v35 = vcombine.high %v24_v32, %v24_v32  ;;  %v497_v36 = vcombine.low %v25_v33, %v25_v33  ;;  %v498_v37 = vcombine.high %v25_v33, %v25_v33  ;;  %s643_s5 = smov [#allocation5]  }
  0x22   :  { %v642_v38 = vmov 0.0   ;;  %v417_v12 = vlaneseq  ;;  %vm433_vm1 = vcmask 1043456   ;;  %vm451_vm2 = vcmask 1040384   ;;  %s481_s6 = sshll.u32 %s643_s5, 4  ;;  %s482_s6 = int_to_ptr.vmem [resolvable:$true] %s481_s6 }
  0x23   :  { %328 = vmatprep.mubr.bf16.mxu0 %v496_v35  ;;  %368 = vmatprep.mubr.bf16.mxu1 %v498_v37  ;;  %22 = vst [vmem:[#allocation3] sm:$0x1] %v642_v38  ;;  %23 = vst [vmem:[#allocation4] sm:$0x1] %v642_v38  ;;  %vm463_vm3 = vcmask 1041408   ;;  %s620_s7 = scalar_lea.vmem %s482_s6, 32  ;;  %p625_p1 = scmp.lt.s32.totalorder %s482_s6, %s482_s6 }
  0x24   :  { %329 = vmatmul.mubr.bf16.vlgmr.msra.gmra.mxu0 %v495_v34  ;;  %369 = vmatmul.mubr.bf16.vlgmr.msra.gmra.mxu1 %v497_v36  ;;  %v418_v13 = vshrl.u32 %v417_v12, 7  ;;  %p621_p0 = scmp.ne.s32.totalorder %s482_s6, %s620_s7  ;;  %p626_p2 = scmp.lt.s32.totalorder %s620_s7, %s620_s7 }
  0x26   :  { %v419_v14 = vsub.s32 0, %v418_v13  ;;  %p627_p3 = por %p626_p2, %p625_p1 }
  0x28   :  { %p628_p4 = pnand %p627_p3, %p621_p0 }
  0x2a   :  { %v376_v61 = vld [vmem:[#allocation3] sm:$0x1]  ;;  %v385_v0 = vld [vmem:[#allocation4] sm:$0x1] }
  0xe4   :  { %v548_v39 = vpop.f32.mrf.mxu0  ;;  %v570_v40 = vpop.f32.mrf.mxu1 }
  0xe6   :  { %v549_v41 = vpop.f32.mrf.mxu0  ;;  %v571_v42 = vpop.f32.mrf.mxu1 }
  0xe7   :  { %v550_v43 = vadd.f32 %v549_v41, %v548_v39  ;;  %v572_v44 = vadd.f32 %v571_v42, %v570_v40  ;;  %v531_v40 = vld [vmem:[%s782_s2] ss:$0 sm:$0xff] }
  0xe8   :  { %v551_v45 = vpop.f32.mrf.mxu0  ;;  %v573_v46 = vpop.f32.mrf.mxu1 }
  0xe9   :  { %v371_v47 = vadd.f32 %v572_v44, %v550_v43 }
  0xea   :  { %v552_v48 = vpop.f32.mrf.mxu0  ;;  %v574_v49 = vpop.f32.mrf.mxu1 }
  0xeb   :  { %v377_v50 = vrot.slane %v371_v47, 4  ;;  %v386_v51 = vmul.f32 %v371_v47, %v371_v47  ;;  %v396_v52 = vpack.c.bf16 %v371_v47, %v371_v47 }
  0xed   :  { %v378_v53 = vadd.f32 %v377_v50, %v371_v47  ;;  %v387_v54 = vrot.slane %v386_v51, 4  ;;  %401 = vst [vmem:[#allocation2] sm:$0xf] %v396_v52 }
  0xef   :  { %v379_v55 = vrot.slane %v378_v53, 2  ;;  %v388_v56 = vadd.f32 %v387_v54, %v386_v51 }
  0xf1   :  { %v380_v57 = vadd.f32 %v379_v55, %v378_v53  ;;  %v389_v58 = vrot.slane %v388_v56, 2 }
  0xf3   :  { %v381_v59 = vrot.slane %v380_v57, 1  ;;  %v390_v60 = vadd.f32 %v389_v58, %v388_v56 }
  0xf4   :  { %v414_v15 = vld [vmem:[#allocation2] sm:$0xf] }
  0xf5   :  { %v382_v62 = vadd.f32 %v381_v59, %v380_v57  ;;  %v391_v63 = vrot.slane %v390_v60, 1  ;;  %v415_v17 = vunpack.c.l.bf16 %v414_v15 }
  0xf7   :  { %v383_v1 = vadd.f32 %v382_v62, %v376_v61  ;;  %v392_v2 = vadd.f32 %v391_v63, %v390_v60 }
  0xf9   :  { %384 = vst [vmem:[#allocation3] sm:$0x1] %v383_v1  ;;  %v393_v3 = vadd.f32 %v392_v2, %v385_v0 }
  0xfb   :  { %394 = vst [vmem:[#allocation4] sm:$0x1] %v393_v3 }
 0x100   :  { %v405_v4 = vld [vmem:[#allocation3] sm:$0x1] }
 0x101   :  { %v406_v5 = vmul.f32 0.125, %v405_v4 }
 0x102   :  { %v407_v6 = vld [vmem:[#allocation4] sm:$0x1] }
 0x103   :  { %v408_v7 = vmul.f32 0.125, %v407_v6  ;;  %v409_v8 = vmul.f32 %v406_v5, %v406_v5  ;;  %v420_v16 = vrot.slane %v406_v5, %v419_v14 }
 0x105   :  { %v410_v9 = vsub.f32 %v408_v7, %v409_v8  ;;  %v422_v19 = vsub.f32 %v415_v17, %v420_v16 }
 0x107   :  { %v411_v10 = vmax.f32 %v410_v9, 0.0 }
 0x109   :  { %v412_v11 = vadd.f32 1e-05, %v411_v10 }
 0x10b   :  { %614 = vrsqrt.f32 %v412_v11 }
 0x118   :  { %v615_v18 = vpop.eup %614 }
 0x119   :  { %v427_v20 = vrot.slane %v615_v18, %v419_v14 }
 0x11b   :  { %v429_v21 = vmul.f32 %v427_v20, %v422_v19 }
 0x11d   :  { %vm430_vm0 = vcmp.gt.f32.partialorder %v429_v21, 0.0  ;;  %v431_v22 = vmul.f32 0.2, %v429_v21 }
 0x11f   :  { %v432_v23 = vsel %vm430_vm0, %v429_v21, %v431_v22 }
 0x120   :  { %v434_v24 = vsel %vm433_vm1, %v432_v23, 0.0  ;;  %v442_v25 = vrot.slane %v432_v23, 4 }
 0x121   :  { %v435_v26 = vrot.slane %v434_v24, 4 }
 0x122   :  { %v444_v27 = vsel %vm433_vm1, %v442_v25, 0.0 }
 0x123   :  { %v436_v28 = vadd.f32 %v435_v26, %v434_v24  ;;  %v445_v29 = vrot.slane %v444_v27, 4 }
 0x125   :  { %v437_v30 = vrot.slane %v436_v28, 2  ;;  %v446_v31 = vadd.f32 %v445_v29, %v444_v27 }
 0x127   :  { %v438_v32 = vadd.f32 %v437_v30, %v436_v28  ;;  %v447_v33 = vrot.slane %v446_v31, 2 }
 0x129   :  { %v439_v34 = vrot.slane %v438_v32, 1  ;;  %v448_v35 = vadd.f32 %v447_v33, %v446_v31 }
 0x12b   :  { %v449_v36 = vrot.slane %v448_v35, 1  ;;  %v440_v37 = vadd.f32 %v439_v34, %v438_v32 }
 0x12d   :  { %v450_v38 = vadd.f32 %v449_v36, %v448_v35 }
 0x12f   :  { %v452_v39 = vsel %vm451_vm2, %v440_v37, %v450_v38 }
 0x130   :  { %v453_v41 = vmul.f32 0.25, %v452_v39 }
 0x132   :  { %v462_v42 = vmul.f32 %v531_v40, %v453_v41  ;;  %454 = vst [vmem:[#allocation5] sm:$0x3] %v453_v41 }
 0x134   :  { %v464_v43 = vsel %vm463_vm3, %v462_v42, 0.0 }
 0x135   :  { %465 = vadd.xlane.f32.xlu0 %v464_v43 }
 0x136   :  { %631 = shalt.err (!%p628_p4)
}
 0x137   :  { %484 = dma.vmem_to_hbm [thread:$0]  %s482_s6, 32, %s783_s3, [#allocation6]   ;;  %vm473_vm4 = vcmask 1024  }
 0x1be   :  { %v466_v44 = vpop.xlane.xlu0 %465 }
 0x1bf   :  { %v467_v45 = vsub.f32 0.0, %v466_v44 }
 0x1c1   :  { %v468_v46 = vmul.f32 1.442695, %v467_v45 }
 0x1c3   :  { %616 = vpow2.f32 %v468_v46 }
 0x1d0   :  { %v617_v47 = vpop.eup %616 }
 0x1d1   :  { %v470_v48 = vadd.f32 1.0, %v617_v47 }
 0x1d3   :  { %618 = vrcp.f32 %v470_v48 }
 0x1e0   :  { %v619_v49 = vpop.eup %618 }
 0x1e1   :  { %474 = vst.msk [vmem:[%s784_s4] sm:$0x3] %vm473_vm4, %v619_v49 }
 0x1e2   :  { %640 = dma.done.wait [#allocation6], 32  }
 0x1e3   :  { %641 = vsyncadd [#allocation6], 4294967264 }
 0x1e4   :  { %492 = vsyncpa [#allocation6], 1 }

// kernel: _lambda_.16
= control target key start
LH: loop header
LB: loop body
LE: loop exit
PB: predicated region body
PF: predicated region fallthrough
CT: control target
= control target key end

     0   :  { %vm100_vm0 = vcmask 523264   ;;  %s595_s1 = inlined_call_operand.vmem [shape: bf16[64,128], index: 1, kind: input, shape index: {}]   ;;  %s596_s0 = inlined_call_operand.vmem [shape: bf16[128,64], index: 0, kind: input, shape index: {}]   ;;  %s597_s2 = inlined_call_operand.vmem [shape: bf16[128,128], index: 2, kind: output, shape index: {}]  }
   0x1   :  { %v497_v0 = vld [vmem:[%s595_s1 + $0x18] sm:$0xff]   ;;  %v498_v1 = vld [vmem:[%s595_s1 + $0x10] sm:$0xff]   ;;  %v499_v2 = vld [vmem:[%s595_s1 + $0x8] sm:$0xff]  }
   0x2   :  { %465 = vmatprep.subr.bf16.mxu0 %v497_v0  ;;  %489 = vmatprep.subr.bf16.mxu1 %v497_v0  ;;  %v501_v3 = vld [vmem:[%s596_s0] sm:$0xff]   ;;  %v503_v6 = vld [vmem:[%s596_s0 + $0x8] sm:$0xff]   ;;  %v505_v8 = vld [vmem:[%s596_s0 + $0x10] sm:$0xff]  }
   0x3   :  { %466 = vmatpush3.bf16.msra.mxu0 %v497_v0  ;;  %493 = vmatpush3.bf16.msra.mxu1 %v497_v0  ;;  %v502_v4 = vld [vmem:[%s596_s0 + $0x20] sm:$0xff]   ;;  %v504_v7 = vld [vmem:[%s596_s0 + $0x28] sm:$0xff]   ;;  %v506_v9 = vld [vmem:[%s596_s0 + $0x30] sm:$0xff]  }
   0x4   :  { %467 = vmatprep.subr.bf16.mxu0 %v498_v1  ;;  %490 = vmatprep.subr.bf16.mxu1 %v498_v1  ;;  %v500_v5 = vld [vmem:[%s595_s1] sm:$0xff]   ;;  %v507_v10 = vld [vmem:[%s596_s0 + $0x18] sm:$0xff]  }
   0x5   :  { %473 = vmatprep.mubr.msk.bf16.mxu0 %vm100_vm0, %v501_v3  ;;  %481 = vmatprep.mubr.msk.bf16.mxu1 %vm100_vm0, %v502_v4  ;;  %v508_v11 = vld [vmem:[%s596_s0 + $0x38] sm:$0xff]  }
   0x7   :  { %468 = vmatpush3.bf16.msra.mxu0 %v498_v1  ;;  %494 = vmatpush3.bf16.msra.mxu1 %v498_v1 }
   0x8   :  { %469 = vmatprep.subr.bf16.mxu0 %v499_v2  ;;  %491 = vmatprep.subr.bf16.mxu1 %v499_v2 }
   0xb   :  { %470 = vmatpush3.bf16.msra.mxu0 %v499_v2  ;;  %495 = vmatpush3.bf16.msra.mxu1 %v499_v2 }
   0xc   :  { %471 = vmatprep.subr.bf16.mxu0 %v500_v5  ;;  %492 = vmatprep.subr.bf16.mxu1 %v500_v5 }
   0xf   :  { %472 = vmatpush3.bf16.msra.mxu0 %v500_v5  ;;  %496 = vmatpush3.bf16.msra.mxu1 %v500_v5 }
  0x12   :  { %474 = vmatmul.mubr.msk.bf16.vlgmr.msra.gmra.mxu0 %vm100_vm0, %v503_v6  ;;  %482 = vmatmul.mubr.msk.bf16.vlgmr.msra.gmra.mxu1 %vm100_vm0, %v504_v7 }
  0x13   :  { %477 = vmatprep.mubr.msk.bf16.mxu0 %vm100_vm0, %v505_v8  ;;  %485 = vmatprep.mubr.msk.bf16.mxu1 %vm100_vm0, %v506_v9 }
  0x1a   :  { %478 = vmatmul.mubr.msk.bf16.gmra.mxu0 %vm100_vm0, %v507_v10  ;;  %486 = vmatmul.mubr.msk.bf16.gmra.mxu1 %vm100_vm0, %v508_v11 }
  0xd2   :  { %v475_v12 = vpop.f32.mrf.mxu0  ;;  %v483_v13 = vpop.f32.mrf.mxu1 }
  0xd3   :  { %vm224_vm1 = vcmp.gt.f32.partialorder %v475_v12, 0.0  ;;  %v240_v14 = vmul.f32 0.2, %v475_v12  ;;  %v248_v15 = vmul.f32 0.2, %v483_v13  ;;  %vm232_vm2 = vcmp.gt.f32.partialorder %v483_v13, 0.0 }
  0xd4   :  { %v159_v16 = vpop.f32.mrf.mxu0  ;;  %v191_v17 = vpop.f32.mrf.mxu1 }
  0xd5   :  { %v256_v18 = vsel %vm224_vm1, %v475_v12, %v240_v14  ;;  %v238_v19 = vmul.f32 0.2, %v159_v16  ;;  %vm222_vm3 = vcmp.gt.f32.partialorder %v159_v16, 0.0  ;;  %v264_v23 = vsel %vm232_vm2, %v483_v13, %v248_v15 }
  0xd6   :  { %v476_v20 = vpop.f32.mrf.mxu0  ;;  %v484_v21 = vpop.f32.mrf.mxu1  ;;  %vm230_vm6 = vcmp.gt.f32.partialorder %v191_v17, 0.0  ;;  %v246_v24 = vmul.f32 0.2, %v191_v17 }
  0xd7   :  { %vm225_vm4 = vcmp.gt.f32.partialorder %v476_v20, 0.0  ;;  %v241_v22 = vmul.f32 0.2, %v476_v20  ;;  %vm233_vm5 = vcmp.gt.f32.partialorder %v484_v21, 0.0  ;;  %v249_v25 = vmul.f32 0.2, %v484_v21 }
  0xd8   :  { %v162_v26 = vpop.f32.mrf.mxu0  ;;  %v194_v27 = vpop.f32.mrf.mxu1  ;;  %v254_v30 = vsel %vm222_vm3, %v159_v16, %v238_v19  ;;  %v262_v39 = vsel %vm230_vm6, %v191_v17, %v246_v24 }
  0xd9   :  { %v257_v28 = vsel %vm225_vm4, %v476_v20, %v241_v22  ;;  %vm223_vm7 = vcmp.gt.f32.partialorder %v162_v26, 0.0  ;;  %v239_v29 = vmul.f32 0.2, %v162_v26  ;;  %vm231_vm8 = vcmp.gt.f32.partialorder %v194_v27, 0.0 }
  0xda   :  { %v414_v31 = vpack.c.bf16 %v257_v28, %v256_v18  ;;  %v265_v32 = vsel %vm233_vm5, %v484_v21, %v249_v25  ;;  %v247_v33 = vmul.f32 0.2, %v194_v27  ;;  %v479_v34 = vpop.f32.mrf.mxu0  ;;  %v487_v35 = vpop.f32.mrf.mxu1 }
  0xdb   :  { %v434_v36 = vpack.c.bf16 %v265_v32, %v264_v23  ;;  %v255_v37 = vsel %vm223_vm7, %v162_v26, %v239_v29  ;;  %vm228_vm9 = vcmp.gt.f32.partialorder %v479_v34, 0.0  ;;  %v244_v38 = vmul.f32 0.2, %v479_v34 }
  0xdc   :  { %446 = vst [vmem:[%s597_s2 + $0x8] sm:$0xff] %v414_v31   ;;  %v409_v40 = vpack.c.bf16 %v255_v37, %v254_v30  ;;  %v263_v41 = vsel %vm231_vm8, %v194_v27, %v247_v33  ;;  %v175_v42 = vpop.f32.mrf.mxu0  ;;  %v207_v43 = vpop.f32.mrf.mxu1  ;;  %vm236_vm10 = vcmp.gt.f32.partialorder %v487_v35, 0.0  ;;  %v252_v46 = vmul.f32 0.2, %v487_v35 }
  0xdd   :  { %450 = vst [vmem:[%s597_s2 + $0x28] sm:$0xff] %v434_v36   ;;  %v429_v44 = vpack.c.bf16 %v263_v41, %v262_v39  ;;  %v260_v45 = vsel %vm228_vm9, %v479_v34, %v244_v38  ;;  %v242_v49 = vmul.f32 0.2, %v175_v42  ;;  %vm226_vm13 = vcmp.gt.f32.partialorder %v175_v42, 0.0 }
  0xde   :  { %410 = vst [vmem:[%s597_s2] sm:$0xff] %v409_v40   ;;  %v480_v47 = vpop.f32.mrf.mxu0  ;;  %v488_v48 = vpop.f32.mrf.mxu1  ;;  %vm234_vm14 = vcmp.gt.f32.partialorder %v207_v43, 0.0  ;;  %v250_v51 = vmul.f32 0.2, %v207_v43  ;;  %v268_v57 = vsel %vm236_vm10, %v487_v35, %v252_v46 }
  0xdf   :  { %449 = vst [vmem:[%s597_s2 + $0x20] sm:$0xff] %v429_v44   ;;  %vm229_vm11 = vcmp.gt.f32.partialorder %v480_v47, 0.0  ;;  %v245_v50 = vmul.f32 0.2, %v480_v47  ;;  %vm237_vm12 = vcmp.gt.f32.partialorder %v488_v48, 0.0  ;;  %v258_v61 = vsel %vm226_vm13, %v175_v42, %v242_v49 }
  0xe0   :  { %v253_v52 = vmul.f32 0.2, %v488_v48  ;;  %v178_v53 = vpop.f32.mrf.mxu0  ;;  %v210_v54 = vpop.f32.mrf.mxu1  ;;  %v266_v0 = vsel %vm234_vm14, %v207_v43, %v250_v51 }
  0xe1   :  { %v261_v55 = vsel %vm229_vm11, %v480_v47, %v245_v50  ;;  %vm227_vm15 = vcmp.gt.f32.partialorder %v178_v53, 0.0  ;;  %v243_v56 = vmul.f32 0.2, %v178_v53  ;;  %vm235_vm0 = vcmp.gt.f32.partialorder %v210_v54, 0.0 }
  0xe2   :  { %v424_v58 = vpack.c.bf16 %v261_v55, %v260_v45  ;;  %v269_v59 = vsel %vm237_vm12, %v488_v48, %v253_v52  ;;  %v251_v60 = vmul.f32 0.2, %v210_v54 }
  0xe3   :  { %v444_v62 = vpack.c.bf16 %v269_v59, %v268_v57  ;;  %v259_v63 = vsel %vm227_vm15, %v178_v53, %v243_v56 }
  0xe4   :  { %448 = vst [vmem:[%s597_s2 + $0x18] sm:$0xff] %v424_v58   ;;  %v419_v1 = vpack.c.bf16 %v259_v63, %v258_v61  ;;  %v267_v2 = vsel %vm235_vm0, %v210_v54, %v251_v60 }
  0xe5   :  { %452 = vst [vmem:[%s597_s2 + $0x38] sm:$0xff] %v444_v62   ;;  %v439_v3 = vpack.c.bf16 %v267_v2, %v266_v0 }
  0xe6   :  { %447 = vst [vmem:[%s597_s2 + $0x10] sm:$0xff] %v419_v1  }
  0xe7   :  { %451 = vst [vmem:[%s597_s2 + $0x30] sm:$0xff] %v439_v3  }

// kernel: _lambda_.19
= control target key start
LH: loop header
LB: loop body
LE: loop exit
PB: predicated region body
PF: predicated region fallthrough
CT: control target
= control target key end

     0   :  { %vm58_vm0 = vcmask 523264   ;;  %s240_s1 = inlined_call_operand.vmem [shape: bf16[64,128], index: 1, kind: input, shape index: {}]   ;;  %s241_s0 = inlined_call_operand.vmem [shape: bf16[32,64], index: 0, kind: input, shape index: {}]   ;;  %s242_s2 = inlined_call_operand.vmem [shape: bf16[32,128], index: 2, kind: output, shape index: {}]  }
   0x1   :  { %v195_v0 = vld [vmem:[%s240_s1 + $0x18] sm:$0xff]   ;;  %v196_v1 = vld [vmem:[%s240_s1 + $0x10] sm:$0xff]   ;;  %v197_v2 = vld [vmem:[%s240_s1 + $0x8] sm:$0xff]  }
   0x2   :  { %183 = vmatprep.subr.bf16.mxu0 %v195_v0  ;;  %v199_v3 = vld [vmem:[%s241_s0] sm:$0xff]   ;;  %v200_v5 = vld [vmem:[%s241_s0 + $0x8] sm:$0xff]  }
   0x3   :  { %184 = vmatpush3.bf16.msra.mxu0 %v195_v0  ;;  %191 = vmatprep.mubr.msk.bf16.mxu0 %vm58_vm0, %v199_v3  ;;  %v198_v4 = vld [vmem:[%s240_s1] sm:$0xff]  }
   0x4   :  { %185 = vmatprep.subr.bf16.mxu0 %v196_v1 }
   0x7   :  { %186 = vmatpush3.bf16.msra.mxu0 %v196_v1 }
   0x8   :  { %187 = vmatprep.subr.bf16.mxu0 %v197_v2 }
   0xb   :  { %188 = vmatpush3.bf16.msra.mxu0 %v197_v2 }
   0xc   :  { %189 = vmatprep.subr.bf16.mxu0 %v198_v4 }
   0xf   :  { %190 = vmatpush3.bf16.msra.mxu0 %v198_v4 }
  0x12   :  { %192 = vmatmul.mubr.msk.bf16.vlgmr.msra.gmra.mxu0 %vm58_vm0, %v200_v5 }
  0xd2   :  { %v193_v6 = vpop.f32.mrf.mxu0 }
  0xd3   :  { %v120_v8 = vmul.f32 0.2, %v193_v6  ;;  %vm116_vm1 = vcmp.gt.f32.partialorder %v193_v6, 0.0 }
  0xd4   :  { %v99_v7 = vpop.f32.mrf.mxu0 }
  0xd5   :  { %v118_v10 = vmul.f32 0.2, %v99_v7  ;;  %vm114_vm3 = vcmp.gt.f32.partialorder %v99_v7, 0.0  ;;  %v124_v13 = vsel %vm116_vm1, %v193_v6, %v120_v8 }
  0xd6   :  { %v194_v9 = vpop.f32.mrf.mxu0 }
  0xd7   :  { %vm117_vm2 = vcmp.gt.f32.partialorder %v194_v9, 0.0  ;;  %v121_v11 = vmul.f32 0.2, %v194_v9  ;;  %v122_v17 = vsel %vm114_vm3, %v99_v7, %v118_v10 }
  0xd8   :  { %v102_v12 = vpop.f32.mrf.mxu0 }
  0xd9   :  { %v125_v14 = vsel %vm117_vm2, %v194_v9, %v121_v11  ;;  %vm115_vm4 = vcmp.gt.f32.partialorder %v102_v12, 0.0  ;;  %v119_v15 = vmul.f32 0.2, %v102_v12 }
  0xda   :  { %v174_v16 = vpack.c.bf16 %v125_v14, %v124_v13 }
  0xdb   :  { %v123_v18 = vsel %vm115_vm4, %v102_v12, %v119_v15 }
  0xdc   :  { %v169_v19 = vpack.c.bf16 %v123_v18, %v122_v17  ;;  %176 = vst [vmem:[%s242_s2 + $0x8] sm:$0xff] %v174_v16  }
  0xde   :  { %170 = vst [vmem:[%s242_s2] sm:$0xff] %v169_v19  }

// kernel: _lambda_.20
= control target key start
LH: loop header
LB: loop body
LE: loop exit
PB: predicated region body
PF: predicated region fallthrough
CT: control target
= control target key end

     0   :  { %v554_v38 = vmov 0.0   ;;  %s681_s1 = inlined_call_operand.vmem [shape: bf16[512,128], index: 1, kind: input, shape index: {}]   ;;  %s682_s0 = inlined_call_operand.vmem [shape: bf16[8,512], index: 0, kind: input, shape index: {}]   ;;  %s683_s2 = inlined_call_operand.vmem [shape: bf16[8,128], index: 2, kind: output, shape index: {}]  }
   0x1   :  { %v516_v0 = vld [vmem:[%s681_s1 + $0x78] sm:$0xff]   ;;  %v520_v4 = vld [vmem:[%s681_s1 + $0x70] sm:$0xff]   ;;  %v524_v8 = vld [vmem:[%s681_s1 + $0x68] sm:$0xff]   ;;  %16 = vst [vmem:[#allocation2] sm:$0x1] %v554_v38 }
   0x2   :  { %v517_v1 = vld [vmem:[%s681_s1 + $0xf8] sm:$0xff]   ;;  %471 = vmatprep.subr.bf16.mxu0 %v516_v0  ;;  %v521_v5 = vld [vmem:[%s681_s1 + $0xf0] sm:$0xff]   ;;  %v525_v9 = vld [vmem:[%s681_s1 + $0xe8] sm:$0xff]   ;;  %17 = vst [vmem:[#allocation3] sm:$0x1] %v554_v38 }
   0x3   :  { %v518_v2 = vld [vmem:[%s681_s1 + $0x38] sm:$0xff]   ;;  %493 = vmatprep.subr.bf16.mxu1 %v517_v1  ;;  %v522_v6 = vld [vmem:[%s681_s1 + $0x30] sm:$0xff]   ;;  %v526_v10 = vld [vmem:[%s681_s1 + $0x28] sm:$0xff]  }
   0x4   :  { %v519_v3 = vld [vmem:[%s681_s1 + $0xb8] sm:$0xff]   ;;  %472 = vmatpush3.bf16.msra.mxu0 %v518_v2  ;;  %v523_v7 = vld [vmem:[%s681_s1 + $0xb0] sm:$0xff]   ;;  %v527_v11 = vld [vmem:[%s681_s1 + $0xa8] sm:$0xff]  }
   0x5   :  { %494 = vmatpush3.bf16.msra.mxu1 %v519_v3  ;;  %473 = vmatprep.subr.bf16.mxu0 %v520_v4  ;;  %v528_v12 = vld [vmem:[%s681_s1 + $0x60] sm:$0xff]   ;;  %v532_v16 = vld [vmem:[%s681_s1 + $0x58] sm:$0xff]   ;;  %v536_v20 = vld [vmem:[%s681_s1 + $0x50] sm:$0xff]  }
   0x6   :  { %495 = vmatprep.subr.bf16.mxu1 %v521_v5  ;;  %v529_v13 = vld [vmem:[%s681_s1 + $0xe0] sm:$0xff]   ;;  %v533_v17 = vld [vmem:[%s681_s1 + $0xd8] sm:$0xff]   ;;  %v537_v21 = vld [vmem:[%s681_s1 + $0xd0] sm:$0xff]  }
   0x7   :  { %v530_v14 = vld [vmem:[%s681_s1 + $0x20] sm:$0xff]   ;;  %v534_v18 = vld [vmem:[%s681_s1 + $0x18] sm:$0xff]   ;;  %v538_v22 = vld [vmem:[%s681_s1 + $0x10] sm:$0xff]  }
   0x8   :  { %474 = vmatpush3.bf16.msra.mxu0 %v522_v6  ;;  %v531_v15 = vld [vmem:[%s681_s1 + $0xa0] sm:$0xff]   ;;  %v535_v19 = vld [vmem:[%s681_s1 + $0x98] sm:$0xff]   ;;  %v539_v23 = vld [vmem:[%s681_s1 + $0x90] sm:$0xff]  }
   0x9   :  { %496 = vmatpush3.bf16.msra.mxu1 %v523_v7  ;;  %475 = vmatprep.subr.bf16.mxu0 %v524_v8  ;;  %v540_v24 = vld [vmem:[%s681_s1 + $0x48] sm:$0xff]   ;;  %v544_v28 = vld [vmem:[%s681_s1 + $0x40] sm:$0xff]  }
   0xa   :  { %497 = vmatprep.subr.bf16.mxu1 %v525_v9  ;;  %v541_v25 = vld [vmem:[%s681_s1 + $0xc8] sm:$0xff]   ;;  %v545_v29 = vld [vmem:[%s681_s1 + $0xc0] sm:$0xff]  }
   0xb   :  { %v542_v26 = vld [vmem:[%s681_s1 + $0x8] sm:$0xff]   ;;  %v546_v30 = vld [vmem:[%s681_s1] sm:$0xff]  }
   0xc   :  { %476 = vmatpush3.bf16.msra.mxu0 %v526_v10  ;;  %v543_v27 = vld [vmem:[%s681_s1 + $0x88] sm:$0xff]   ;;  %v547_v31 = vld [vmem:[%s681_s1 + $0x80] sm:$0xff]  }
   0xd   :  { %498 = vmatpush3.bf16.msra.mxu1 %v527_v11  ;;  %477 = vmatprep.subr.bf16.mxu0 %v528_v12  ;;  %v18_v32 = vld [vmem:[%s682_s0] sm:$0xff]  ;;  %v19_v33 = vld [vmem:[%s682_s0 + $0x8] sm:$0xff]  ;;  %v411_v12 = vlaneseq }
   0xe   :  { %499 = vmatprep.subr.bf16.mxu1 %v529_v13  ;;  %v435_v34 = vcombine.low %v18_v32, %v18_v32  ;;  %v436_v35 = vcombine.high %v18_v32, %v18_v32  ;;  %v437_v36 = vcombine.low %v19_v33, %v19_v33  ;;  %v438_v37 = vcombine.high %v19_v33, %v19_v33  ;;  %v370_v61 = vld [vmem:[#allocation2] sm:$0x1]  ;;  %v379_v0 = vld [vmem:[#allocation3] sm:$0x1] }
   0xf   :  { %v412_v13 = vshrl.u32 %v411_v12, 7 }
  0x10   :  { %478 = vmatpush3.bf16.msra.mxu0 %v530_v14  ;;  %322 = vmatprep.mubr.bf16.mxu0 %v436_v35 }
  0x11   :  { %500 = vmatpush3.bf16.msra.mxu1 %v531_v15  ;;  %479 = vmatprep.subr.bf16.mxu0 %v532_v16  ;;  %v413_v14 = vsub.s32 0, %v412_v13 }
  0x12   :  { %501 = vmatprep.subr.bf16.mxu1 %v533_v17  ;;  %362 = vmatprep.mubr.bf16.mxu1 %v438_v37 }
  0x14   :  { %480 = vmatpush3.bf16.msra.mxu0 %v534_v18 }
  0x15   :  { %502 = vmatpush3.bf16.msra.mxu1 %v535_v19  ;;  %481 = vmatprep.subr.bf16.mxu0 %v536_v20 }
  0x16   :  { %503 = vmatprep.subr.bf16.mxu1 %v537_v21 }
  0x18   :  { %482 = vmatpush3.bf16.msra.mxu0 %v538_v22 }
  0x19   :  { %504 = vmatpush3.bf16.msra.mxu1 %v539_v23  ;;  %483 = vmatprep.subr.bf16.mxu0 %v540_v24 }
  0x1a   :  { %505 = vmatprep.subr.bf16.mxu1 %v541_v25 }
  0x1c   :  { %484 = vmatpush3.bf16.msra.mxu0 %v542_v26 }
  0x1d   :  { %506 = vmatpush3.bf16.msra.mxu1 %v543_v27  ;;  %485 = vmatprep.subr.bf16.mxu0 %v544_v28 }
  0x1e   :  { %507 = vmatprep.subr.bf16.mxu1 %v545_v29 }
  0x20   :  { %486 = vmatpush3.bf16.msra.mxu0 %v546_v30 }
  0x21   :  { %508 = vmatpush3.bf16.msra.mxu1 %v547_v31 }
  0x23   :  { %323 = vmatmul.mubr.bf16.vlgmr.msra.gmra.mxu0 %v435_v34 }
  0x24   :  { %363 = vmatmul.mubr.bf16.vlgmr.msra.gmra.mxu1 %v437_v36 }
  0xe3   :  { %v487_v39 = vpop.f32.mrf.mxu0 }
  0xe4   :  { %v509_v40 = vpop.f32.mrf.mxu1 }
  0xe5   :  { %v488_v41 = vpop.f32.mrf.mxu0 }
  0xe6   :  { %v510_v42 = vpop.f32.mrf.mxu1  ;;  %v489_v43 = vadd.f32 %v488_v41, %v487_v39 }
  0xe7   :  { %v511_v44 = vadd.f32 %v510_v42, %v509_v40  ;;  %v490_v45 = vpop.f32.mrf.mxu0 }
  0xe8   :  { %v512_v46 = vpop.f32.mrf.mxu1 }
  0xe9   :  { %v365_v47 = vadd.f32 %v511_v44, %v489_v43  ;;  %v491_v48 = vpop.f32.mrf.mxu0 }
  0xea   :  { %v513_v49 = vpop.f32.mrf.mxu1 }
  0xeb   :  { %v371_v50 = vrot.slane %v365_v47, 4  ;;  %v380_v51 = vmul.f32 %v365_v47, %v365_v47  ;;  %v390_v52 = vpack.c.bf16 %v365_v47, %v365_v47 }
  0xed   :  { %v372_v53 = vadd.f32 %v371_v50, %v365_v47  ;;  %v381_v54 = vrot.slane %v380_v51, 4  ;;  %395 = vst [vmem:[%s683_s2] sm:$0xf] %v390_v52 }
  0xef   :  { %v373_v55 = vrot.slane %v372_v53, 2  ;;  %v382_v56 = vadd.f32 %v381_v54, %v380_v51 }
  0xf1   :  { %v374_v57 = vadd.f32 %v373_v55, %v372_v53  ;;  %v383_v58 = vrot.slane %v382_v56, 2 }
  0xf3   :  { %v375_v59 = vrot.slane %v374_v57, 1  ;;  %v384_v60 = vadd.f32 %v383_v58, %v382_v56 }
  0xf4   :  { %v408_v15 = vld [vmem:[%s683_s2] sm:$0xf] }
  0xf5   :  { %v376_v62 = vadd.f32 %v375_v59, %v374_v57  ;;  %v385_v63 = vrot.slane %v384_v60, 1  ;;  %v409_v17 = vunpack.c.l.bf16 %v408_v15 }
  0xf7   :  { %v377_v1 = vadd.f32 %v376_v62, %v370_v61  ;;  %v386_v2 = vadd.f32 %v385_v63, %v384_v60 }
  0xf9   :  { %378 = vst [vmem:[#allocation2] sm:$0x1] %v377_v1  ;;  %v387_v3 = vadd.f32 %v386_v2, %v379_v0 }
  0xfb   :  { %388 = vst [vmem:[#allocation3] sm:$0x1] %v387_v3 }
 0x100   :  { %v399_v4 = vld [vmem:[#allocation2] sm:$0x1] }
 0x101   :  { %v400_v5 = vmul.f32 0.125, %v399_v4 }
 0x102   :  { %v401_v6 = vld [vmem:[#allocation3] sm:$0x1] }
 0x103   :  { %v402_v7 = vmul.f32 0.125, %v401_v6  ;;  %v403_v8 = vmul.f32 %v400_v5, %v400_v5  ;;  %v414_v16 = vrot.slane %v400_v5, %v413_v14 }
 0x105   :  { %v404_v9 = vsub.f32 %v402_v7, %v403_v8  ;;  %v416_v19 = vsub.f32 %v409_v17, %v414_v16 }
 0x107   :  { %v405_v10 = vmax.f32 %v404_v9, 0.0 }
 0x109   :  { %v406_v11 = vadd.f32 1e-05, %v405_v10 }
 0x10b   :  { %552 = vrsqrt.f32 %v406_v11 }
 0x118   :  { %v553_v18 = vpop.eup %552 }
 0x119   :  { %v421_v20 = vrot.slane %v553_v18, %v413_v14 }
 0x11b   :  { %v423_v21 = vmul.f32 %v421_v20, %v416_v19 }
 0x11d   :  { %vm424_vm0 = vcmp.gt.f32.partialorder %v423_v21, 0.0  ;;  %v425_v22 = vmul.f32 0.2, %v423_v21 }
 0x11f   :  { %v426_v23 = vsel %vm424_vm0, %v423_v21, %v425_v22 }
 0x120   :  { %v427_v24 = vpack.c.bf16 %v426_v23, %v426_v23 }
 0x122   :  { %428 = vst [vmem:[%s683_s2] sm:$0xf] %v427_v24 }

// kernel: _lambda_.21
= control target key start
LH: loop header
LB: loop body
LE: loop exit
PB: predicated region body
PF: predicated region fallthrough
CT: control target
= control target key end

     0   :  { %s1330_s0 = inlined_call_operand.vmem [shape: bf16[8,1024], index: 0, kind: input, shape index: {}]   ;;  %s1331_s1 = inlined_call_operand.vmem [shape: bf16[1024,128], index: 1, kind: input, shape index: {}]   ;;  %s1332_s2 = inlined_call_operand.vmem [shape: f32[1,128], index: 2, kind: input, shape index: {}]   ;;  %s1333_s3 = inlined_call_operand.hbm [shape: f32[2,128], index: 3, kind: output, shape index: {0}]   ;;  %s1334_s4 = inlined_call_operand.vmem [shape: f32[2,1], index: 4, kind: output, shape index: {1}]  }
   0x1   :  { %v990_v0 = vld [vmem:[%s1331_s1 + $0x78] sm:$0xff]   ;;  %v994_v4 = vld [vmem:[%s1331_s1 + $0x70] sm:$0xff]   ;;  %v998_v8 = vld [vmem:[%s1331_s1 + $0x68] sm:$0xff]  }
   0x2   :  { %v991_v1 = vld [vmem:[%s1331_s1 + $0xf8] sm:$0xff]   ;;  %900 = vmatprep.subr.bf16.mxu0 %v990_v0  ;;  %v995_v5 = vld [vmem:[%s1331_s1 + $0xf0] sm:$0xff]   ;;  %v999_v9 = vld [vmem:[%s1331_s1 + $0xe8] sm:$0xff]  }
   0x3   :  { %v992_v2 = vld [vmem:[%s1331_s1 + $0x38] sm:$0xff]   ;;  %922 = vmatprep.subr.bf16.mxu1 %v991_v1  ;;  %v996_v6 = vld [vmem:[%s1331_s1 + $0x30] sm:$0xff]   ;;  %v1000_v10 = vld [vmem:[%s1331_s1 + $0x28] sm:$0xff]  }
   0x4   :  { %v993_v3 = vld [vmem:[%s1331_s1 + $0xb8] sm:$0xff]   ;;  %901 = vmatpush3.bf16.msra.mxu0 %v992_v2  ;;  %v997_v7 = vld [vmem:[%s1331_s1 + $0xb0] sm:$0xff]   ;;  %v1001_v11 = vld [vmem:[%s1331_s1 + $0xa8] sm:$0xff]  }
   0x5   :  { %923 = vmatpush3.bf16.msra.mxu1 %v993_v3  ;;  %902 = vmatprep.subr.bf16.mxu0 %v994_v4  ;;  %v1002_v12 = vld [vmem:[%s1331_s1 + $0x60] sm:$0xff]   ;;  %v1006_v16 = vld [vmem:[%s1331_s1 + $0x58] sm:$0xff]   ;;  %v1010_v20 = vld [vmem:[%s1331_s1 + $0x50] sm:$0xff]  }
   0x6   :  { %924 = vmatprep.subr.bf16.mxu1 %v995_v5  ;;  %v1003_v13 = vld [vmem:[%s1331_s1 + $0xe0] sm:$0xff]   ;;  %v1007_v17 = vld [vmem:[%s1331_s1 + $0xd8] sm:$0xff]   ;;  %v1011_v21 = vld [vmem:[%s1331_s1 + $0xd0] sm:$0xff]  }
   0x7   :  { %v1004_v14 = vld [vmem:[%s1331_s1 + $0x20] sm:$0xff]   ;;  %v1008_v18 = vld [vmem:[%s1331_s1 + $0x18] sm:$0xff]   ;;  %v1012_v22 = vld [vmem:[%s1331_s1 + $0x10] sm:$0xff]  }
   0x8   :  { %903 = vmatpush3.bf16.msra.mxu0 %v996_v6  ;;  %v1005_v15 = vld [vmem:[%s1331_s1 + $0xa0] sm:$0xff]   ;;  %v1009_v19 = vld [vmem:[%s1331_s1 + $0x98] sm:$0xff]   ;;  %v1013_v23 = vld [vmem:[%s1331_s1 + $0x90] sm:$0xff]  }
   0x9   :  { %925 = vmatpush3.bf16.msra.mxu1 %v997_v7  ;;  %904 = vmatprep.subr.bf16.mxu0 %v998_v8  ;;  %v1014_v24 = vld [vmem:[%s1331_s1 + $0x48] sm:$0xff]   ;;  %v1018_v28 = vld [vmem:[%s1331_s1 + $0x40] sm:$0xff]   ;;  %v1026_v38 = vld [vmem:[%s1331_s1 + $0x178] sm:$0xff]  }
   0xa   :  { %926 = vmatprep.subr.bf16.mxu1 %v999_v9  ;;  %v1015_v25 = vld [vmem:[%s1331_s1 + $0xc8] sm:$0xff]   ;;  %v1019_v29 = vld [vmem:[%s1331_s1 + $0xc0] sm:$0xff]   ;;  %v1027_v39 = vld [vmem:[%s1331_s1 + $0x1f8] sm:$0xff]  }
   0xb   :  { %v1016_v26 = vld [vmem:[%s1331_s1 + $0x8] sm:$0xff]   ;;  %v1020_v30 = vld [vmem:[%s1331_s1] sm:$0xff]   ;;  %v1028_v40 = vld [vmem:[%s1331_s1 + $0x138] sm:$0xff]  }
   0xc   :  { %905 = vmatpush3.bf16.msra.mxu0 %v1000_v10  ;;  %v1017_v27 = vld [vmem:[%s1331_s1 + $0x88] sm:$0xff]   ;;  %v1021_v31 = vld [vmem:[%s1331_s1 + $0x80] sm:$0xff]   ;;  %v1029_v41 = vld [vmem:[%s1331_s1 + $0x1b8] sm:$0xff]  }
   0xd   :  { %927 = vmatpush3.bf16.msra.mxu1 %v1001_v11  ;;  %906 = vmatprep.subr.bf16.mxu0 %v1002_v12  ;;  %v24_v32 = vld [vmem:[%s1330_s0] sm:$0xff]  ;;  %v25_v33 = vld [vmem:[%s1330_s0 + $0x8] sm:$0xff]  ;;  %v1030_v42 = vld [vmem:[%s1331_s1 + $0x170] sm:$0xff]  }
   0xe   :  { %928 = vmatprep.subr.bf16.mxu1 %v1003_v13  ;;  %v827_v34 = vcombine.low %v24_v32, %v24_v32  ;;  %v828_v35 = vcombine.high %v24_v32, %v24_v32  ;;  %v829_v36 = vcombine.low %v25_v33, %v25_v33  ;;  %v830_v37 = vcombine.high %v25_v33, %v25_v33  ;;  %v1031_v43 = vld [vmem:[%s1331_s1 + $0x1f0] sm:$0xff]   ;;  %v1034_v46 = vld [vmem:[%s1331_s1 + $0x168] sm:$0xff]   ;;  %v1038_v50 = vld [vmem:[%s1331_s1 + $0x160] sm:$0xff]  }
   0xf   :  { %v1032_v44 = vld [vmem:[%s1331_s1 + $0x130] sm:$0xff]   ;;  %v1035_v47 = vld [vmem:[%s1331_s1 + $0x1e8] sm:$0xff]   ;;  %v1039_v51 = vld [vmem:[%s1331_s1 + $0x1e0] sm:$0xff]  }
  0x10   :  { %907 = vmatpush3.bf16.msra.mxu0 %v1004_v14  ;;  %600 = vmatprep.mubr.bf16.mxu0 %v828_v35  ;;  %v1033_v45 = vld [vmem:[%s1331_s1 + $0x1b0] sm:$0xff]   ;;  %v1036_v48 = vld [vmem:[%s1331_s1 + $0x128] sm:$0xff]   ;;  %v1040_v52 = vld [vmem:[%s1331_s1 + $0x120] sm:$0xff]  }
  0x11   :  { %929 = vmatpush3.bf16.msra.mxu1 %v1005_v15  ;;  %908 = vmatprep.subr.bf16.mxu0 %v1006_v16  ;;  %v1037_v49 = vld [vmem:[%s1331_s1 + $0x1a8] sm:$0xff]   ;;  %v1041_v53 = vld [vmem:[%s1331_s1 + $0x1a0] sm:$0xff]   ;;  %v1042_v54 = vld [vmem:[%s1331_s1 + $0x158] sm:$0xff]  }
  0x12   :  { %930 = vmatprep.subr.bf16.mxu1 %v1007_v17  ;;  %640 = vmatprep.mubr.bf16.mxu1 %v830_v37  ;;  %v1043_v55 = vld [vmem:[%s1331_s1 + $0x1d8] sm:$0xff]   ;;  %v1046_v58 = vld [vmem:[%s1331_s1 + $0x150] sm:$0xff]   ;;  %v1050_v62 = vld [vmem:[%s1331_s1 + $0x148] sm:$0xff]  }
  0x13   :  { %v1044_v56 = vld [vmem:[%s1331_s1 + $0x118] sm:$0xff]   ;;  %v1047_v59 = vld [vmem:[%s1331_s1 + $0x1d0] sm:$0xff]   ;;  %v1051_v63 = vld [vmem:[%s1331_s1 + $0x1c8] sm:$0xff]  }
  0x14   :  { %909 = vmatpush3.bf16.msra.mxu0 %v1008_v18  ;;  %v1045_v57 = vld [vmem:[%s1331_s1 + $0x198] sm:$0xff]   ;;  %v1048_v60 = vld [vmem:[%s1331_s1 + $0x110] sm:$0xff]   ;;  %v1052_v0 = vld [vmem:[%s1331_s1 + $0x108] sm:$0xff]  }
  0x15   :  { %931 = vmatpush3.bf16.msra.mxu1 %v1009_v19  ;;  %910 = vmatprep.subr.bf16.mxu0 %v1010_v20  ;;  %v1049_v61 = vld [vmem:[%s1331_s1 + $0x190] sm:$0xff]   ;;  %v1053_v1 = vld [vmem:[%s1331_s1 + $0x188] sm:$0xff]   ;;  %v1054_v2 = vld [vmem:[%s1331_s1 + $0x140] sm:$0xff]  }
  0x16   :  { %932 = vmatprep.subr.bf16.mxu1 %v1011_v21  ;;  %v1055_v3 = vld [vmem:[%s1331_s1 + $0x1c0] sm:$0xff]   ;;  %v26_v6 = vld [vmem:[%s1330_s0 + $0x10] sm:$0xff]  ;;  %v27_v9 = vld [vmem:[%s1330_s0 + $0x18] sm:$0xff] }
  0x17   :  { %v1056_v4 = vld [vmem:[%s1331_s1 + $0x100] sm:$0xff]   ;;  %v831_v7 = vcombine.low %v26_v6, %v26_v6  ;;  %v832_v8 = vcombine.high %v26_v6, %v26_v6 }
  0x18   :  { %911 = vmatpush3.bf16.msra.mxu0 %v1012_v22  ;;  %v1057_v5 = vld [vmem:[%s1331_s1 + $0x180] sm:$0xff]  }
  0x19   :  { %933 = vmatpush3.bf16.msra.mxu1 %v1013_v23  ;;  %912 = vmatprep.subr.bf16.mxu0 %v1014_v24 }
  0x1a   :  { %934 = vmatprep.subr.bf16.mxu1 %v1015_v25 }
  0x1c   :  { %913 = vmatpush3.bf16.msra.mxu0 %v1016_v26 }
  0x1d   :  { %935 = vmatpush3.bf16.msra.mxu1 %v1017_v27  ;;  %914 = vmatprep.subr.bf16.mxu0 %v1018_v28 }
  0x1e   :  { %936 = vmatprep.subr.bf16.mxu1 %v1019_v29 }
  0x20   :  { %915 = vmatpush3.bf16.msra.mxu0 %v1020_v30 }
  0x21   :  { %937 = vmatpush3.bf16.msra.mxu1 %v1021_v31  ;;  %944 = vmatprep.subr.bf16.mxu0 %v1026_v38 }
  0x22   :  { %966 = vmatprep.subr.bf16.mxu1 %v1027_v39 }
  0x23   :  { %601 = vmatmul.mubr.bf16.vlgmr.msra.gmra.mxu0 %v827_v34 }
  0x24   :  { %641 = vmatmul.mubr.bf16.vlgmr.msra.gmra.mxu1 %v829_v36  ;;  %945 = vmatpush3.bf16.msra.mxu0 %v1028_v40 }
  0x25   :  { %967 = vmatpush3.bf16.msra.mxu1 %v1029_v41  ;;  %946 = vmatprep.subr.bf16.mxu0 %v1030_v42 }
  0x26   :  { %968 = vmatprep.subr.bf16.mxu1 %v1031_v43 }
  0x28   :  { %947 = vmatpush3.bf16.msra.mxu0 %v1032_v44 }
  0x29   :  { %969 = vmatpush3.bf16.msra.mxu1 %v1033_v45  ;;  %948 = vmatprep.subr.bf16.mxu0 %v1034_v46 }
  0x2a   :  { %970 = vmatprep.subr.bf16.mxu1 %v1035_v47 }
  0x2c   :  { %949 = vmatpush3.bf16.msra.mxu0 %v1036_v48 }
  0x2d   :  { %971 = vmatpush3.bf16.msra.mxu1 %v1037_v49  ;;  %950 = vmatprep.subr.bf16.mxu0 %v1038_v50 }
  0x2e   :  { %972 = vmatprep.subr.bf16.mxu1 %v1039_v51 }
  0x30   :  { %951 = vmatpush3.bf16.msra.mxu0 %v1040_v52 }
  0x31   :  { %973 = vmatpush3.bf16.msra.mxu1 %v1041_v53  ;;  %952 = vmatprep.subr.bf16.mxu0 %v1042_v54 }
  0x32   :  { %974 = vmatprep.subr.bf16.mxu1 %v1043_v55 }
  0x34   :  { %953 = vmatpush3.bf16.msra.mxu0 %v1044_v56 }
  0x35   :  { %975 = vmatpush3.bf16.msra.mxu1 %v1045_v57  ;;  %954 = vmatprep.subr.bf16.mxu0 %v1046_v58 }
  0x36   :  { %976 = vmatprep.subr.bf16.mxu1 %v1047_v59 }
  0x38   :  { %955 = vmatpush3.bf16.msra.mxu0 %v1048_v60 }
  0x39   :  { %977 = vmatpush3.bf16.msra.mxu1 %v1049_v61  ;;  %956 = vmatprep.subr.bf16.mxu0 %v1050_v62 }
  0x3a   :  { %978 = vmatprep.subr.bf16.mxu1 %v1051_v63 }
  0x3c   :  { %957 = vmatpush3.bf16.msra.mxu0 %v1052_v0 }
  0x3d   :  { %979 = vmatpush3.bf16.msra.mxu1 %v1053_v1  ;;  %958 = vmatprep.subr.bf16.mxu0 %v1054_v2 }
  0x3e   :  { %980 = vmatprep.subr.bf16.mxu1 %v1055_v3 }
  0x3f   :  { %10 = vsyncpa [#allocation6], 0  ;;  %v833_v10 = vcombine.low %v27_v9, %v27_v9  ;;  %v834_v11 = vcombine.high %v27_v9, %v27_v9  ;;  %680 = vmatprep.mubr.bf16.mxu0 %v832_v8  ;;  %v1090_v12 = vmov 0.0   ;;  %v769_v62 = vlaneseq  ;;  %v899_v9 = vld [vmem:[%s1332_s2] ss:$0 sm:$0xff]  ;;  %s1091_s21 = smov [#allocation5]  }
  0x40   :  { %959 = vmatpush3.bf16.msra.mxu0 %v1056_v4  ;;  %22 = vst [vmem:[#allocation3] sm:$0x1] %v1090_v12  ;;  %23 = vst [vmem:[#allocation4] sm:$0x1] %v1090_v12  ;;  %vm795_vm1 = vcmask 1041408   ;;  %s813_s22 = sshll.u32 %s1091_s21, 4  ;;  %s814_s22 = int_to_ptr.vmem [resolvable:$true] %s813_s22 }
  0x41   :  { %981 = vmatpush3.bf16.msra.mxu1 %v1057_v5  ;;  %720 = vmatprep.mubr.bf16.mxu1 %v834_v11  ;;  %v770_v63 = vshrl.u32 %v769_v62, 7  ;;  %s1068_s23 = scalar_lea.vmem %s814_s22, 32  ;;  %p1073_p1 = scmp.lt.s32.totalorder %s814_s22, %s814_s22 }
  0x42   :  { %p1069_p0 = scmp.ne.s32.totalorder %s814_s22, %s1068_s23  ;;  %p1074_p2 = scmp.lt.s32.totalorder %s1068_s23, %s1068_s23 }
  0x43   :  { %681 = vmatmul.mubr.bf16.vlgmr.msra.gmra.mxu0 %v831_v7  ;;  %v771_v0 = vsub.s32 0, %v770_v63 }
  0x44   :  { %721 = vmatmul.mubr.bf16.vlgmr.msra.gmra.mxu1 %v833_v10  ;;  %p1075_p3 = por %p1074_p2, %p1073_p1 }
  0x46   :  { %p1076_p4 = pnand %p1075_p3, %p1069_p0 }
  0x47   :  { %v728_v47 = vld [vmem:[#allocation3] sm:$0x1]  ;;  %v737_v50 = vld [vmem:[#allocation4] sm:$0x1] }
  0xe3   :  { %v916_v13 = vpop.f32.mrf.mxu0 }
  0xe4   :  { %v938_v14 = vpop.f32.mrf.mxu1 }
  0xe5   :  { %v917_v15 = vpop.f32.mrf.mxu0 }
  0xe6   :  { %v939_v16 = vpop.f32.mrf.mxu1  ;;  %v918_v21 = vadd.f32 %v917_v15, %v916_v13 }
  0xe7   :  { %v919_v17 = vpop.f32.mrf.mxu0  ;;  %v940_v22 = vadd.f32 %v939_v16, %v938_v14 }
  0xe8   :  { %v941_v18 = vpop.f32.mrf.mxu1 }
  0xe9   :  { %v920_v19 = vpop.f32.mrf.mxu0  ;;  %v643_v27 = vadd.f32 %v940_v22, %v918_v21 }
  0xea   :  { %v942_v20 = vpop.f32.mrf.mxu1 }
 0x103   :  { %v960_v23 = vpop.f32.mrf.mxu0 }
 0x104   :  { %v982_v24 = vpop.f32.mrf.mxu1 }
 0x105   :  { %v961_v25 = vpop.f32.mrf.mxu0 }
 0x106   :  { %v983_v26 = vpop.f32.mrf.mxu1  ;;  %v962_v28 = vadd.f32 %v961_v25, %v960_v23 }
 0x107   :  { %v963_v29 = vpop.f32.mrf.mxu0  ;;  %v984_v32 = vadd.f32 %v983_v26, %v982_v24 }
 0x108   :  { %v985_v30 = vpop.f32.mrf.mxu1  ;;  %v683_v31 = vadd.f32 %v962_v28, %v643_v27 }
 0x109   :  { %v964_v33 = vpop.f32.mrf.mxu0 }
 0x10a   :  { %v986_v34 = vpop.f32.mrf.mxu1  ;;  %v723_v35 = vadd.f32 %v984_v32, %v683_v31 }
 0x10c   :  { %v729_v36 = vrot.slane %v723_v35, 4  ;;  %v738_v37 = vmul.f32 %v723_v35, %v723_v35  ;;  %v748_v38 = vpack.c.bf16 %v723_v35, %v723_v35 }
 0x10e   :  { %v730_v39 = vadd.f32 %v729_v36, %v723_v35  ;;  %v739_v40 = vrot.slane %v738_v37, 4  ;;  %753 = vst [vmem:[#allocation2] sm:$0xf] %v748_v38 }
 0x110   :  { %v731_v41 = vrot.slane %v730_v39, 2  ;;  %v740_v42 = vadd.f32 %v739_v40, %v738_v37 }
 0x112   :  { %v732_v43 = vadd.f32 %v731_v41, %v730_v39  ;;  %v741_v44 = vrot.slane %v740_v42, 2 }
 0x114   :  { %v733_v45 = vrot.slane %v732_v43, 1  ;;  %v742_v46 = vadd.f32 %v741_v44, %v740_v42 }
 0x115   :  { %v766_v1 = vld [vmem:[#allocation2] sm:$0xf] }
 0x116   :  { %v734_v48 = vadd.f32 %v733_v45, %v732_v43  ;;  %v743_v49 = vrot.slane %v742_v46, 1  ;;  %v767_v3 = vunpack.c.l.bf16 %v766_v1 }
 0x118   :  { %v735_v51 = vadd.f32 %v734_v48, %v728_v47  ;;  %v744_v52 = vadd.f32 %v743_v49, %v742_v46 }
 0x11a   :  { %736 = vst [vmem:[#allocation3] sm:$0x1] %v735_v51  ;;  %v745_v53 = vadd.f32 %v744_v52, %v737_v50 }
 0x11c   :  { %746 = vst [vmem:[#allocation4] sm:$0x1] %v745_v53 }
 0x121   :  { %v757_v54 = vld [vmem:[#allocation3] sm:$0x1] }
 0x122   :  { %v758_v55 = vmul.f32 0.5, %v757_v54 }
 0x123   :  { %v759_v56 = vld [vmem:[#allocation4] sm:$0x1] }
 0x124   :  { %v760_v57 = vmul.f32 0.5, %v759_v56  ;;  %v761_v58 = vmul.f32 %v758_v55, %v758_v55  ;;  %v772_v2 = vrot.slane %v758_v55, %v771_v0 }
 0x126   :  { %v762_v59 = vsub.f32 %v760_v57, %v761_v58  ;;  %v774_v5 = vsub.f32 %v767_v3, %v772_v2 }
 0x128   :  { %v763_v60 = vmax.f32 %v762_v59, 0.0 }
 0x12a   :  { %v764_v61 = vadd.f32 1e-05, %v763_v60 }
 0x12c   :  { %1062 = vrsqrt.f32 %v764_v61 }
 0x139   :  { %v1063_v4 = vpop.eup %1062 }
 0x13a   :  { %v779_v6 = vrot.slane %v1063_v4, %v771_v0 }
 0x13c   :  { %v781_v7 = vmul.f32 %v779_v6, %v774_v5 }
 0x13e   :  { %vm782_vm0 = vcmp.gt.f32.partialorder %v781_v7, 0.0  ;;  %v783_v8 = vmul.f32 0.2, %v781_v7 }
 0x140   :  { %v784_v10 = vsel %vm782_vm0, %v781_v7, %v783_v8 }
 0x141   :  { %v794_v11 = vmul.f32 %v899_v9, %v784_v10  ;;  %786 = vst [vmem:[#allocation5] sm:$0x3] %v784_v10 }
 0x143   :  { %v796_v12 = vsel %vm795_vm1, %v794_v11, 0.0 }
 0x144   :  { %797 = vadd.xlane.f32.xlu0 %v796_v12 }
 0x145   :  { %1079 = shalt.err (!%p1076_p4)
}
 0x146   :  { %816 = dma.vmem_to_hbm [thread:$0]  %s814_s22, 32, %s1333_s3, [#allocation6]   ;;  %vm805_vm2 = vcmask 1024  }
 0x1cd   :  { %v798_v13 = vpop.xlane.xlu0 %797 }
 0x1ce   :  { %v799_v14 = vsub.f32 0.0, %v798_v13 }
 0x1d0   :  { %v800_v15 = vmul.f32 1.442695, %v799_v14 }
 0x1d2   :  { %1064 = vpow2.f32 %v800_v15 }
 0x1df   :  { %v1065_v16 = vpop.eup %1064 }
 0x1e0   :  { %v802_v17 = vadd.f32 1.0, %v1065_v16 }
 0x1e2   :  { %1066 = vrcp.f32 %v802_v17 }
 0x1ef   :  { %v1067_v18 = vpop.eup %1066 }
 0x1f0   :  { %806 = vst.msk [vmem:[%s1334_s4] sm:$0x3] %vm805_vm2, %v1067_v18 }
 0x1f1   :  { %1088 = dma.done.wait [#allocation6], 32  }
 0x1f2   :  { %1089 = vsyncadd [#allocation6], 4294967264 }
 0x1f3   :  { %824 = vsyncpa [#allocation6], 1 }

// kernel: _lambda_.22
= control target key start
LH: loop header
LB: loop body
LE: loop exit
PB: predicated region body
PF: predicated region fallthrough
CT: control target
= control target key end

     0   :  { %v126_v0 = vmov 0.0   ;;  %vm127_vm0 = vmmov 0   ;;  %vm45_vm1 = vcmask 523264   ;;  %s161_s1 = inlined_call_operand.vmem [shape: bf16[64,128], index: 1, kind: input, shape index: {}]   ;;  %s162_s0 = inlined_call_operand.vmem [shape: bf16[8,64], index: 0, kind: input, shape index: {}]   ;;  %s163_s2 = inlined_call_operand.vmem [shape: bf16[8,128], index: 2, kind: output, shape index: {}]  }
   0x1   :  { %108 = vmatprep.subr.bf16.mxu0 %v126_v0  ;;  %v122_v1 = vld [vmem:[%s161_s1 + $0x18] sm:$0xff]   ;;  %116 = vmatprep.mubr.msk.bf16.mxu0 %vm127_vm0, %v126_v0  ;;  %v123_v2 = vld [vmem:[%s161_s1 + $0x10] sm:$0xff]   ;;  %v124_v3 = vld [vmem:[%s161_s1 + $0x8] sm:$0xff]  }
   0x2   :  { %109 = vmatpush3.bf16.msra.mxu0 %v122_v1  ;;  %v125_v4 = vld [vmem:[%s161_s1] sm:$0xff]  }
   0x3   :  { %110 = vmatprep.subr.bf16.mxu0 %v126_v0  ;;  %v12_v5 = vld [vmem:[%s162_s0] sm:$0xf] }
   0x6   :  { %111 = vmatpush3.bf16.msra.mxu0 %v123_v2 }
   0x7   :  { %112 = vmatprep.subr.bf16.mxu0 %v126_v0 }
   0xa   :  { %113 = vmatpush3.bf16.msra.mxu0 %v124_v3 }
   0xb   :  { %114 = vmatprep.subr.bf16.mxu0 %v126_v0 }
   0xe   :  { %115 = vmatpush3.bf16.msra.mxu0 %v125_v4 }
  0x11   :  { %117 = vmatmul.mubr.msk.bf16.vlgmr.msra.gmra.mxu0 %vm45_vm1, %v12_v5 }
  0xd1   :  { %v83_v6 = vpop.f32.mrf.mxu0 }
  0xd2   :  { %vm89_vm2 = vcmp.gt.f32.partialorder %v83_v6, 0.0  ;;  %v90_v7 = vmul.f32 0.2, %v83_v6 }
  0xd3   :  { %v118_v8 = vpop.f32.mrf.mxu0 }
  0xd4   :  { %v91_v9 = vsel %vm89_vm2, %v83_v6, %v90_v7 }
  0xd5   :  { %v92_v10 = vpack.c.bf16 %v91_v9, %v91_v9  ;;  %v86_v11 = vpop.f32.mrf.mxu0 }
  0xd7   :  { %93 = vst [vmem:[%s163_s2] sm:$0xf] %v92_v10  ;;  %v119_v12 = vpop.f32.mrf.mxu0 }

</bundles_post_ra>
